<compile_context>
chip_gen: v7x
topology: tpu7x:2x2x1
jax: 0.10.0
libtpu: 0.0.40
codegen_flags: <defaults>
</compile_context>

<pallas_src>
import functools
import math

import jax
import jax.numpy as jnp
from jax.experimental import pallas as pl
from jax.experimental.pallas import tpu as pltpu


# ----------------------------------------------------------------------------
# helpers
# ----------------------------------------------------------------------------
def _layernorm(x, w, b, eps=1e-5):
    mu = jnp.mean(x, axis=-1, keepdims=True)
    xc = x - mu
    var = jnp.mean(xc * xc, axis=-1, keepdims=True)
    return xc * jax.lax.rsqrt(var + eps) * w + b


def make_positional_encoding(max_len, d_model):
    position = jnp.arange(max_len, dtype=jnp.float32)[:, None]
    div_term = jnp.exp(
        jnp.arange(0, d_model, 2, dtype=jnp.float32) * (-math.log(10000.0) / d_model)
    )
    pe = jnp.zeros((max_len, d_model), jnp.float32)
    pe = pe.at[:, 0::2].set(jnp.sin(position * div_term))
    pe = pe.at[:, 1::2].set(jnp.cos(position * div_term))
    return pe


# ----------------------------------------------------------------------------
# single fused kernel: one grid step == one batch tile (default: whole batch)
# ----------------------------------------------------------------------------
def _fused_forward_kernel(
    x_ref, pe_ref, in_w_ref, in_b_ref,
    wqkv_ref, bqkv_ref, wo_ref, bo_ref,
    w1_ref, b1_ref, w2_ref, b2_ref,
    ln1w_ref, ln1b_ref, ln2w_ref, ln2b_ref,
    out_w_ref, out_b_ref, o_ref, *, nhead, num_layers,
):
    bf16 = jnp.bfloat16
    x = x_ref[...]                                   # [Bt, S, I_pad] bf16
    bt, seq, _ = x.shape
    rows = bt * seq
    x2 = x.reshape(rows, x.shape[-1])

    # input projection + positional encoding (f32 accumulation / f32 elementwise)
    h = jnp.dot(x2, in_w_ref[...], preferred_element_type=jnp.float32)
    h = h + in_b_ref[...] + pe_ref[...]              # [rows, D] f32

    d_model = h.shape[-1]
    hd = d_model // nhead
    scale = 1.0 / math.sqrt(hd)

    for l in range(num_layers):                      # static unroll over layers
        h_bf = h.astype(bf16)                        # single cast, reused below

        # ---- fused QKV projection: one [rows, D] x [D, 3D] matmul ----
        qkv = jnp.dot(h_bf, wqkv_ref[l], preferred_element_type=jnp.float32)
        qkv = qkv + bqkv_ref[l]                      # [rows, 3D]
        q3 = qkv[:, :d_model].reshape(bt, seq, d_model)
        k3 = qkv[:, d_model:2 * d_model].reshape(bt, seq, d_model)
        v3 = qkv[:, 2 * d_model:].reshape(bt, seq, d_model)

        # ---- per-head attention (batched over batch; S=8, hd=16 are tiny) ----
        a_heads = []
        for hh in range(nhead):
            sl = slice(hh * hd, (hh + 1) * hd)
            qh = q3[:, :, sl].astype(bf16)           # [Bt, S, hd]
            kh = k3[:, :, sl].astype(bf16)
            vh = v3[:, :, sl].astype(bf16)
            s = jnp.einsum("bqd,bkd->bqk", qh, kh,
                           preferred_element_type=jnp.float32) * scale
            s = s - jnp.max(s, axis=-1, keepdims=True)
            p = jnp.exp(s)
            p = p / jnp.sum(p, axis=-1, keepdims=True)   # exact f32 divide
            a_heads.append(jnp.einsum("bqk,bkd->bqd", p.astype(bf16), vh,
                                      preferred_element_type=jnp.float32))
        # reassemble heads along the feature dim -> one dense [rows, D] operand
        a = jnp.concatenate(a_heads, axis=-1).reshape(rows, d_model)

        # ---- fused attention output projection: one [rows, D] x [D, D] ----
        attn = jnp.dot(a.astype(bf16), wo_ref[l],
                       preferred_element_type=jnp.float32) + bo_ref[l]

        # dropout(p=0.1) is identity here (inference mode)
        h = _layernorm(h + attn, ln1w_ref[l], ln1b_ref[l])

        # ---- feed-forward ----
        h_bf = h.astype(bf16)
        h1 = jnp.dot(h_bf, w1_ref[l], preferred_element_type=jnp.float32) + b1_ref[l]
        h1 = jnp.maximum(h1, 0.0)
        ff = jnp.dot(h1.astype(bf16), w2_ref[l],
                     preferred_element_type=jnp.float32) + b2_ref[l]
        h = _layernorm(h + ff, ln2w_ref[l], ln2b_ref[l])

    # ---- mean pool over sequence + output projection (lane-dense, padded) ----
    pooled = jnp.mean(h.reshape(bt, seq, d_model), axis=1)              # [Bt, D]
    out = jnp.dot(pooled.astype(bf16), out_w_ref[...],
                  preferred_element_type=jnp.float32) + out_b_ref[...]  # [Bt,Opad]
    o_ref[0] = out


def transformer_forward(x, kp, *, nhead, num_layers, horizon, output_dim, o_pad,
                        batch_tiles=1):
    B, S, I = x.shape
    O = output_dim * horizon
    assert B % batch_tiles == 0
    bt = B // batch_tiles

    i_pad = kp["in_w"].shape[0]
    d_model = kp["in_w"].shape[1]
    dim_ff = kp["w1"].shape[-1]
    hd = d_model // nhead

    # lane-dense x: zero-pad feature dim to i_pad (matching zero rows in in_w)
    x_p = jnp.pad(x, ((0, 0), (0, 0), (0, i_pad - I))).astype(jnp.bfloat16)

    order = ["in_w", "in_b", "wqkv", "bqkv", "wo", "bo", "w1", "b1", "w2", "b2",
             "ln1w", "ln1b", "ln2w", "ln2b", "out_w", "out_b"]
    weights = [kp[name] for name in order]

    def replicated_spec(a):
        nd = a.ndim
        return pl.BlockSpec(a.shape, lambda b, _nd=nd: (0,) * _nd)

    # TODO(synk): if the model grows, single-buffer these replicated weight
    # specs (pipeline_mode=pl.Buffered(1)), set vmem_limit_bytes and tile over
    # layers so the design still fits v7x's 64 MiB VMEM.
    in_specs = [pl.BlockSpec((bt, S, i_pad), lambda b: (b, 0, 0)),
                pl.BlockSpec((bt * S, d_model), lambda b: (b, 0))]
    in_specs += [replicated_spec(a) for a in weights]

    # rough cost hint for XLA scheduling around this tiny custom call
    flops_layer = (2 * B * S * d_model * 3 * d_model      # fused QKV
                   + 4 * B * nhead * S * S * hd           # scores + AV
                   + 2 * B * S * d_model * d_model        # attn out proj
                   + 4 * B * S * d_model * dim_ff)        # FFN
    flops = (2 * B * S * i_pad * d_model
             + num_layers * flops_layer
             + 2 * B * d_model * o_pad)
    bytes_accessed = (int(x_p.size) * 2 + int(kp["pe"].size) * 4
                      + sum(int(a.size) * a.dtype.itemsize for a in weights)
                      + B * o_pad * 4)
    cost = pl.CostEstimate(flops=int(flops),
                           transcendentals=int(num_layers * B * nhead * S * S),
                           bytes_accessed=int(bytes_accessed))

    out3 = pl.pallas_call(
        functools.partial(_fused_forward_kernel, nhead=nhead,
                          num_layers=num_layers),
        grid=(batch_tiles,),
        in_specs=in_specs,
        out_specs=pl.BlockSpec((1, bt, o_pad), lambda b: (b, 0, 0)),
        out_shape=jax.ShapeDtypeStruct((batch_tiles, bt, o_pad), jnp.float32),
        compiler_params=pltpu.CompilerParams(
            dimension_semantics=("parallel",)),
        cost_estimate=cost,
    )(x_p, kp["pe"], *weights)

    return out3.reshape(B, o_pad)[:, :O].reshape(B, horizon, output_dim)


# ----------------------------------------------------------------------------
# parameter init (PyTorch-style layout) and kernel-layout preparation
# ----------------------------------------------------------------------------
def init_params(key, input_dim, d_model, nhead, num_layers, dim_ff, output_dim,
                horizon):
    keys = jax.random.split(key, 2 + num_layers)

    def lin(k, out_f, in_f):
        kw, kb = jax.random.split(k)
        w = jax.random.normal(kw, (out_f, in_f), jnp.float32) * 0.05
        b = jax.random.normal(kb, (1, out_f), jnp.float32) * 0.05
        return w, b

    params = {}
    params["in_w"], params["in_b"] = lin(keys[0], d_model, input_dim)

    layers = []
    for l in range(num_layers):
        k1, k2, k3, k4 = jax.random.split(keys[2 + l], 4)
        wqkv, bqkv = lin(k1, 3 * d_model, d_model)
        wo, bo = lin(k2, d_model, d_model)
        w1, b1 = lin(k3, dim_ff, d_model)
        w2, b2 = lin(k4, d_model, dim_ff)
        layers.append(dict(
            wqkv=wqkv, bqkv=bqkv, wo=wo, bo=bo,
            w1=w1, b1=b1, w2=w2, b2=b2,
            ln1w=jnp.ones((1, d_model), jnp.float32),
            ln1b=jnp.zeros((1, d_model), jnp.float32),
            ln2w=jnp.ones((1, d_model), jnp.float32),
            ln2b=jnp.zeros((1, d_model), jnp.float32),
        ))
    params["layers"] = layers
    params["out_w"], params["out_b"] = lin(keys[1], output_dim * horizon, d_model)
    return params


def prepare_kernel_params(params, pe, batch, seq_len, i_pad, o_pad):
    """Pre-transpose weights to [in, out], stack per layer, pad, cast bf16."""
    bf16 = jnp.bfloat16
    d_model, input_dim = params["in_w"].shape

    kp = {
        # PE tiled over the batch so the kernel can add it to flattened rows
        "pe": jnp.tile(pe[:seq_len], (batch, 1)).astype(jnp.float32),  # [B*S, D]
        "in_w": jnp.pad(params["in_w"].T,
                        ((0, i_pad - input_dim), (0, 0))).astype(bf16),  # [I_pad,D]
        "in_b": params["in_b"].astype(jnp.float32),                      # [1, D]
    }

    names = ["wqkv", "bqkv", "wo", "bo", "w1", "b1", "w2", "b2",
             "ln1w", "ln1b", "ln2w", "ln2b"]
    stacks = {n: [] for n in names}
    for lp in params["layers"]:
        stacks["wqkv"].append(lp["wqkv"].T.astype(bf16))              # [D, 3D]
        stacks["bqkv"].append(lp["bqkv"].astype(jnp.float32))         # [1, 3D]
        stacks["wo"].append(lp["wo"].T.astype(bf16))                  # [D, D]
        stacks["bo"].append(lp["bo"].astype(jnp.float32))             # [1, D]
        stacks["w1"].append(lp["w1"].T.astype(bf16))                  # [D, F]
        stacks["b1"].append(lp["b1"].astype(jnp.float32))             # [1, F]
        stacks["w2"].append(lp["w2"].T.astype(bf16))                  # [F, D]
        stacks["b2"].append(lp["b2"].astype(jnp.float32))             # [1, D]
        for n in ("ln1w", "ln1b", "ln2w", "ln2b"):
            stacks[n].append(lp[n].astype(jnp.float32))
    for n in names:
        kp[n] = jnp.stack(stacks[n], axis=0)                          # [L, ...]

    O = params["out_w"].shape[0]
    kp["out_w"] = jnp.pad(params["out_w"].T,
                          ((0, 0), (0, o_pad - O))).astype(bf16)      # [D, O_pad]
    kp["out_b"] = jnp.pad(params["out_b"],
                          ((0, 0), (0, o_pad - O))).astype(jnp.float32)
    return kp


# ----------------------------------------------------------------------------
# pure-JAX f32 reference (same math as the PyTorch module)
# ----------------------------------------------------------------------------
def reference_forward(x, params, *, nhead, horizon, output_dim, pe):
    B, S, _ = x.shape
    d_model = params["in_w"].shape[0]
    hd = d_model // nhead
    h = jnp.einsum("bsi,di->bsd", x, params["in_w"]) + params["in_b"] + pe[:S]
    for lp in params["layers"]:
        qkv = jnp.einsum("bsd,ed->bse", h, lp["wqkv"]) + lp["bqkv"]
        q, k, v = jnp.split(qkv, 3, axis=-1)
        q = q.reshape(B, S, nhead, hd)
        k = k.reshape(B, S, nhead, hd)
        v = v.reshape(B, S, nhead, hd)
        s = jnp.einsum("bqhd,bkhd->bhqk", q, k) / math.sqrt(hd)
        p = jax.nn.softmax(s, axis=-1)
        a = jnp.einsum("bhqk,bkhd->bqhd", p, v).reshape(B, S, d_model)
        a = jnp.einsum("bsd,ed->bse", a, lp["wo"]) + lp["bo"]
        h = _layernorm(h + a, lp["ln1w"], lp["ln1b"])
        f = jnp.maximum(jnp.einsum("bsd,fd->bsf", h, lp["w1"]) + lp["b1"], 0.0)
        f = jnp.einsum("bsf,df->bsd", f, lp["w2"]) + lp["b2"]
        h = _layernorm(h + f, lp["ln2w"], lp["ln2b"])
    pooled = h.mean(axis=1)
    out = jnp.einsum("bd,od->bo", pooled, params["out_w"]) + params["out_b"]
    return out.reshape(B, horizon, output_dim)


if __name__ == "__main__":
    # small shapes consistent with the module's forward
    B, S = 2, 8
    input_dim, d_model, nhead, num_layers = 16, 128, 8, 2
    dim_ff, output_dim, horizon = 256, 1, 4
    i_pad = 128                                           # lane-dense input pad
    o_pad = ((output_dim * horizon + 127) // 128) * 128   # lane-dense output pad

    key = jax.random.PRNGKey(0)
    kx, kparam = jax.random.split(key)
    x = jax.random.normal(kx, (B, S, input_dim), jnp.float32)
    params = init_params(kparam, input_dim, d_model, nhead, num_layers,
                         dim_ff, output_dim, horizon)
    pe = make_positional_encoding(64, d_model)
    kp = prepare_kernel_params(params, pe, B, S, i_pad, o_pad)

    out = transformer_forward(x, kp, nhead=nhead, num_layers=num_layers,
                              horizon=horizon, output_dim=output_dim,
                              o_pad=o_pad, batch_tiles=1)
    out = jax.block_until_ready(out)

    ref = reference_forward(x, params, nhead=nhead, horizon=horizon,
                            output_dim=output_dim, pe=pe)
    assert out.shape == (B, horizon, output_dim), out.shape
    # bf16 matmuls vs f32 reference -> loose tolerance
    err = jnp.max(jnp.abs(out - ref))
    assert jnp.allclose(out, ref, rtol=5e-2, atol=5e-2), f"mismatch, max err {err}"
    print("KERNEL_OK")
</pallas_src>

<mosaic_0001>
module attributes {stable_mosaic.version = 11 : i64} {
  func.func @_fused_forward_kernel(%arg0: i32, %arg1: memref<2x8x128xbf16, #tpu.memory_space<vmem>>, %arg2: memref<16x128xf32, #tpu.memory_space<vmem>>, %arg3: memref<128x128xbf16, #tpu.memory_space<vmem>>, %arg4: memref<1x128xf32, #tpu.memory_space<vmem>>, %arg5: memref<2x128x384xbf16, #tpu.memory_space<vmem>>, %arg6: memref<2x1x384xf32, #tpu.memory_space<vmem>>, %arg7: memref<2x128x128xbf16, #tpu.memory_space<vmem>>, %arg8: memref<2x1x128xf32, #tpu.memory_space<vmem>>, %arg9: memref<2x128x256xbf16, #tpu.memory_space<vmem>>, %arg10: memref<2x1x256xf32, #tpu.memory_space<vmem>>, %arg11: memref<2x256x128xbf16, #tpu.memory_space<vmem>>, %arg12: memref<2x1x128xf32, #tpu.memory_space<vmem>>, %arg13: memref<2x1x128xf32, #tpu.memory_space<vmem>>, %arg14: memref<2x1x128xf32, #tpu.memory_space<vmem>>, %arg15: memref<2x1x128xf32, #tpu.memory_space<vmem>>, %arg16: memref<2x1x128xf32, #tpu.memory_space<vmem>>, %arg17: memref<128x128xbf16, #tpu.memory_space<vmem>>, %arg18: memref<1x128xf32, #tpu.memory_space<vmem>>, %arg19: memref<1x2x128xf32, #tpu.memory_space<vmem>>) attributes {dimension_semantics = [#tpu.dimension_semantics<parallel>], iteration_bounds = array<i64: 1>, scalar_prefetch = 0 : i64, scratch_operands = 0 : i64, tpu.core_type = #tpu.core_type<tc>, window_params = [{transform_indices = @transform_0, window_bounds = array<i64: 2, 8, 128>}, {transform_indices = @transform_1, window_bounds = array<i64: 16, 128>}, {pipeline_mode = #tpu.pipeline_mode<synchronous>, transform_indices = @transform_2, window_bounds = array<i64: 128, 128>}, {pipeline_mode = #tpu.pipeline_mode<synchronous>, transform_indices = @transform_3, window_bounds = array<i64: 1, 128>}, {pipeline_mode = #tpu.pipeline_mode<synchronous>, transform_indices = @transform_4, window_bounds = array<i64: 2, 128, 384>}, {pipeline_mode = #tpu.pipeline_mode<synchronous>, transform_indices = @transform_5, window_bounds = array<i64: 2, 1, 384>}, {pipeline_mode = #tpu.pipeline_mode<synchronous>, transform_indices = @transform_6, window_bounds = array<i64: 2, 128, 128>}, {pipeline_mode = #tpu.pipeline_mode<synchronous>, transform_indices = @transform_7, window_bounds = array<i64: 2, 1, 128>}, {pipeline_mode = #tpu.pipeline_mode<synchronous>, transform_indices = @transform_8, window_bounds = array<i64: 2, 128, 256>}, {pipeline_mode = #tpu.pipeline_mode<synchronous>, transform_indices = @transform_9, window_bounds = array<i64: 2, 1, 256>}, {pipeline_mode = #tpu.pipeline_mode<synchronous>, transform_indices = @transform_10, window_bounds = array<i64: 2, 256, 128>}, {pipeline_mode = #tpu.pipeline_mode<synchronous>, transform_indices = @transform_11, window_bounds = array<i64: 2, 1, 128>}, {pipeline_mode = #tpu.pipeline_mode<synchronous>, transform_indices = @transform_12, window_bounds = array<i64: 2, 1, 128>}, {pipeline_mode = #tpu.pipeline_mode<synchronous>, transform_indices = @transform_13, window_bounds = array<i64: 2, 1, 128>}, {pipeline_mode = #tpu.pipeline_mode<synchronous>, transform_indices = @transform_14, window_bounds = array<i64: 2, 1, 128>}, {pipeline_mode = #tpu.pipeline_mode<synchronous>, transform_indices = @transform_15, window_bounds = array<i64: 2, 1, 128>}, {pipeline_mode = #tpu.pipeline_mode<synchronous>, transform_indices = @transform_16, window_bounds = array<i64: 128, 128>}, {pipeline_mode = #tpu.pipeline_mode<synchronous>, transform_indices = @transform_17, window_bounds = array<i64: 1, 128>}, {transform_indices = @transform_18, window_bounds = array<i64: 1, 2, 128>}]} {
    %c0 = arith.constant 0 : index
    %c0_0 = arith.constant 0 : index
    %c0_1 = arith.constant 0 : index
    %0 = vector.load %arg1[%c0, %c0_0, %c0_1] : memref<2x8x128xbf16, #tpu.memory_space<vmem>>, vector<2x8x128xbf16>
    %1 = vector.shape_cast %0 : vector<2x8x128xbf16> to vector<16x128xbf16>
    %c0_2 = arith.constant 0 : index
    %c0_3 = arith.constant 0 : index
    %2 = vector.load %arg3[%c0_2, %c0_3] : memref<128x128xbf16, #tpu.memory_space<vmem>>, vector<128x128xbf16>
    %cst = arith.constant dense<0.000000e+00> : vector<16x128xf32>
    %3 = tpu.matmul %1, %2, %cst {dimension_numbers = #tpu.dot_dimension_numbers<[1], [0], [0], [1], [0, 0, 1, 1], [], []>} : vector<16x128xbf16>, vector<128x128xbf16>, vector<16x128xf32> -> vector<16x128xf32>
    %c0_4 = arith.constant 0 : index
    %c0_5 = arith.constant 0 : index
    %4 = vector.load %arg4[%c0_4, %c0_5] : memref<1x128xf32, #tpu.memory_space<vmem>>, vector<1x128xf32>
    %5 = vector.broadcast %4 : vector<1x128xf32> to vector<16x128xf32>
    %6 = arith.addf %3, %5 : vector<16x128xf32>
    %c0_6 = arith.constant 0 : index
    %c0_7 = arith.constant 0 : index
    %7 = vector.load %arg2[%c0_6, %c0_7] : memref<16x128xf32, #tpu.memory_space<vmem>>, vector<16x128xf32>
    %8 = arith.addf %6, %7 : vector<16x128xf32>
    %9 = arith.truncf %8 : vector<16x128xf32> to vector<16x128xbf16>
    %c0_8 = arith.constant 0 : index
    %c0_9 = arith.constant 0 : index
    %c0_10 = arith.constant 0 : index
    %10 = vector.load %arg5[%c0_8, %c0_9, %c0_10] : memref<2x128x384xbf16, #tpu.memory_space<vmem>>, vector<1x128x384xbf16>
    %11 = vector.shape_cast %10 : vector<1x128x384xbf16> to vector<128x384xbf16>
    %cst_11 = arith.constant dense<0.000000e+00> : vector<16x384xf32>
    %12 = tpu.matmul %9, %11, %cst_11 {dimension_numbers = #tpu.dot_dimension_numbers<[1], [0], [0], [1], [0, 0, 1, 1], [], []>} : vector<16x128xbf16>, vector<128x384xbf16>, vector<16x384xf32> -> vector<16x384xf32>
    %c0_12 = arith.constant 0 : index
    %c0_13 = arith.constant 0 : index
    %c0_14 = arith.constant 0 : index
    %13 = vector.load %arg6[%c0_12, %c0_13, %c0_14] : memref<2x1x384xf32, #tpu.memory_space<vmem>>, vector<1x1x384xf32>
    %14 = vector.shape_cast %13 : vector<1x1x384xf32> to vector<1x384xf32>
    %15 = vector.broadcast %14 : vector<1x384xf32> to vector<16x384xf32>
    %16 = arith.addf %12, %15 : vector<16x384xf32>
    %17 = vector.extract_strided_slice %16 {offsets = [0, 0], sizes = [16, 128], strides = [1, 1]} : vector<16x384xf32> to vector<16x128xf32>
    %18 = vector.shape_cast %17 : vector<16x128xf32> to vector<2x8x128xf32>
    %19 = vector.extract_strided_slice %16 {offsets = [0, 128], sizes = [16, 128], strides = [1, 1]} : vector<16x384xf32> to vector<16x128xf32>
    %20 = vector.shape_cast %19 : vector<16x128xf32> to vector<2x8x128xf32>
    %21 = vector.extract_strided_slice %16 {offsets = [0, 256], sizes = [16, 128], strides = [1, 1]} : vector<16x384xf32> to vector<16x128xf32>
    %22 = vector.shape_cast %21 : vector<16x128xf32> to vector<2x8x128xf32>
    %23 = vector.extract_strided_slice %18 {offsets = [0, 0, 0], sizes = [2, 8, 16], strides = [1, 1, 1]} : vector<2x8x128xf32> to vector<2x8x16xf32>
    %24 = arith.truncf %23 : vector<2x8x16xf32> to vector<2x8x16xbf16>
    %25 = vector.extract_strided_slice %20 {offsets = [0, 0, 0], sizes = [2, 8, 16], strides = [1, 1, 1]} : vector<2x8x128xf32> to vector<2x8x16xf32>
    %26 = arith.truncf %25 : vector<2x8x16xf32> to vector<2x8x16xbf16>
    %27 = vector.extract_strided_slice %22 {offsets = [0, 0, 0], sizes = [2, 8, 16], strides = [1, 1, 1]} : vector<2x8x128xf32> to vector<2x8x16xf32>
    %28 = arith.truncf %27 : vector<2x8x16xf32> to vector<2x8x16xbf16>
    "tpu.trace_start"() <{level = 10 : i32, message = "bqd,bkd->bqk"}> : () -> ()
    %cst_15 = arith.constant dense<0.000000e+00> : vector<2x8x8xf32>
    %29 = tpu.matmul %24, %26, %cst_15 {dimension_numbers = #tpu.dot_dimension_numbers<[2], [2], [1], [1], [0, 0, 0, 1, 1, 1], [0], [0]>} : vector<2x8x16xbf16>, vector<2x8x16xbf16>, vector<2x8x8xf32> -> vector<2x8x8xf32>
    "tpu.trace_stop"() : () -> ()
    %cst_16 = arith.constant 2.500000e-01 : f32
    %30 = vector.broadcast %cst_16 : f32 to vector<2x8x8xf32>
    %31 = arith.mulf %29, %30 : vector<2x8x8xf32>
    %cst_17 = arith.constant dense<0xFF800000> : vector<2x8xf32>
    %32 = vector.multi_reduction <maximumf>, %31, %cst_17 [2] : vector<2x8x8xf32> to vector<2x8xf32>
    %33 = vector.shape_cast %32 : vector<2x8xf32> to vector<2x8x1xf32>
    %34 = vector.broadcast %33 : vector<2x8x1xf32> to vector<2x8x8xf32>
    %35 = arith.subf %31, %34 : vector<2x8x8xf32>
    %36 = math.exp %35 : vector<2x8x8xf32>
    %cst_18 = arith.constant dense<0.000000e+00> : vector<2x8xf32>
    %37 = vector.multi_reduction <add>, %36, %cst_18 [2] : vector<2x8x8xf32> to vector<2x8xf32>
    %38 = vector.shape_cast %37 : vector<2x8xf32> to vector<2x8x1xf32>
    %39 = vector.broadcast %38 : vector<2x8x1xf32> to vector<2x8x8xf32>
    %40 = arith.divf %36, %39 : vector<2x8x8xf32>
    %41 = arith.truncf %40 : vector<2x8x8xf32> to vector<2x8x8xbf16>
    "tpu.trace_start"() <{level = 10 : i32, message = "bqk,bkd->bqd"}> : () -> ()
    %cst_19 = arith.constant dense<0.000000e+00> : vector<2x8x16xf32>
    %42 = tpu.matmul %41, %28, %cst_19 {dimension_numbers = #tpu.dot_dimension_numbers<[2], [1], [1], [2], [0, 0, 0, 1, 1, 2], [0], [0]>} : vector<2x8x8xbf16>, vector<2x8x16xbf16>, vector<2x8x16xf32> -> vector<2x8x16xf32>
    "tpu.trace_stop"() : () -> ()
    %43 = vector.extract_strided_slice %18 {offsets = [0, 0, 16], sizes = [2, 8, 16], strides = [1, 1, 1]} : vector<2x8x128xf32> to vector<2x8x16xf32>
    %44 = arith.truncf %43 : vector<2x8x16xf32> to vector<2x8x16xbf16>
    %45 = vector.extract_strided_slice %20 {offsets = [0, 0, 16], sizes = [2, 8, 16], strides = [1, 1, 1]} : vector<2x8x128xf32> to vector<2x8x16xf32>
    %46 = arith.truncf %45 : vector<2x8x16xf32> to vector<2x8x16xbf16>
    %47 = vector.extract_strided_slice %22 {offsets = [0, 0, 16], sizes = [2, 8, 16], strides = [1, 1, 1]} : vector<2x8x128xf32> to vector<2x8x16xf32>
    %48 = arith.truncf %47 : vector<2x8x16xf32> to vector<2x8x16xbf16>
    "tpu.trace_start"() <{level = 10 : i32, message = "bqd,bkd->bqk"}> : () -> ()
    %cst_20 = arith.constant dense<0.000000e+00> : vector<2x8x8xf32>
    %49 = tpu.matmul %44, %46, %cst_20 {dimension_numbers = #tpu.dot_dimension_numbers<[2], [2], [1], [1], [0, 0, 0, 1, 1, 1], [0], [0]>} : vector<2x8x16xbf16>, vector<2x8x16xbf16>, vector<2x8x8xf32> -> vector<2x8x8xf32>
    "tpu.trace_stop"() : () -> ()
    %cst_21 = arith.constant 2.500000e-01 : f32
    %50 = vector.broadcast %cst_21 : f32 to vector<2x8x8xf32>
    %51 = arith.mulf %49, %50 : vector<2x8x8xf32>
    %cst_22 = arith.constant dense<0xFF800000> : vector<2x8xf32>
    %52 = vector.multi_reduction <maximumf>, %51, %cst_22 [2] : vector<2x8x8xf32> to vector<2x8xf32>
    %53 = vector.shape_cast %52 : vector<2x8xf32> to vector<2x8x1xf32>
    %54 = vector.broadcast %53 : vector<2x8x1xf32> to vector<2x8x8xf32>
    %55 = arith.subf %51, %54 : vector<2x8x8xf32>
    %56 = math.exp %55 : vector<2x8x8xf32>
    %cst_23 = arith.constant dense<0.000000e+00> : vector<2x8xf32>
    %57 = vector.multi_reduction <add>, %56, %cst_23 [2] : vector<2x8x8xf32> to vector<2x8xf32>
    %58 = vector.shape_cast %57 : vector<2x8xf32> to vector<2x8x1xf32>
    %59 = vector.broadcast %58 : vector<2x8x1xf32> to vector<2x8x8xf32>
    %60 = arith.divf %56, %59 : vector<2x8x8xf32>
    %61 = arith.truncf %60 : vector<2x8x8xf32> to vector<2x8x8xbf16>
    "tpu.trace_start"() <{level = 10 : i32, message = "bqk,bkd->bqd"}> : () -> ()
    %cst_24 = arith.constant dense<0.000000e+00> : vector<2x8x16xf32>
    %62 = tpu.matmul %61, %48, %cst_24 {dimension_numbers = #tpu.dot_dimension_numbers<[2], [1], [1], [2], [0, 0, 0, 1, 1, 2], [0], [0]>} : vector<2x8x8xbf16>, vector<2x8x16xbf16>, vector<2x8x16xf32> -> vector<2x8x16xf32>
    "tpu.trace_stop"() : () -> ()
    %63 = vector.extract_strided_slice %18 {offsets = [0, 0, 32], sizes = [2, 8, 16], strides = [1, 1, 1]} : vector<2x8x128xf32> to vector<2x8x16xf32>
    %64 = arith.truncf %63 : vector<2x8x16xf32> to vector<2x8x16xbf16>
    %65 = vector.extract_strided_slice %20 {offsets = [0, 0, 32], sizes = [2, 8, 16], strides = [1, 1, 1]} : vector<2x8x128xf32> to vector<2x8x16xf32>
    %66 = arith.truncf %65 : vector<2x8x16xf32> to vector<2x8x16xbf16>
    %67 = vector.extract_strided_slice %22 {offsets = [0, 0, 32], sizes = [2, 8, 16], strides = [1, 1, 1]} : vector<2x8x128xf32> to vector<2x8x16xf32>
    %68 = arith.truncf %67 : vector<2x8x16xf32> to vector<2x8x16xbf16>
    "tpu.trace_start"() <{level = 10 : i32, message = "bqd,bkd->bqk"}> : () -> ()
    %cst_25 = arith.constant dense<0.000000e+00> : vector<2x8x8xf32>
    %69 = tpu.matmul %64, %66, %cst_25 {dimension_numbers = #tpu.dot_dimension_numbers<[2], [2], [1], [1], [0, 0, 0, 1, 1, 1], [0], [0]>} : vector<2x8x16xbf16>, vector<2x8x16xbf16>, vector<2x8x8xf32> -> vector<2x8x8xf32>
    "tpu.trace_stop"() : () -> ()
    %cst_26 = arith.constant 2.500000e-01 : f32
    %70 = vector.broadcast %cst_26 : f32 to vector<2x8x8xf32>
    %71 = arith.mulf %69, %70 : vector<2x8x8xf32>
    %cst_27 = arith.constant dense<0xFF800000> : vector<2x8xf32>
    %72 = vector.multi_reduction <maximumf>, %71, %cst_27 [2] : vector<2x8x8xf32> to vector<2x8xf32>
    %73 = vector.shape_cast %72 : vector<2x8xf32> to vector<2x8x1xf32>
    %74 = vector.broadcast %73 : vector<2x8x1xf32> to vector<2x8x8xf32>
    %75 = arith.subf %71, %74 : vector<2x8x8xf32>
    %76 = math.exp %75 : vector<2x8x8xf32>
    %cst_28 = arith.constant dense<0.000000e+00> : vector<2x8xf32>
    %77 = vector.multi_reduction <add>, %76, %cst_28 [2] : vector<2x8x8xf32> to vector<2x8xf32>
    %78 = vector.shape_cast %77 : vector<2x8xf32> to vector<2x8x1xf32>
    %79 = vector.broadcast %78 : vector<2x8x1xf32> to vector<2x8x8xf32>
    %80 = arith.divf %76, %79 : vector<2x8x8xf32>
    %81 = arith.truncf %80 : vector<2x8x8xf32> to vector<2x8x8xbf16>
    "tpu.trace_start"() <{level = 10 : i32, message = "bqk,bkd->bqd"}> : () -> ()
    %cst_29 = arith.constant dense<0.000000e+00> : vector<2x8x16xf32>
    %82 = tpu.matmul %81, %68, %cst_29 {dimension_numbers = #tpu.dot_dimension_numbers<[2], [1], [1], [2], [0, 0, 0, 1, 1, 2], [0], [0]>} : vector<2x8x8xbf16>, vector<2x8x16xbf16>, vector<2x8x16xf32> -> vector<2x8x16xf32>
    "tpu.trace_stop"() : () -> ()
    %83 = vector.extract_strided_slice %18 {offsets = [0, 0, 48], sizes = [2, 8, 16], strides = [1, 1, 1]} : vector<2x8x128xf32> to vector<2x8x16xf32>
    %84 = arith.truncf %83 : vector<2x8x16xf32> to vector<2x8x16xbf16>
    %85 = vector.extract_strided_slice %20 {offsets = [0, 0, 48], sizes = [2, 8, 16], strides = [1, 1, 1]} : vector<2x8x128xf32> to vector<2x8x16xf32>
    %86 = arith.truncf %85 : vector<2x8x16xf32> to vector<2x8x16xbf16>
    %87 = vector.extract_strided_slice %22 {offsets = [0, 0, 48], sizes = [2, 8, 16], strides = [1, 1, 1]} : vector<2x8x128xf32> to vector<2x8x16xf32>
    %88 = arith.truncf %87 : vector<2x8x16xf32> to vector<2x8x16xbf16>
    "tpu.trace_start"() <{level = 10 : i32, message = "bqd,bkd->bqk"}> : () -> ()
    %cst_30 = arith.constant dense<0.000000e+00> : vector<2x8x8xf32>
    %89 = tpu.matmul %84, %86, %cst_30 {dimension_numbers = #tpu.dot_dimension_numbers<[2], [2], [1], [1], [0, 0, 0, 1, 1, 1], [0], [0]>} : vector<2x8x16xbf16>, vector<2x8x16xbf16>, vector<2x8x8xf32> -> vector<2x8x8xf32>
    "tpu.trace_stop"() : () -> ()
    %cst_31 = arith.constant 2.500000e-01 : f32
    %90 = vector.broadcast %cst_31 : f32 to vector<2x8x8xf32>
    %91 = arith.mulf %89, %90 : vector<2x8x8xf32>
    %cst_32 = arith.constant dense<0xFF800000> : vector<2x8xf32>
    %92 = vector.multi_reduction <maximumf>, %91, %cst_32 [2] : vector<2x8x8xf32> to vector<2x8xf32>
    %93 = vector.shape_cast %92 : vector<2x8xf32> to vector<2x8x1xf32>
    %94 = vector.broadcast %93 : vector<2x8x1xf32> to vector<2x8x8xf32>
    %95 = arith.subf %91, %94 : vector<2x8x8xf32>
    %96 = math.exp %95 : vector<2x8x8xf32>
    %cst_33 = arith.constant dense<0.000000e+00> : vector<2x8xf32>
    %97 = vector.multi_reduction <add>, %96, %cst_33 [2] : vector<2x8x8xf32> to vector<2x8xf32>
    %98 = vector.shape_cast %97 : vector<2x8xf32> to vector<2x8x1xf32>
    %99 = vector.broadcast %98 : vector<2x8x1xf32> to vector<2x8x8xf32>
    %100 = arith.divf %96, %99 : vector<2x8x8xf32>
    %101 = arith.truncf %100 : vector<2x8x8xf32> to vector<2x8x8xbf16>
    "tpu.trace_start"() <{level = 10 : i32, message = "bqk,bkd->bqd"}> : () -> ()
    %cst_34 = arith.constant dense<0.000000e+00> : vector<2x8x16xf32>
    %102 = tpu.matmul %101, %88, %cst_34 {dimension_numbers = #tpu.dot_dimension_numbers<[2], [1], [1], [2], [0, 0, 0, 1, 1, 2], [0], [0]>} : vector<2x8x8xbf16>, vector<2x8x16xbf16>, vector<2x8x16xf32> -> vector<2x8x16xf32>
    "tpu.trace_stop"() : () -> ()
    %103 = vector.extract_strided_slice %18 {offsets = [0, 0, 64], sizes = [2, 8, 16], strides = [1, 1, 1]} : vector<2x8x128xf32> to vector<2x8x16xf32>
    %104 = arith.truncf %103 : vector<2x8x16xf32> to vector<2x8x16xbf16>
    %105 = vector.extract_strided_slice %20 {offsets = [0, 0, 64], sizes = [2, 8, 16], strides = [1, 1, 1]} : vector<2x8x128xf32> to vector<2x8x16xf32>
    %106 = arith.truncf %105 : vector<2x8x16xf32> to vector<2x8x16xbf16>
    %107 = vector.extract_strided_slice %22 {offsets = [0, 0, 64], sizes = [2, 8, 16], strides = [1, 1, 1]} : vector<2x8x128xf32> to vector<2x8x16xf32>
    %108 = arith.truncf %107 : vector<2x8x16xf32> to vector<2x8x16xbf16>
    "tpu.trace_start"() <{level = 10 : i32, message = "bqd,bkd->bqk"}> : () -> ()
    %cst_35 = arith.constant dense<0.000000e+00> : vector<2x8x8xf32>
    %109 = tpu.matmul %104, %106, %cst_35 {dimension_numbers = #tpu.dot_dimension_numbers<[2], [2], [1], [1], [0, 0, 0, 1, 1, 1], [0], [0]>} : vector<2x8x16xbf16>, vector<2x8x16xbf16>, vector<2x8x8xf32> -> vector<2x8x8xf32>
    "tpu.trace_stop"() : () -> ()
    %cst_36 = arith.constant 2.500000e-01 : f32
    %110 = vector.broadcast %cst_36 : f32 to vector<2x8x8xf32>
    %111 = arith.mulf %109, %110 : vector<2x8x8xf32>
    %cst_37 = arith.constant dense<0xFF800000> : vector<2x8xf32>
    %112 = vector.multi_reduction <maximumf>, %111, %cst_37 [2] : vector<2x8x8xf32> to vector<2x8xf32>
    %113 = vector.shape_cast %112 : vector<2x8xf32> to vector<2x8x1xf32>
    %114 = vector.broadcast %113 : vector<2x8x1xf32> to vector<2x8x8xf32>
    %115 = arith.subf %111, %114 : vector<2x8x8xf32>
    %116 = math.exp %115 : vector<2x8x8xf32>
    %cst_38 = arith.constant dense<0.000000e+00> : vector<2x8xf32>
    %117 = vector.multi_reduction <add>, %116, %cst_38 [2] : vector<2x8x8xf32> to vector<2x8xf32>
    %118 = vector.shape_cast %117 : vector<2x8xf32> to vector<2x8x1xf32>
    %119 = vector.broadcast %118 : vector<2x8x1xf32> to vector<2x8x8xf32>
    %120 = arith.divf %116, %119 : vector<2x8x8xf32>
    %121 = arith.truncf %120 : vector<2x8x8xf32> to vector<2x8x8xbf16>
    "tpu.trace_start"() <{level = 10 : i32, message = "bqk,bkd->bqd"}> : () -> ()
    %cst_39 = arith.constant dense<0.000000e+00> : vector<2x8x16xf32>
    %122 = tpu.matmul %121, %108, %cst_39 {dimension_numbers = #tpu.dot_dimension_numbers<[2], [1], [1], [2], [0, 0, 0, 1, 1, 2], [0], [0]>} : vector<2x8x8xbf16>, vector<2x8x16xbf16>, vector<2x8x16xf32> -> vector<2x8x16xf32>
    "tpu.trace_stop"() : () -> ()
    %123 = vector.extract_strided_slice %18 {offsets = [0, 0, 80], sizes = [2, 8, 16], strides = [1, 1, 1]} : vector<2x8x128xf32> to vector<2x8x16xf32>
    %124 = arith.truncf %123 : vector<2x8x16xf32> to vector<2x8x16xbf16>
    %125 = vector.extract_strided_slice %20 {offsets = [0, 0, 80], sizes = [2, 8, 16], strides = [1, 1, 1]} : vector<2x8x128xf32> to vector<2x8x16xf32>
    %126 = arith.truncf %125 : vector<2x8x16xf32> to vector<2x8x16xbf16>
    %127 = vector.extract_strided_slice %22 {offsets = [0, 0, 80], sizes = [2, 8, 16], strides = [1, 1, 1]} : vector<2x8x128xf32> to vector<2x8x16xf32>
    %128 = arith.truncf %127 : vector<2x8x16xf32> to vector<2x8x16xbf16>
    "tpu.trace_start"() <{level = 10 : i32, message = "bqd,bkd->bqk"}> : () -> ()
    %cst_40 = arith.constant dense<0.000000e+00> : vector<2x8x8xf32>
    %129 = tpu.matmul %124, %126, %cst_40 {dimension_numbers = #tpu.dot_dimension_numbers<[2], [2], [1], [1], [0, 0, 0, 1, 1, 1], [0], [0]>} : vector<2x8x16xbf16>, vector<2x8x16xbf16>, vector<2x8x8xf32> -> vector<2x8x8xf32>
    "tpu.trace_stop"() : () -> ()
    %cst_41 = arith.constant 2.500000e-01 : f32
    %130 = vector.broadcast %cst_41 : f32 to vector<2x8x8xf32>
    %131 = arith.mulf %129, %130 : vector<2x8x8xf32>
    %cst_42 = arith.constant dense<0xFF800000> : vector<2x8xf32>
    %132 = vector.multi_reduction <maximumf>, %131, %cst_42 [2] : vector<2x8x8xf32> to vector<2x8xf32>
    %133 = vector.shape_cast %132 : vector<2x8xf32> to vector<2x8x1xf32>
    %134 = vector.broadcast %133 : vector<2x8x1xf32> to vector<2x8x8xf32>
    %135 = arith.subf %131, %134 : vector<2x8x8xf32>
    %136 = math.exp %135 : vector<2x8x8xf32>
    %cst_43 = arith.constant dense<0.000000e+00> : vector<2x8xf32>
    %137 = vector.multi_reduction <add>, %136, %cst_43 [2] : vector<2x8x8xf32> to vector<2x8xf32>
    %138 = vector.shape_cast %137 : vector<2x8xf32> to vector<2x8x1xf32>
    %139 = vector.broadcast %138 : vector<2x8x1xf32> to vector<2x8x8xf32>
    %140 = arith.divf %136, %139 : vector<2x8x8xf32>
    %141 = arith.truncf %140 : vector<2x8x8xf32> to vector<2x8x8xbf16>
    "tpu.trace_start"() <{level = 10 : i32, message = "bqk,bkd->bqd"}> : () -> ()
    %cst_44 = arith.constant dense<0.000000e+00> : vector<2x8x16xf32>
    %142 = tpu.matmul %141, %128, %cst_44 {dimension_numbers = #tpu.dot_dimension_numbers<[2], [1], [1], [2], [0, 0, 0, 1, 1, 2], [0], [0]>} : vector<2x8x8xbf16>, vector<2x8x16xbf16>, vector<2x8x16xf32> -> vector<2x8x16xf32>
    "tpu.trace_stop"() : () -> ()
    %143 = vector.extract_strided_slice %18 {offsets = [0, 0, 96], sizes = [2, 8, 16], strides = [1, 1, 1]} : vector<2x8x128xf32> to vector<2x8x16xf32>
    %144 = arith.truncf %143 : vector<2x8x16xf32> to vector<2x8x16xbf16>
    %145 = vector.extract_strided_slice %20 {offsets = [0, 0, 96], sizes = [2, 8, 16], strides = [1, 1, 1]} : vector<2x8x128xf32> to vector<2x8x16xf32>
    %146 = arith.truncf %145 : vector<2x8x16xf32> to vector<2x8x16xbf16>
    %147 = vector.extract_strided_slice %22 {offsets = [0, 0, 96], sizes = [2, 8, 16], strides = [1, 1, 1]} : vector<2x8x128xf32> to vector<2x8x16xf32>
    %148 = arith.truncf %147 : vector<2x8x16xf32> to vector<2x8x16xbf16>
    "tpu.trace_start"() <{level = 10 : i32, message = "bqd,bkd->bqk"}> : () -> ()
    %cst_45 = arith.constant dense<0.000000e+00> : vector<2x8x8xf32>
    %149 = tpu.matmul %144, %146, %cst_45 {dimension_numbers = #tpu.dot_dimension_numbers<[2], [2], [1], [1], [0, 0, 0, 1, 1, 1], [0], [0]>} : vector<2x8x16xbf16>, vector<2x8x16xbf16>, vector<2x8x8xf32> -> vector<2x8x8xf32>
    "tpu.trace_stop"() : () -> ()
    %cst_46 = arith.constant 2.500000e-01 : f32
    %150 = vector.broadcast %cst_46 : f32 to vector<2x8x8xf32>
    %151 = arith.mulf %149, %150 : vector<2x8x8xf32>
    %cst_47 = arith.constant dense<0xFF800000> : vector<2x8xf32>
    %152 = vector.multi_reduction <maximumf>, %151, %cst_47 [2] : vector<2x8x8xf32> to vector<2x8xf32>
    %153 = vector.shape_cast %152 : vector<2x8xf32> to vector<2x8x1xf32>
    %154 = vector.broadcast %153 : vector<2x8x1xf32> to vector<2x8x8xf32>
    %155 = arith.subf %151, %154 : vector<2x8x8xf32>
    %156 = math.exp %155 : vector<2x8x8xf32>
    %cst_48 = arith.constant dense<0.000000e+00> : vector<2x8xf32>
    %157 = vector.multi_reduction <add>, %156, %cst_48 [2] : vector<2x8x8xf32> to vector<2x8xf32>
    %158 = vector.shape_cast %157 : vector<2x8xf32> to vector<2x8x1xf32>
    %159 = vector.broadcast %158 : vector<2x8x1xf32> to vector<2x8x8xf32>
    %160 = arith.divf %156, %159 : vector<2x8x8xf32>
    %161 = arith.truncf %160 : vector<2x8x8xf32> to vector<2x8x8xbf16>
    "tpu.trace_start"() <{level = 10 : i32, message = "bqk,bkd->bqd"}> : () -> ()
    %cst_49 = arith.constant dense<0.000000e+00> : vector<2x8x16xf32>
    %162 = tpu.matmul %161, %148, %cst_49 {dimension_numbers = #tpu.dot_dimension_numbers<[2], [1], [1], [2], [0, 0, 0, 1, 1, 2], [0], [0]>} : vector<2x8x8xbf16>, vector<2x8x16xbf16>, vector<2x8x16xf32> -> vector<2x8x16xf32>
    "tpu.trace_stop"() : () -> ()
    %163 = vector.extract_strided_slice %18 {offsets = [0, 0, 112], sizes = [2, 8, 16], strides = [1, 1, 1]} : vector<2x8x128xf32> to vector<2x8x16xf32>
    %164 = arith.truncf %163 : vector<2x8x16xf32> to vector<2x8x16xbf16>
    %165 = vector.extract_strided_slice %20 {offsets = [0, 0, 112], sizes = [2, 8, 16], strides = [1, 1, 1]} : vector<2x8x128xf32> to vector<2x8x16xf32>
    %166 = arith.truncf %165 : vector<2x8x16xf32> to vector<2x8x16xbf16>
    %167 = vector.extract_strided_slice %22 {offsets = [0, 0, 112], sizes = [2, 8, 16], strides = [1, 1, 1]} : vector<2x8x128xf32> to vector<2x8x16xf32>
    %168 = arith.truncf %167 : vector<2x8x16xf32> to vector<2x8x16xbf16>
    "tpu.trace_start"() <{level = 10 : i32, message = "bqd,bkd->bqk"}> : () -> ()
    %cst_50 = arith.constant dense<0.000000e+00> : vector<2x8x8xf32>
    %169 = tpu.matmul %164, %166, %cst_50 {dimension_numbers = #tpu.dot_dimension_numbers<[2], [2], [1], [1], [0, 0, 0, 1, 1, 1], [0], [0]>} : vector<2x8x16xbf16>, vector<2x8x16xbf16>, vector<2x8x8xf32> -> vector<2x8x8xf32>
    "tpu.trace_stop"() : () -> ()
    %cst_51 = arith.constant 2.500000e-01 : f32
    %170 = vector.broadcast %cst_51 : f32 to vector<2x8x8xf32>
    %171 = arith.mulf %169, %170 : vector<2x8x8xf32>
    %cst_52 = arith.constant dense<0xFF800000> : vector<2x8xf32>
    %172 = vector.multi_reduction <maximumf>, %171, %cst_52 [2] : vector<2x8x8xf32> to vector<2x8xf32>
    %173 = vector.shape_cast %172 : vector<2x8xf32> to vector<2x8x1xf32>
    %174 = vector.broadcast %173 : vector<2x8x1xf32> to vector<2x8x8xf32>
    %175 = arith.subf %171, %174 : vector<2x8x8xf32>
    %176 = math.exp %175 : vector<2x8x8xf32>
    %cst_53 = arith.constant dense<0.000000e+00> : vector<2x8xf32>
    %177 = vector.multi_reduction <add>, %176, %cst_53 [2] : vector<2x8x8xf32> to vector<2x8xf32>
    %178 = vector.shape_cast %177 : vector<2x8xf32> to vector<2x8x1xf32>
    %179 = vector.broadcast %178 : vector<2x8x1xf32> to vector<2x8x8xf32>
    %180 = arith.divf %176, %179 : vector<2x8x8xf32>
    %181 = arith.truncf %180 : vector<2x8x8xf32> to vector<2x8x8xbf16>
    "tpu.trace_start"() <{level = 10 : i32, message = "bqk,bkd->bqd"}> : () -> ()
    %cst_54 = arith.constant dense<0.000000e+00> : vector<2x8x16xf32>
    %182 = tpu.matmul %181, %168, %cst_54 {dimension_numbers = #tpu.dot_dimension_numbers<[2], [1], [1], [2], [0, 0, 0, 1, 1, 2], [0], [0]>} : vector<2x8x8xbf16>, vector<2x8x16xbf16>, vector<2x8x16xf32> -> vector<2x8x16xf32>
    "tpu.trace_stop"() : () -> ()
    %183 = tpu.concatenate %42, %62, %82, %102, %122, %142, %162, %182 in 2 : vector<2x8x16xf32>, vector<2x8x16xf32>, vector<2x8x16xf32>, vector<2x8x16xf32>, vector<2x8x16xf32>, vector<2x8x16xf32>, vector<2x8x16xf32>, vector<2x8x16xf32> -> vector<2x8x128xf32>
    %184 = vector.shape_cast %183 : vector<2x8x128xf32> to vector<16x128xf32>
    %185 = arith.truncf %184 : vector<16x128xf32> to vector<16x128xbf16>
    %c0_55 = arith.constant 0 : index
    %c0_56 = arith.constant 0 : index
    %c0_57 = arith.constant 0 : index
    %186 = vector.load %arg7[%c0_55, %c0_56, %c0_57] : memref<2x128x128xbf16, #tpu.memory_space<vmem>>, vector<1x128x128xbf16>
    %187 = vector.shape_cast %186 : vector<1x128x128xbf16> to vector<128x128xbf16>
    %cst_58 = arith.constant dense<0.000000e+00> : vector<16x128xf32>
    %188 = tpu.matmul %185, %187, %cst_58 {dimension_numbers = #tpu.dot_dimension_numbers<[1], [0], [0], [1], [0, 0, 1, 1], [], []>} : vector<16x128xbf16>, vector<128x128xbf16>, vector<16x128xf32> -> vector<16x128xf32>
    %c0_59 = arith.constant 0 : index
    %c0_60 = arith.constant 0 : index
    %c0_61 = arith.constant 0 : index
    %189 = vector.load %arg8[%c0_59, %c0_60, %c0_61] : memref<2x1x128xf32, #tpu.memory_space<vmem>>, vector<1x1x128xf32>
    %190 = vector.shape_cast %189 : vector<1x1x128xf32> to vector<1x128xf32>
    %191 = vector.broadcast %190 : vector<1x128xf32> to vector<16x128xf32>
    %192 = arith.addf %188, %191 : vector<16x128xf32>
    %193 = arith.addf %8, %192 : vector<16x128xf32>
    %c0_62 = arith.constant 0 : index
    %c0_63 = arith.constant 0 : index
    %c0_64 = arith.constant 0 : index
    %194 = vector.load %arg13[%c0_62, %c0_63, %c0_64] : memref<2x1x128xf32, #tpu.memory_space<vmem>>, vector<1x1x128xf32>
    %195 = vector.shape_cast %194 : vector<1x1x128xf32> to vector<1x128xf32>
    %c0_65 = arith.constant 0 : index
    %c0_66 = arith.constant 0 : index
    %c0_67 = arith.constant 0 : index
    %196 = vector.load %arg14[%c0_65, %c0_66, %c0_67] : memref<2x1x128xf32, #tpu.memory_space<vmem>>, vector<1x1x128xf32>
    %197 = vector.shape_cast %196 : vector<1x1x128xf32> to vector<1x128xf32>
    %cst_68 = arith.constant dense<0.000000e+00> : vector<16xf32>
    %198 = vector.multi_reduction <add>, %193, %cst_68 [1] : vector<16x128xf32> to vector<16xf32>
    %199 = vector.shape_cast %198 : vector<16xf32> to vector<16x1xf32>
    %cst_69 = arith.constant 1.280000e+02 : f32
    %200 = vector.broadcast %cst_69 : f32 to vector<16x1xf32>
    %201 = arith.divf %199, %200 : vector<16x1xf32>
    %202 = vector.broadcast %201 : vector<16x1xf32> to vector<16x128xf32>
    %203 = arith.subf %193, %202 : vector<16x128xf32>
    %204 = arith.mulf %203, %203 : vector<16x128xf32>
    %cst_70 = arith.constant dense<0.000000e+00> : vector<16xf32>
    %205 = vector.multi_reduction <add>, %204, %cst_70 [1] : vector<16x128xf32> to vector<16xf32>
    %206 = vector.shape_cast %205 : vector<16xf32> to vector<16x1xf32>
    %cst_71 = arith.constant 1.280000e+02 : f32
    %207 = vector.broadcast %cst_71 : f32 to vector<16x1xf32>
    %208 = arith.divf %206, %207 : vector<16x1xf32>
    %cst_72 = arith.constant 9.99999974E-6 : f32
    %209 = vector.broadcast %cst_72 : f32 to vector<16x1xf32>
    %210 = arith.addf %208, %209 : vector<16x1xf32>
    %211 = math.rsqrt %210 : vector<16x1xf32>
    %212 = vector.broadcast %211 : vector<16x1xf32> to vector<16x128xf32>
    %213 = arith.mulf %203, %212 : vector<16x128xf32>
    %214 = vector.broadcast %195 : vector<1x128xf32> to vector<16x128xf32>
    %215 = arith.mulf %213, %214 : vector<16x128xf32>
    %216 = vector.broadcast %197 : vector<1x128xf32> to vector<16x128xf32>
    %217 = arith.addf %215, %216 : vector<16x128xf32>
    %218 = arith.truncf %217 : vector<16x128xf32> to vector<16x128xbf16>
    %c0_73 = arith.constant 0 : index
    %c0_74 = arith.constant 0 : index
    %c0_75 = arith.constant 0 : index
    %219 = vector.load %arg9[%c0_73, %c0_74, %c0_75] : memref<2x128x256xbf16, #tpu.memory_space<vmem>>, vector<1x128x256xbf16>
    %220 = vector.shape_cast %219 : vector<1x128x256xbf16> to vector<128x256xbf16>
    %cst_76 = arith.constant dense<0.000000e+00> : vector<16x256xf32>
    %221 = tpu.matmul %218, %220, %cst_76 {dimension_numbers = #tpu.dot_dimension_numbers<[1], [0], [0], [1], [0, 0, 1, 1], [], []>} : vector<16x128xbf16>, vector<128x256xbf16>, vector<16x256xf32> -> vector<16x256xf32>
    %c0_77 = arith.constant 0 : index
    %c0_78 = arith.constant 0 : index
    %c0_79 = arith.constant 0 : index
    %222 = vector.load %arg10[%c0_77, %c0_78, %c0_79] : memref<2x1x256xf32, #tpu.memory_space<vmem>>, vector<1x1x256xf32>
    %223 = vector.shape_cast %222 : vector<1x1x256xf32> to vector<1x256xf32>
    %224 = vector.broadcast %223 : vector<1x256xf32> to vector<16x256xf32>
    %225 = arith.addf %221, %224 : vector<16x256xf32>
    %cst_80 = arith.constant 0.000000e+00 : f32
    %226 = vector.broadcast %cst_80 : f32 to vector<16x256xf32>
    %227 = arith.maximumf %225, %226 : vector<16x256xf32>
    %228 = arith.truncf %227 : vector<16x256xf32> to vector<16x256xbf16>
    %c0_81 = arith.constant 0 : index
    %c0_82 = arith.constant 0 : index
    %c0_83 = arith.constant 0 : index
    %229 = vector.load %arg11[%c0_81, %c0_82, %c0_83] : memref<2x256x128xbf16, #tpu.memory_space<vmem>>, vector<1x256x128xbf16>
    %230 = vector.shape_cast %229 : vector<1x256x128xbf16> to vector<256x128xbf16>
    %cst_84 = arith.constant dense<0.000000e+00> : vector<16x128xf32>
    %231 = tpu.matmul %228, %230, %cst_84 {dimension_numbers = #tpu.dot_dimension_numbers<[1], [0], [0], [1], [0, 0, 1, 1], [], []>} : vector<16x256xbf16>, vector<256x128xbf16>, vector<16x128xf32> -> vector<16x128xf32>
    %c0_85 = arith.constant 0 : index
    %c0_86 = arith.constant 0 : index
    %c0_87 = arith.constant 0 : index
    %232 = vector.load %arg12[%c0_85, %c0_86, %c0_87] : memref<2x1x128xf32, #tpu.memory_space<vmem>>, vector<1x1x128xf32>
    %233 = vector.shape_cast %232 : vector<1x1x128xf32> to vector<1x128xf32>
    %234 = vector.broadcast %233 : vector<1x128xf32> to vector<16x128xf32>
    %235 = arith.addf %231, %234 : vector<16x128xf32>
    %236 = arith.addf %217, %235 : vector<16x128xf32>
    %c0_88 = arith.constant 0 : index
    %c0_89 = arith.constant 0 : index
    %c0_90 = arith.constant 0 : index
    %237 = vector.load %arg15[%c0_88, %c0_89, %c0_90] : memref<2x1x128xf32, #tpu.memory_space<vmem>>, vector<1x1x128xf32>
    %238 = vector.shape_cast %237 : vector<1x1x128xf32> to vector<1x128xf32>
    %c0_91 = arith.constant 0 : index
    %c0_92 = arith.constant 0 : index
    %c0_93 = arith.constant 0 : index
    %239 = vector.load %arg16[%c0_91, %c0_92, %c0_93] : memref<2x1x128xf32, #tpu.memory_space<vmem>>, vector<1x1x128xf32>
    %240 = vector.shape_cast %239 : vector<1x1x128xf32> to vector<1x128xf32>
    %cst_94 = arith.constant dense<0.000000e+00> : vector<16xf32>
    %241 = vector.multi_reduction <add>, %236, %cst_94 [1] : vector<16x128xf32> to vector<16xf32>
    %242 = vector.shape_cast %241 : vector<16xf32> to vector<16x1xf32>
    %cst_95 = arith.constant 1.280000e+02 : f32
    %243 = vector.broadcast %cst_95 : f32 to vector<16x1xf32>
    %244 = arith.divf %242, %243 : vector<16x1xf32>
    %245 = vector.broadcast %244 : vector<16x1xf32> to vector<16x128xf32>
    %246 = arith.subf %236, %245 : vector<16x128xf32>
    %247 = arith.mulf %246, %246 : vector<16x128xf32>
    %cst_96 = arith.constant dense<0.000000e+00> : vector<16xf32>
    %248 = vector.multi_reduction <add>, %247, %cst_96 [1] : vector<16x128xf32> to vector<16xf32>
    %249 = vector.shape_cast %248 : vector<16xf32> to vector<16x1xf32>
    %cst_97 = arith.constant 1.280000e+02 : f32
    %250 = vector.broadcast %cst_97 : f32 to vector<16x1xf32>
    %251 = arith.divf %249, %250 : vector<16x1xf32>
    %cst_98 = arith.constant 9.99999974E-6 : f32
    %252 = vector.broadcast %cst_98 : f32 to vector<16x1xf32>
    %253 = arith.addf %251, %252 : vector<16x1xf32>
    %254 = math.rsqrt %253 : vector<16x1xf32>
    %255 = vector.broadcast %254 : vector<16x1xf32> to vector<16x128xf32>
    %256 = arith.mulf %246, %255 : vector<16x128xf32>
    %257 = vector.broadcast %238 : vector<1x128xf32> to vector<16x128xf32>
    %258 = arith.mulf %256, %257 : vector<16x128xf32>
    %259 = vector.broadcast %240 : vector<1x128xf32> to vector<16x128xf32>
    %260 = arith.addf %258, %259 : vector<16x128xf32>
    %261 = arith.truncf %260 : vector<16x128xf32> to vector<16x128xbf16>
    %c1 = arith.constant 1 : index
    %c0_99 = arith.constant 0 : index
    %c0_100 = arith.constant 0 : index
    %262 = vector.load %arg5[%c1, %c0_99, %c0_100] : memref<2x128x384xbf16, #tpu.memory_space<vmem>>, vector<1x128x384xbf16>
    %263 = vector.shape_cast %262 : vector<1x128x384xbf16> to vector<128x384xbf16>
    %cst_101 = arith.constant dense<0.000000e+00> : vector<16x384xf32>
    %264 = tpu.matmul %261, %263, %cst_101 {dimension_numbers = #tpu.dot_dimension_numbers<[1], [0], [0], [1], [0, 0, 1, 1], [], []>} : vector<16x128xbf16>, vector<128x384xbf16>, vector<16x384xf32> -> vector<16x384xf32>
    %c1_102 = arith.constant 1 : index
    %c0_103 = arith.constant 0 : index
    %c0_104 = arith.constant 0 : index
    %265 = vector.load %arg6[%c1_102, %c0_103, %c0_104] : memref<2x1x384xf32, #tpu.memory_space<vmem>>, vector<1x1x384xf32>
    %266 = vector.shape_cast %265 : vector<1x1x384xf32> to vector<1x384xf32>
    %267 = vector.broadcast %266 : vector<1x384xf32> to vector<16x384xf32>
    %268 = arith.addf %264, %267 : vector<16x384xf32>
    %269 = vector.extract_strided_slice %268 {offsets = [0, 0], sizes = [16, 128], strides = [1, 1]} : vector<16x384xf32> to vector<16x128xf32>
    %270 = vector.shape_cast %269 : vector<16x128xf32> to vector<2x8x128xf32>
    %271 = vector.extract_strided_slice %268 {offsets = [0, 128], sizes = [16, 128], strides = [1, 1]} : vector<16x384xf32> to vector<16x128xf32>
    %272 = vector.shape_cast %271 : vector<16x128xf32> to vector<2x8x128xf32>
    %273 = vector.extract_strided_slice %268 {offsets = [0, 256], sizes = [16, 128], strides = [1, 1]} : vector<16x384xf32> to vector<16x128xf32>
    %274 = vector.shape_cast %273 : vector<16x128xf32> to vector<2x8x128xf32>
    %275 = vector.extract_strided_slice %270 {offsets = [0, 0, 0], sizes = [2, 8, 16], strides = [1, 1, 1]} : vector<2x8x128xf32> to vector<2x8x16xf32>
    %276 = arith.truncf %275 : vector<2x8x16xf32> to vector<2x8x16xbf16>
    %277 = vector.extract_strided_slice %272 {offsets = [0, 0, 0], sizes = [2, 8, 16], strides = [1, 1, 1]} : vector<2x8x128xf32> to vector<2x8x16xf32>
    %278 = arith.truncf %277 : vector<2x8x16xf32> to vector<2x8x16xbf16>
    %279 = vector.extract_strided_slice %274 {offsets = [0, 0, 0], sizes = [2, 8, 16], strides = [1, 1, 1]} : vector<2x8x128xf32> to vector<2x8x16xf32>
    %280 = arith.truncf %279 : vector<2x8x16xf32> to vector<2x8x16xbf16>
    "tpu.trace_start"() <{level = 10 : i32, message = "bqd,bkd->bqk"}> : () -> ()
    %cst_105 = arith.constant dense<0.000000e+00> : vector<2x8x8xf32>
    %281 = tpu.matmul %276, %278, %cst_105 {dimension_numbers = #tpu.dot_dimension_numbers<[2], [2], [1], [1], [0, 0, 0, 1, 1, 1], [0], [0]>} : vector<2x8x16xbf16>, vector<2x8x16xbf16>, vector<2x8x8xf32> -> vector<2x8x8xf32>
    "tpu.trace_stop"() : () -> ()
    %cst_106 = arith.constant 2.500000e-01 : f32
    %282 = vector.broadcast %cst_106 : f32 to vector<2x8x8xf32>
    %283 = arith.mulf %281, %282 : vector<2x8x8xf32>
    %cst_107 = arith.constant dense<0xFF800000> : vector<2x8xf32>
    %284 = vector.multi_reduction <maximumf>, %283, %cst_107 [2] : vector<2x8x8xf32> to vector<2x8xf32>
    %285 = vector.shape_cast %284 : vector<2x8xf32> to vector<2x8x1xf32>
    %286 = vector.broadcast %285 : vector<2x8x1xf32> to vector<2x8x8xf32>
    %287 = arith.subf %283, %286 : vector<2x8x8xf32>
    %288 = math.exp %287 : vector<2x8x8xf32>
    %cst_108 = arith.constant dense<0.000000e+00> : vector<2x8xf32>
    %289 = vector.multi_reduction <add>, %288, %cst_108 [2] : vector<2x8x8xf32> to vector<2x8xf32>
    %290 = vector.shape_cast %289 : vector<2x8xf32> to vector<2x8x1xf32>
    %291 = vector.broadcast %290 : vector<2x8x1xf32> to vector<2x8x8xf32>
    %292 = arith.divf %288, %291 : vector<2x8x8xf32>
    %293 = arith.truncf %292 : vector<2x8x8xf32> to vector<2x8x8xbf16>
    "tpu.trace_start"() <{level = 10 : i32, message = "bqk,bkd->bqd"}> : () -> ()
    %cst_109 = arith.constant dense<0.000000e+00> : vector<2x8x16xf32>
    %294 = tpu.matmul %293, %280, %cst_109 {dimension_numbers = #tpu.dot_dimension_numbers<[2], [1], [1], [2], [0, 0, 0, 1, 1, 2], [0], [0]>} : vector<2x8x8xbf16>, vector<2x8x16xbf16>, vector<2x8x16xf32> -> vector<2x8x16xf32>
    "tpu.trace_stop"() : () -> ()
    %295 = vector.extract_strided_slice %270 {offsets = [0, 0, 16], sizes = [2, 8, 16], strides = [1, 1, 1]} : vector<2x8x128xf32> to vector<2x8x16xf32>
    %296 = arith.truncf %295 : vector<2x8x16xf32> to vector<2x8x16xbf16>
    %297 = vector.extract_strided_slice %272 {offsets = [0, 0, 16], sizes = [2, 8, 16], strides = [1, 1, 1]} : vector<2x8x128xf32> to vector<2x8x16xf32>
    %298 = arith.truncf %297 : vector<2x8x16xf32> to vector<2x8x16xbf16>
    %299 = vector.extract_strided_slice %274 {offsets = [0, 0, 16], sizes = [2, 8, 16], strides = [1, 1, 1]} : vector<2x8x128xf32> to vector<2x8x16xf32>
    %300 = arith.truncf %299 : vector<2x8x16xf32> to vector<2x8x16xbf16>
    "tpu.trace_start"() <{level = 10 : i32, message = "bqd,bkd->bqk"}> : () -> ()
    %cst_110 = arith.constant dense<0.000000e+00> : vector<2x8x8xf32>
    %301 = tpu.matmul %296, %298, %cst_110 {dimension_numbers = #tpu.dot_dimension_numbers<[2], [2], [1], [1], [0, 0, 0, 1, 1, 1], [0], [0]>} : vector<2x8x16xbf16>, vector<2x8x16xbf16>, vector<2x8x8xf32> -> vector<2x8x8xf32>
    "tpu.trace_stop"() : () -> ()
    %cst_111 = arith.constant 2.500000e-01 : f32
    %302 = vector.broadcast %cst_111 : f32 to vector<2x8x8xf32>
    %303 = arith.mulf %301, %302 : vector<2x8x8xf32>
    %cst_112 = arith.constant dense<0xFF800000> : vector<2x8xf32>
    %304 = vector.multi_reduction <maximumf>, %303, %cst_112 [2] : vector<2x8x8xf32> to vector<2x8xf32>
    %305 = vector.shape_cast %304 : vector<2x8xf32> to vector<2x8x1xf32>
    %306 = vector.broadcast %305 : vector<2x8x1xf32> to vector<2x8x8xf32>
    %307 = arith.subf %303, %306 : vector<2x8x8xf32>
    %308 = math.exp %307 : vector<2x8x8xf32>
    %cst_113 = arith.constant dense<0.000000e+00> : vector<2x8xf32>
    %309 = vector.multi_reduction <add>, %308, %cst_113 [2] : vector<2x8x8xf32> to vector<2x8xf32>
    %310 = vector.shape_cast %309 : vector<2x8xf32> to vector<2x8x1xf32>
    %311 = vector.broadcast %310 : vector<2x8x1xf32> to vector<2x8x8xf32>
    %312 = arith.divf %308, %311 : vector<2x8x8xf32>
    %313 = arith.truncf %312 : vector<2x8x8xf32> to vector<2x8x8xbf16>
    "tpu.trace_start"() <{level = 10 : i32, message = "bqk,bkd->bqd"}> : () -> ()
    %cst_114 = arith.constant dense<0.000000e+00> : vector<2x8x16xf32>
    %314 = tpu.matmul %313, %300, %cst_114 {dimension_numbers = #tpu.dot_dimension_numbers<[2], [1], [1], [2], [0, 0, 0, 1, 1, 2], [0], [0]>} : vector<2x8x8xbf16>, vector<2x8x16xbf16>, vector<2x8x16xf32> -> vector<2x8x16xf32>
    "tpu.trace_stop"() : () -> ()
    %315 = vector.extract_strided_slice %270 {offsets = [0, 0, 32], sizes = [2, 8, 16], strides = [1, 1, 1]} : vector<2x8x128xf32> to vector<2x8x16xf32>
    %316 = arith.truncf %315 : vector<2x8x16xf32> to vector<2x8x16xbf16>
    %317 = vector.extract_strided_slice %272 {offsets = [0, 0, 32], sizes = [2, 8, 16], strides = [1, 1, 1]} : vector<2x8x128xf32> to vector<2x8x16xf32>
    %318 = arith.truncf %317 : vector<2x8x16xf32> to vector<2x8x16xbf16>
    %319 = vector.extract_strided_slice %274 {offsets = [0, 0, 32], sizes = [2, 8, 16], strides = [1, 1, 1]} : vector<2x8x128xf32> to vector<2x8x16xf32>
    %320 = arith.truncf %319 : vector<2x8x16xf32> to vector<2x8x16xbf16>
    "tpu.trace_start"() <{level = 10 : i32, message = "bqd,bkd->bqk"}> : () -> ()
    %cst_115 = arith.constant dense<0.000000e+00> : vector<2x8x8xf32>
    %321 = tpu.matmul %316, %318, %cst_115 {dimension_numbers = #tpu.dot_dimension_numbers<[2], [2], [1], [1], [0, 0, 0, 1, 1, 1], [0], [0]>} : vector<2x8x16xbf16>, vector<2x8x16xbf16>, vector<2x8x8xf32> -> vector<2x8x8xf32>
    "tpu.trace_stop"() : () -> ()
    %cst_116 = arith.constant 2.500000e-01 : f32
    %322 = vector.broadcast %cst_116 : f32 to vector<2x8x8xf32>
    %323 = arith.mulf %321, %322 : vector<2x8x8xf32>
    %cst_117 = arith.constant dense<0xFF800000> : vector<2x8xf32>
    %324 = vector.multi_reduction <maximumf>, %323, %cst_117 [2] : vector<2x8x8xf32> to vector<2x8xf32>
    %325 = vector.shape_cast %324 : vector<2x8xf32> to vector<2x8x1xf32>
    %326 = vector.broadcast %325 : vector<2x8x1xf32> to vector<2x8x8xf32>
    %327 = arith.subf %323, %326 : vector<2x8x8xf32>
    %328 = math.exp %327 : vector<2x8x8xf32>
    %cst_118 = arith.constant dense<0.000000e+00> : vector<2x8xf32>
    %329 = vector.multi_reduction <add>, %328, %cst_118 [2] : vector<2x8x8xf32> to vector<2x8xf32>
    %330 = vector.shape_cast %329 : vector<2x8xf32> to vector<2x8x1xf32>
    %331 = vector.broadcast %330 : vector<2x8x1xf32> to vector<2x8x8xf32>
    %332 = arith.divf %328, %331 : vector<2x8x8xf32>
    %333 = arith.truncf %332 : vector<2x8x8xf32> to vector<2x8x8xbf16>
    "tpu.trace_start"() <{level = 10 : i32, message = "bqk,bkd->bqd"}> : () -> ()
    %cst_119 = arith.constant dense<0.000000e+00> : vector<2x8x16xf32>
    %334 = tpu.matmul %333, %320, %cst_119 {dimension_numbers = #tpu.dot_dimension_numbers<[2], [1], [1], [2], [0, 0, 0, 1, 1, 2], [0], [0]>} : vector<2x8x8xbf16>, vector<2x8x16xbf16>, vector<2x8x16xf32> -> vector<2x8x16xf32>
    "tpu.trace_stop"() : () -> ()
    %335 = vector.extract_strided_slice %270 {offsets = [0, 0, 48], sizes = [2, 8, 16], strides = [1, 1, 1]} : vector<2x8x128xf32> to vector<2x8x16xf32>
    %336 = arith.truncf %335 : vector<2x8x16xf32> to vector<2x8x16xbf16>
    %337 = vector.extract_strided_slice %272 {offsets = [0, 0, 48], sizes = [2, 8, 16], strides = [1, 1, 1]} : vector<2x8x128xf32> to vector<2x8x16xf32>
    %338 = arith.truncf %337 : vector<2x8x16xf32> to vector<2x8x16xbf16>
    %339 = vector.extract_strided_slice %274 {offsets = [0, 0, 48], sizes = [2, 8, 16], strides = [1, 1, 1]} : vector<2x8x128xf32> to vector<2x8x16xf32>
    %340 = arith.truncf %339 : vector<2x8x16xf32> to vector<2x8x16xbf16>
    "tpu.trace_start"() <{level = 10 : i32, message = "bqd,bkd->bqk"}> : () -> ()
    %cst_120 = arith.constant dense<0.000000e+00> : vector<2x8x8xf32>
    %341 = tpu.matmul %336, %338, %cst_120 {dimension_numbers = #tpu.dot_dimension_numbers<[2], [2], [1], [1], [0, 0, 0, 1, 1, 1], [0], [0]>} : vector<2x8x16xbf16>, vector<2x8x16xbf16>, vector<2x8x8xf32> -> vector<2x8x8xf32>
    "tpu.trace_stop"() : () -> ()
    %cst_121 = arith.constant 2.500000e-01 : f32
    %342 = vector.broadcast %cst_121 : f32 to vector<2x8x8xf32>
    %343 = arith.mulf %341, %342 : vector<2x8x8xf32>
    %cst_122 = arith.constant dense<0xFF800000> : vector<2x8xf32>
    %344 = vector.multi_reduction <maximumf>, %343, %cst_122 [2] : vector<2x8x8xf32> to vector<2x8xf32>
    %345 = vector.shape_cast %344 : vector<2x8xf32> to vector<2x8x1xf32>
    %346 = vector.broadcast %345 : vector<2x8x1xf32> to vector<2x8x8xf32>
    %347 = arith.subf %343, %346 : vector<2x8x8xf32>
    %348 = math.exp %347 : vector<2x8x8xf32>
    %cst_123 = arith.constant dense<0.000000e+00> : vector<2x8xf32>
    %349 = vector.multi_reduction <add>, %348, %cst_123 [2] : vector<2x8x8xf32> to vector<2x8xf32>
    %350 = vector.shape_cast %349 : vector<2x8xf32> to vector<2x8x1xf32>
    %351 = vector.broadcast %350 : vector<2x8x1xf32> to vector<2x8x8xf32>
    %352 = arith.divf %348, %351 : vector<2x8x8xf32>
    %353 = arith.truncf %352 : vector<2x8x8xf32> to vector<2x8x8xbf16>
    "tpu.trace_start"() <{level = 10 : i32, message = "bqk,bkd->bqd"}> : () -> ()
    %cst_124 = arith.constant dense<0.000000e+00> : vector<2x8x16xf32>
    %354 = tpu.matmul %353, %340, %cst_124 {dimension_numbers = #tpu.dot_dimension_numbers<[2], [1], [1], [2], [0, 0, 0, 1, 1, 2], [0], [0]>} : vector<2x8x8xbf16>, vector<2x8x16xbf16>, vector<2x8x16xf32> -> vector<2x8x16xf32>
    "tpu.trace_stop"() : () -> ()
    %355 = vector.extract_strided_slice %270 {offsets = [0, 0, 64], sizes = [2, 8, 16], strides = [1, 1, 1]} : vector<2x8x128xf32> to vector<2x8x16xf32>
    %356 = arith.truncf %355 : vector<2x8x16xf32> to vector<2x8x16xbf16>
    %357 = vector.extract_strided_slice %272 {offsets = [0, 0, 64], sizes = [2, 8, 16], strides = [1, 1, 1]} : vector<2x8x128xf32> to vector<2x8x16xf32>
    %358 = arith.truncf %357 : vector<2x8x16xf32> to vector<2x8x16xbf16>
    %359 = vector.extract_strided_slice %274 {offsets = [0, 0, 64], sizes = [2, 8, 16], strides = [1, 1, 1]} : vector<2x8x128xf32> to vector<2x8x16xf32>
    %360 = arith.truncf %359 : vector<2x8x16xf32> to vector<2x8x16xbf16>
    "tpu.trace_start"() <{level = 10 : i32, message = "bqd,bkd->bqk"}> : () -> ()
    %cst_125 = arith.constant dense<0.000000e+00> : vector<2x8x8xf32>
    %361 = tpu.matmul %356, %358, %cst_125 {dimension_numbers = #tpu.dot_dimension_numbers<[2], [2], [1], [1], [0, 0, 0, 1, 1, 1], [0], [0]>} : vector<2x8x16xbf16>, vector<2x8x16xbf16>, vector<2x8x8xf32> -> vector<2x8x8xf32>
    "tpu.trace_stop"() : () -> ()
    %cst_126 = arith.constant 2.500000e-01 : f32
    %362 = vector.broadcast %cst_126 : f32 to vector<2x8x8xf32>
    %363 = arith.mulf %361, %362 : vector<2x8x8xf32>
    %cst_127 = arith.constant dense<0xFF800000> : vector<2x8xf32>
    %364 = vector.multi_reduction <maximumf>, %363, %cst_127 [2] : vector<2x8x8xf32> to vector<2x8xf32>
    %365 = vector.shape_cast %364 : vector<2x8xf32> to vector<2x8x1xf32>
    %366 = vector.broadcast %365 : vector<2x8x1xf32> to vector<2x8x8xf32>
    %367 = arith.subf %363, %366 : vector<2x8x8xf32>
    %368 = math.exp %367 : vector<2x8x8xf32>
    %cst_128 = arith.constant dense<0.000000e+00> : vector<2x8xf32>
    %369 = vector.multi_reduction <add>, %368, %cst_128 [2] : vector<2x8x8xf32> to vector<2x8xf32>
    %370 = vector.shape_cast %369 : vector<2x8xf32> to vector<2x8x1xf32>
    %371 = vector.broadcast %370 : vector<2x8x1xf32> to vector<2x8x8xf32>
    %372 = arith.divf %368, %371 : vector<2x8x8xf32>
    %373 = arith.truncf %372 : vector<2x8x8xf32> to vector<2x8x8xbf16>
    "tpu.trace_start"() <{level = 10 : i32, message = "bqk,bkd->bqd"}> : () -> ()
    %cst_129 = arith.constant dense<0.000000e+00> : vector<2x8x16xf32>
    %374 = tpu.matmul %373, %360, %cst_129 {dimension_numbers = #tpu.dot_dimension_numbers<[2], [1], [1], [2], [0, 0, 0, 1, 1, 2], [0], [0]>} : vector<2x8x8xbf16>, vector<2x8x16xbf16>, vector<2x8x16xf32> -> vector<2x8x16xf32>
    "tpu.trace_stop"() : () -> ()
    %375 = vector.extract_strided_slice %270 {offsets = [0, 0, 80], sizes = [2, 8, 16], strides = [1, 1, 1]} : vector<2x8x128xf32> to vector<2x8x16xf32>
    %376 = arith.truncf %375 : vector<2x8x16xf32> to vector<2x8x16xbf16>
    %377 = vector.extract_strided_slice %272 {offsets = [0, 0, 80], sizes = [2, 8, 16], strides = [1, 1, 1]} : vector<2x8x128xf32> to vector<2x8x16xf32>
    %378 = arith.truncf %377 : vector<2x8x16xf32> to vector<2x8x16xbf16>
    %379 = vector.extract_strided_slice %274 {offsets = [0, 0, 80], sizes = [2, 8, 16], strides = [1, 1, 1]} : vector<2x8x128xf32> to vector<2x8x16xf32>
    %380 = arith.truncf %379 : vector<2x8x16xf32> to vector<2x8x16xbf16>
    "tpu.trace_start"() <{level = 10 : i32, message = "bqd,bkd->bqk"}> : () -> ()
    %cst_130 = arith.constant dense<0.000000e+00> : vector<2x8x8xf32>
    %381 = tpu.matmul %376, %378, %cst_130 {dimension_numbers = #tpu.dot_dimension_numbers<[2], [2], [1], [1], [0, 0, 0, 1, 1, 1], [0], [0]>} : vector<2x8x16xbf16>, vector<2x8x16xbf16>, vector<2x8x8xf32> -> vector<2x8x8xf32>
    "tpu.trace_stop"() : () -> ()
    %cst_131 = arith.constant 2.500000e-01 : f32
    %382 = vector.broadcast %cst_131 : f32 to vector<2x8x8xf32>
    %383 = arith.mulf %381, %382 : vector<2x8x8xf32>
    %cst_132 = arith.constant dense<0xFF800000> : vector<2x8xf32>
    %384 = vector.multi_reduction <maximumf>, %383, %cst_132 [2] : vector<2x8x8xf32> to vector<2x8xf32>
    %385 = vector.shape_cast %384 : vector<2x8xf32> to vector<2x8x1xf32>
    %386 = vector.broadcast %385 : vector<2x8x1xf32> to vector<2x8x8xf32>
    %387 = arith.subf %383, %386 : vector<2x8x8xf32>
    %388 = math.exp %387 : vector<2x8x8xf32>
    %cst_133 = arith.constant dense<0.000000e+00> : vector<2x8xf32>
    %389 = vector.multi_reduction <add>, %388, %cst_133 [2] : vector<2x8x8xf32> to vector<2x8xf32>
    %390 = vector.shape_cast %389 : vector<2x8xf32> to vector<2x8x1xf32>
    %391 = vector.broadcast %390 : vector<2x8x1xf32> to vector<2x8x8xf32>
    %392 = arith.divf %388, %391 : vector<2x8x8xf32>
    %393 = arith.truncf %392 : vector<2x8x8xf32> to vector<2x8x8xbf16>
    "tpu.trace_start"() <{level = 10 : i32, message = "bqk,bkd->bqd"}> : () -> ()
    %cst_134 = arith.constant dense<0.000000e+00> : vector<2x8x16xf32>
    %394 = tpu.matmul %393, %380, %cst_134 {dimension_numbers = #tpu.dot_dimension_numbers<[2], [1], [1], [2], [0, 0, 0, 1, 1, 2], [0], [0]>} : vector<2x8x8xbf16>, vector<2x8x16xbf16>, vector<2x8x16xf32> -> vector<2x8x16xf32>
    "tpu.trace_stop"() : () -> ()
    %395 = vector.extract_strided_slice %270 {offsets = [0, 0, 96], sizes = [2, 8, 16], strides = [1, 1, 1]} : vector<2x8x128xf32> to vector<2x8x16xf32>
    %396 = arith.truncf %395 : vector<2x8x16xf32> to vector<2x8x16xbf16>
    %397 = vector.extract_strided_slice %272 {offsets = [0, 0, 96], sizes = [2, 8, 16], strides = [1, 1, 1]} : vector<2x8x128xf32> to vector<2x8x16xf32>
    %398 = arith.truncf %397 : vector<2x8x16xf32> to vector<2x8x16xbf16>
    %399 = vector.extract_strided_slice %274 {offsets = [0, 0, 96], sizes = [2, 8, 16], strides = [1, 1, 1]} : vector<2x8x128xf32> to vector<2x8x16xf32>
    %400 = arith.truncf %399 : vector<2x8x16xf32> to vector<2x8x16xbf16>
    "tpu.trace_start"() <{level = 10 : i32, message = "bqd,bkd->bqk"}> : () -> ()
    %cst_135 = arith.constant dense<0.000000e+00> : vector<2x8x8xf32>
    %401 = tpu.matmul %396, %398, %cst_135 {dimension_numbers = #tpu.dot_dimension_numbers<[2], [2], [1], [1], [0, 0, 0, 1, 1, 1], [0], [0]>} : vector<2x8x16xbf16>, vector<2x8x16xbf16>, vector<2x8x8xf32> -> vector<2x8x8xf32>
    "tpu.trace_stop"() : () -> ()
    %cst_136 = arith.constant 2.500000e-01 : f32
    %402 = vector.broadcast %cst_136 : f32 to vector<2x8x8xf32>
    %403 = arith.mulf %401, %402 : vector<2x8x8xf32>
    %cst_137 = arith.constant dense<0xFF800000> : vector<2x8xf32>
    %404 = vector.multi_reduction <maximumf>, %403, %cst_137 [2] : vector<2x8x8xf32> to vector<2x8xf32>
    %405 = vector.shape_cast %404 : vector<2x8xf32> to vector<2x8x1xf32>
    %406 = vector.broadcast %405 : vector<2x8x1xf32> to vector<2x8x8xf32>
    %407 = arith.subf %403, %406 : vector<2x8x8xf32>
    %408 = math.exp %407 : vector<2x8x8xf32>
    %cst_138 = arith.constant dense<0.000000e+00> : vector<2x8xf32>
    %409 = vector.multi_reduction <add>, %408, %cst_138 [2] : vector<2x8x8xf32> to vector<2x8xf32>
    %410 = vector.shape_cast %409 : vector<2x8xf32> to vector<2x8x1xf32>
    %411 = vector.broadcast %410 : vector<2x8x1xf32> to vector<2x8x8xf32>
    %412 = arith.divf %408, %411 : vector<2x8x8xf32>
    %413 = arith.truncf %412 : vector<2x8x8xf32> to vector<2x8x8xbf16>
    "tpu.trace_start"() <{level = 10 : i32, message = "bqk,bkd->bqd"}> : () -> ()
    %cst_139 = arith.constant dense<0.000000e+00> : vector<2x8x16xf32>
    %414 = tpu.matmul %413, %400, %cst_139 {dimension_numbers = #tpu.dot_dimension_numbers<[2], [1], [1], [2], [0, 0, 0, 1, 1, 2], [0], [0]>} : vector<2x8x8xbf16>, vector<2x8x16xbf16>, vector<2x8x16xf32> -> vector<2x8x16xf32>
    "tpu.trace_stop"() : () -> ()
    %415 = vector.extract_strided_slice %270 {offsets = [0, 0, 112], sizes = [2, 8, 16], strides = [1, 1, 1]} : vector<2x8x128xf32> to vector<2x8x16xf32>
    %416 = arith.truncf %415 : vector<2x8x16xf32> to vector<2x8x16xbf16>
    %417 = vector.extract_strided_slice %272 {offsets = [0, 0, 112], sizes = [2, 8, 16], strides = [1, 1, 1]} : vector<2x8x128xf32> to vector<2x8x16xf32>
    %418 = arith.truncf %417 : vector<2x8x16xf32> to vector<2x8x16xbf16>
    %419 = vector.extract_strided_slice %274 {offsets = [0, 0, 112], sizes = [2, 8, 16], strides = [1, 1, 1]} : vector<2x8x128xf32> to vector<2x8x16xf32>
    %420 = arith.truncf %419 : vector<2x8x16xf32> to vector<2x8x16xbf16>
    "tpu.trace_start"() <{level = 10 : i32, message = "bqd,bkd->bqk"}> : () -> ()
    %cst_140 = arith.constant dense<0.000000e+00> : vector<2x8x8xf32>
    %421 = tpu.matmul %416, %418, %cst_140 {dimension_numbers = #tpu.dot_dimension_numbers<[2], [2], [1], [1], [0, 0, 0, 1, 1, 1], [0], [0]>} : vector<2x8x16xbf16>, vector<2x8x16xbf16>, vector<2x8x8xf32> -> vector<2x8x8xf32>
    "tpu.trace_stop"() : () -> ()
    %cst_141 = arith.constant 2.500000e-01 : f32
    %422 = vector.broadcast %cst_141 : f32 to vector<2x8x8xf32>
    %423 = arith.mulf %421, %422 : vector<2x8x8xf32>
    %cst_142 = arith.constant dense<0xFF800000> : vector<2x8xf32>
    %424 = vector.multi_reduction <maximumf>, %423, %cst_142 [2] : vector<2x8x8xf32> to vector<2x8xf32>
    %425 = vector.shape_cast %424 : vector<2x8xf32> to vector<2x8x1xf32>
    %426 = vector.broadcast %425 : vector<2x8x1xf32> to vector<2x8x8xf32>
    %427 = arith.subf %423, %426 : vector<2x8x8xf32>
    %428 = math.exp %427 : vector<2x8x8xf32>
    %cst_143 = arith.constant dense<0.000000e+00> : vector<2x8xf32>
    %429 = vector.multi_reduction <add>, %428, %cst_143 [2] : vector<2x8x8xf32> to vector<2x8xf32>
    %430 = vector.shape_cast %429 : vector<2x8xf32> to vector<2x8x1xf32>
    %431 = vector.broadcast %430 : vector<2x8x1xf32> to vector<2x8x8xf32>
    %432 = arith.divf %428, %431 : vector<2x8x8xf32>
    %433 = arith.truncf %432 : vector<2x8x8xf32> to vector<2x8x8xbf16>
    "tpu.trace_start"() <{level = 10 : i32, message = "bqk,bkd->bqd"}> : () -> ()
    %cst_144 = arith.constant dense<0.000000e+00> : vector<2x8x16xf32>
    %434 = tpu.matmul %433, %420, %cst_144 {dimension_numbers = #tpu.dot_dimension_numbers<[2], [1], [1], [2], [0, 0, 0, 1, 1, 2], [0], [0]>} : vector<2x8x8xbf16>, vector<2x8x16xbf16>, vector<2x8x16xf32> -> vector<2x8x16xf32>
    "tpu.trace_stop"() : () -> ()
    %435 = tpu.concatenate %294, %314, %334, %354, %374, %394, %414, %434 in 2 : vector<2x8x16xf32>, vector<2x8x16xf32>, vector<2x8x16xf32>, vector<2x8x16xf32>, vector<2x8x16xf32>, vector<2x8x16xf32>, vector<2x8x16xf32>, vector<2x8x16xf32> -> vector<2x8x128xf32>
    %436 = vector.shape_cast %435 : vector<2x8x128xf32> to vector<16x128xf32>
    %437 = arith.truncf %436 : vector<16x128xf32> to vector<16x128xbf16>
    %c1_145 = arith.constant 1 : index
    %c0_146 = arith.constant 0 : index
    %c0_147 = arith.constant 0 : index
    %438 = vector.load %arg7[%c1_145, %c0_146, %c0_147] : memref<2x128x128xbf16, #tpu.memory_space<vmem>>, vector<1x128x128xbf16>
    %439 = vector.shape_cast %438 : vector<1x128x128xbf16> to vector<128x128xbf16>
    %cst_148 = arith.constant dense<0.000000e+00> : vector<16x128xf32>
    %440 = tpu.matmul %437, %439, %cst_148 {dimension_numbers = #tpu.dot_dimension_numbers<[1], [0], [0], [1], [0, 0, 1, 1], [], []>} : vector<16x128xbf16>, vector<128x128xbf16>, vector<16x128xf32> -> vector<16x128xf32>
    %c1_149 = arith.constant 1 : index
    %c0_150 = arith.constant 0 : index
    %c0_151 = arith.constant 0 : index
    %441 = vector.load %arg8[%c1_149, %c0_150, %c0_151] : memref<2x1x128xf32, #tpu.memory_space<vmem>>, vector<1x1x128xf32>
    %442 = vector.shape_cast %441 : vector<1x1x128xf32> to vector<1x128xf32>
    %443 = vector.broadcast %442 : vector<1x128xf32> to vector<16x128xf32>
    %444 = arith.addf %440, %443 : vector<16x128xf32>
    %445 = arith.addf %260, %444 : vector<16x128xf32>
    %c1_152 = arith.constant 1 : index
    %c0_153 = arith.constant 0 : index
    %c0_154 = arith.constant 0 : index
    %446 = vector.load %arg13[%c1_152, %c0_153, %c0_154] : memref<2x1x128xf32, #tpu.memory_space<vmem>>, vector<1x1x128xf32>
    %447 = vector.shape_cast %446 : vector<1x1x128xf32> to vector<1x128xf32>
    %c1_155 = arith.constant 1 : index
    %c0_156 = arith.constant 0 : index
    %c0_157 = arith.constant 0 : index
    %448 = vector.load %arg14[%c1_155, %c0_156, %c0_157] : memref<2x1x128xf32, #tpu.memory_space<vmem>>, vector<1x1x128xf32>
    %449 = vector.shape_cast %448 : vector<1x1x128xf32> to vector<1x128xf32>
    %cst_158 = arith.constant dense<0.000000e+00> : vector<16xf32>
    %450 = vector.multi_reduction <add>, %445, %cst_158 [1] : vector<16x128xf32> to vector<16xf32>
    %451 = vector.shape_cast %450 : vector<16xf32> to vector<16x1xf32>
    %cst_159 = arith.constant 1.280000e+02 : f32
    %452 = vector.broadcast %cst_159 : f32 to vector<16x1xf32>
    %453 = arith.divf %451, %452 : vector<16x1xf32>
    %454 = vector.broadcast %453 : vector<16x1xf32> to vector<16x128xf32>
    %455 = arith.subf %445, %454 : vector<16x128xf32>
    %456 = arith.mulf %455, %455 : vector<16x128xf32>
    %cst_160 = arith.constant dense<0.000000e+00> : vector<16xf32>
    %457 = vector.multi_reduction <add>, %456, %cst_160 [1] : vector<16x128xf32> to vector<16xf32>
    %458 = vector.shape_cast %457 : vector<16xf32> to vector<16x1xf32>
    %cst_161 = arith.constant 1.280000e+02 : f32
    %459 = vector.broadcast %cst_161 : f32 to vector<16x1xf32>
    %460 = arith.divf %458, %459 : vector<16x1xf32>
    %cst_162 = arith.constant 9.99999974E-6 : f32
    %461 = vector.broadcast %cst_162 : f32 to vector<16x1xf32>
    %462 = arith.addf %460, %461 : vector<16x1xf32>
    %463 = math.rsqrt %462 : vector<16x1xf32>
    %464 = vector.broadcast %463 : vector<16x1xf32> to vector<16x128xf32>
    %465 = arith.mulf %455, %464 : vector<16x128xf32>
    %466 = vector.broadcast %447 : vector<1x128xf32> to vector<16x128xf32>
    %467 = arith.mulf %465, %466 : vector<16x128xf32>
    %468 = vector.broadcast %449 : vector<1x128xf32> to vector<16x128xf32>
    %469 = arith.addf %467, %468 : vector<16x128xf32>
    %470 = arith.truncf %469 : vector<16x128xf32> to vector<16x128xbf16>
    %c1_163 = arith.constant 1 : index
    %c0_164 = arith.constant 0 : index
    %c0_165 = arith.constant 0 : index
    %471 = vector.load %arg9[%c1_163, %c0_164, %c0_165] : memref<2x128x256xbf16, #tpu.memory_space<vmem>>, vector<1x128x256xbf16>
    %472 = vector.shape_cast %471 : vector<1x128x256xbf16> to vector<128x256xbf16>
    %cst_166 = arith.constant dense<0.000000e+00> : vector<16x256xf32>
    %473 = tpu.matmul %470, %472, %cst_166 {dimension_numbers = #tpu.dot_dimension_numbers<[1], [0], [0], [1], [0, 0, 1, 1], [], []>} : vector<16x128xbf16>, vector<128x256xbf16>, vector<16x256xf32> -> vector<16x256xf32>
    %c1_167 = arith.constant 1 : index
    %c0_168 = arith.constant 0 : index
    %c0_169 = arith.constant 0 : index
    %474 = vector.load %arg10[%c1_167, %c0_168, %c0_169] : memref<2x1x256xf32, #tpu.memory_space<vmem>>, vector<1x1x256xf32>
    %475 = vector.shape_cast %474 : vector<1x1x256xf32> to vector<1x256xf32>
    %476 = vector.broadcast %475 : vector<1x256xf32> to vector<16x256xf32>
    %477 = arith.addf %473, %476 : vector<16x256xf32>
    %cst_170 = arith.constant 0.000000e+00 : f32
    %478 = vector.broadcast %cst_170 : f32 to vector<16x256xf32>
    %479 = arith.maximumf %477, %478 : vector<16x256xf32>
    %480 = arith.truncf %479 : vector<16x256xf32> to vector<16x256xbf16>
    %c1_171 = arith.constant 1 : index
    %c0_172 = arith.constant 0 : index
    %c0_173 = arith.constant 0 : index
    %481 = vector.load %arg11[%c1_171, %c0_172, %c0_173] : memref<2x256x128xbf16, #tpu.memory_space<vmem>>, vector<1x256x128xbf16>
    %482 = vector.shape_cast %481 : vector<1x256x128xbf16> to vector<256x128xbf16>
    %cst_174 = arith.constant dense<0.000000e+00> : vector<16x128xf32>
    %483 = tpu.matmul %480, %482, %cst_174 {dimension_numbers = #tpu.dot_dimension_numbers<[1], [0], [0], [1], [0, 0, 1, 1], [], []>} : vector<16x256xbf16>, vector<256x128xbf16>, vector<16x128xf32> -> vector<16x128xf32>
    %c1_175 = arith.constant 1 : index
    %c0_176 = arith.constant 0 : index
    %c0_177 = arith.constant 0 : index
    %484 = vector.load %arg12[%c1_175, %c0_176, %c0_177] : memref<2x1x128xf32, #tpu.memory_space<vmem>>, vector<1x1x128xf32>
    %485 = vector.shape_cast %484 : vector<1x1x128xf32> to vector<1x128xf32>
    %486 = vector.broadcast %485 : vector<1x128xf32> to vector<16x128xf32>
    %487 = arith.addf %483, %486 : vector<16x128xf32>
    %488 = arith.addf %469, %487 : vector<16x128xf32>
    %c1_178 = arith.constant 1 : index
    %c0_179 = arith.constant 0 : index
    %c0_180 = arith.constant 0 : index
    %489 = vector.load %arg15[%c1_178, %c0_179, %c0_180] : memref<2x1x128xf32, #tpu.memory_space<vmem>>, vector<1x1x128xf32>
    %490 = vector.shape_cast %489 : vector<1x1x128xf32> to vector<1x128xf32>
    %c1_181 = arith.constant 1 : index
    %c0_182 = arith.constant 0 : index
    %c0_183 = arith.constant 0 : index
    %491 = vector.load %arg16[%c1_181, %c0_182, %c0_183] : memref<2x1x128xf32, #tpu.memory_space<vmem>>, vector<1x1x128xf32>
    %492 = vector.shape_cast %491 : vector<1x1x128xf32> to vector<1x128xf32>
    %cst_184 = arith.constant dense<0.000000e+00> : vector<16xf32>
    %493 = vector.multi_reduction <add>, %488, %cst_184 [1] : vector<16x128xf32> to vector<16xf32>
    %494 = vector.shape_cast %493 : vector<16xf32> to vector<16x1xf32>
    %cst_185 = arith.constant 1.280000e+02 : f32
    %495 = vector.broadcast %cst_185 : f32 to vector<16x1xf32>
    %496 = arith.divf %494, %495 : vector<16x1xf32>
    %497 = vector.broadcast %496 : vector<16x1xf32> to vector<16x128xf32>
    %498 = arith.subf %488, %497 : vector<16x128xf32>
    %499 = arith.mulf %498, %498 : vector<16x128xf32>
    %cst_186 = arith.constant dense<0.000000e+00> : vector<16xf32>
    %500 = vector.multi_reduction <add>, %499, %cst_186 [1] : vector<16x128xf32> to vector<16xf32>
    %501 = vector.shape_cast %500 : vector<16xf32> to vector<16x1xf32>
    %cst_187 = arith.constant 1.280000e+02 : f32
    %502 = vector.broadcast %cst_187 : f32 to vector<16x1xf32>
    %503 = arith.divf %501, %502 : vector<16x1xf32>
    %cst_188 = arith.constant 9.99999974E-6 : f32
    %504 = vector.broadcast %cst_188 : f32 to vector<16x1xf32>
    %505 = arith.addf %503, %504 : vector<16x1xf32>
    %506 = math.rsqrt %505 : vector<16x1xf32>
    %507 = vector.broadcast %506 : vector<16x1xf32> to vector<16x128xf32>
    %508 = arith.mulf %498, %507 : vector<16x128xf32>
    %509 = vector.broadcast %490 : vector<1x128xf32> to vector<16x128xf32>
    %510 = arith.mulf %508, %509 : vector<16x128xf32>
    %511 = vector.broadcast %492 : vector<1x128xf32> to vector<16x128xf32>
    %512 = arith.addf %510, %511 : vector<16x128xf32>
    %513 = vector.shape_cast %512 : vector<16x128xf32> to vector<2x8x128xf32>
    %cst_189 = arith.constant dense<0.000000e+00> : vector<2x128xf32>
    %514 = vector.multi_reduction <add>, %513, %cst_189 [1] : vector<2x8x128xf32> to vector<2x128xf32>
    %cst_190 = arith.constant 8.000000e+00 : f32
    %515 = vector.broadcast %cst_190 : f32 to vector<2x128xf32>
    %516 = arith.divf %514, %515 : vector<2x128xf32>
    %517 = arith.truncf %516 : vector<2x128xf32> to vector<2x128xbf16>
    %c0_191 = arith.constant 0 : index
    %c0_192 = arith.constant 0 : index
    %518 = vector.load %arg17[%c0_191, %c0_192] : memref<128x128xbf16, #tpu.memory_space<vmem>>, vector<128x128xbf16>
    %cst_193 = arith.constant dense<0.000000e+00> : vector<2x128xf32>
    %519 = tpu.matmul %517, %518, %cst_193 {dimension_numbers = #tpu.dot_dimension_numbers<[1], [0], [0], [1], [0, 0, 1, 1], [], []>} : vector<2x128xbf16>, vector<128x128xbf16>, vector<2x128xf32> -> vector<2x128xf32>
    %c0_194 = arith.constant 0 : index
    %c0_195 = arith.constant 0 : index
    %520 = vector.load %arg18[%c0_194, %c0_195] : memref<1x128xf32, #tpu.memory_space<vmem>>, vector<1x128xf32>
    %521 = vector.broadcast %520 : vector<1x128xf32> to vector<2x128xf32>
    %522 = arith.addf %519, %521 : vector<2x128xf32>
    %c0_196 = arith.constant 0 : index
    %c0_197 = arith.constant 0 : index
    %c0_198 = arith.constant 0 : index
    %523 = vector.load %arg19[%c0_196, %c0_197, %c0_198] : memref<1x2x128xf32, #tpu.memory_space<vmem>>, vector<1x2x128xf32>
    %524 = vector.shape_cast %523 : vector<1x2x128xf32> to vector<2x128xf32>
    %525 = vector.shape_cast %522 : vector<2x128xf32> to vector<1x2x128xf32>
    tpu.vector_store %arg19[%c0_196, %c0_197, %c0_198], %525 {strides = array<i32>} : memref<1x2x128xf32, #tpu.memory_space<vmem>>, vector<1x2x128xf32>,
    return
  }
  func.func @transform_0(%arg0: i32) -> (i32, i32, i32) {
    %c0_i32 = arith.constant 0 : i32
    %c0_i32_0 = arith.constant 0 : i32
    %c0_i32_1 = arith.constant 0 : i32
    return %arg0, %c0_i32, %c0_i32_0 : i32, i32, i32
  }
  func.func @transform_1(%arg0: i32) -> (i32, i32) {
    %c0_i32 = arith.constant 0 : i32
    %c0_i32_0 = arith.constant 0 : i32
    return %arg0, %c0_i32 : i32, i32
  }
  func.func @transform_2(%arg0: i32) -> (i32, i32) {
    %c0_i32 = arith.constant 0 : i32
    %c0_i32_0 = arith.constant 0 : i32
    %c0_i32_1 = arith.constant 0 : i32
    return %c0_i32, %c0_i32_0 : i32, i32
  }
  func.func @transform_3(%arg0: i32) -> (i32, i32) {
    %c0_i32 = arith.constant 0 : i32
    %c0_i32_0 = arith.constant 0 : i32
    %c0_i32_1 = arith.constant 0 : i32
    return %c0_i32, %c0_i32_0 : i32, i32
  }
  func.func @transform_4(%arg0: i32) -> (i32, i32, i32) {
    %c0_i32 = arith.constant 0 : i32
    %c0_i32_0 = arith.constant 0 : i32
    %c0_i32_1 = arith.constant 0 : i32
    %c0_i32_2 = arith.constant 0 : i32
    return %c0_i32, %c0_i32_0, %c0_i32_1 : i32, i32, i32
  }
  func.func @transform_5(%arg0: i32) -> (i32, i32, i32) {
    %c0_i32 = arith.constant 0 : i32
    %c0_i32_0 = arith.constant 0 : i32
    %c0_i32_1 = arith.constant 0 : i32
    %c0_i32_2 = arith.constant 0 : i32
    return %c0_i32, %c0_i32_0, %c0_i32_1 : i32, i32, i32
  }
  func.func @transform_6(%arg0: i32) -> (i32, i32, i32) {
    %c0_i32 = arith.constant 0 : i32
    %c0_i32_0 = arith.constant 0 : i32
    %c0_i32_1 = arith.constant 0 : i32
    %c0_i32_2 = arith.constant 0 : i32
    return %c0_i32, %c0_i32_0, %c0_i32_1 : i32, i32, i32
  }
  func.func @transform_7(%arg0: i32) -> (i32, i32, i32) {
    %c0_i32 = arith.constant 0 : i32
    %c0_i32_0 = arith.constant 0 : i32
    %c0_i32_1 = arith.constant 0 : i32
    %c0_i32_2 = arith.constant 0 : i32
    return %c0_i32, %c0_i32_0, %c0_i32_1 : i32, i32, i32
  }
  func.func @transform_8(%arg0: i32) -> (i32, i32, i32) {
    %c0_i32 = arith.constant 0 : i32
    %c0_i32_0 = arith.constant 0 : i32
    %c0_i32_1 = arith.constant 0 : i32
    %c0_i32_2 = arith.constant 0 : i32
    return %c0_i32, %c0_i32_0, %c0_i32_1 : i32, i32, i32
  }
  func.func @transform_9(%arg0: i32) -> (i32, i32, i32) {
    %c0_i32 = arith.constant 0 : i32
    %c0_i32_0 = arith.constant 0 : i32
    %c0_i32_1 = arith.constant 0 : i32
    %c0_i32_2 = arith.constant 0 : i32
    return %c0_i32, %c0_i32_0, %c0_i32_1 : i32, i32, i32
  }
  func.func @transform_10(%arg0: i32) -> (i32, i32, i32) {
    %c0_i32 = arith.constant 0 : i32
    %c0_i32_0 = arith.constant 0 : i32
    %c0_i32_1 = arith.constant 0 : i32
    %c0_i32_2 = arith.constant 0 : i32
    return %c0_i32, %c0_i32_0, %c0_i32_1 : i32, i32, i32
  }
  func.func @transform_11(%arg0: i32) -> (i32, i32, i32) {
    %c0_i32 = arith.constant 0 : i32
    %c0_i32_0 = arith.constant 0 : i32
    %c0_i32_1 = arith.constant 0 : i32
    %c0_i32_2 = arith.constant 0 : i32
    return %c0_i32, %c0_i32_0, %c0_i32_1 : i32, i32, i32
  }
  func.func @transform_12(%arg0: i32) -> (i32, i32, i32) {
    %c0_i32 = arith.constant 0 : i32
    %c0_i32_0 = arith.constant 0 : i32
    %c0_i32_1 = arith.constant 0 : i32
    %c0_i32_2 = arith.constant 0 : i32
    return %c0_i32, %c0_i32_0, %c0_i32_1 : i32, i32, i32
  }
  func.func @transform_13(%arg0: i32) -> (i32, i32, i32) {
    %c0_i32 = arith.constant 0 : i32
    %c0_i32_0 = arith.constant 0 : i32
    %c0_i32_1 = arith.constant 0 : i32
    %c0_i32_2 = arith.constant 0 : i32
    return %c0_i32, %c0_i32_0, %c0_i32_1 : i32, i32, i32
  }
  func.func @transform_14(%arg0: i32) -> (i32, i32, i32) {
    %c0_i32 = arith.constant 0 : i32
    %c0_i32_0 = arith.constant 0 : i32
    %c0_i32_1 = arith.constant 0 : i32
    %c0_i32_2 = arith.constant 0 : i32
    return %c0_i32, %c0_i32_0, %c0_i32_1 : i32, i32, i32
  }
  func.func @transform_15(%arg0: i32) -> (i32, i32, i32) {
    %c0_i32 = arith.constant 0 : i32
    %c0_i32_0 = arith.constant 0 : i32
    %c0_i32_1 = arith.constant 0 : i32
    %c0_i32_2 = arith.constant 0 : i32
    return %c0_i32, %c0_i32_0, %c0_i32_1 : i32, i32, i32
  }
  func.func @transform_16(%arg0: i32) -> (i32, i32) {
    %c0_i32 = arith.constant 0 : i32
    %c0_i32_0 = arith.constant 0 : i32
    %c0_i32_1 = arith.constant 0 : i32
    return %c0_i32, %c0_i32_0 : i32, i32
  }
  func.func @transform_17(%arg0: i32) -> (i32, i32) {
    %c0_i32 = arith.constant 0 : i32
    %c0_i32_0 = arith.constant 0 : i32
    %c0_i32_1 = arith.constant 0 : i32
    return %c0_i32, %c0_i32_0 : i32, i32
  }
  func.func @transform_18(%arg0: i32) -> (i32, i32, i32) {
    %c0_i32 = arith.constant 0 : i32
    %c0_i32_0 = arith.constant 0 : i32
    %c0_i32_1 = arith.constant 0 : i32
    return %arg0, %c0_i32, %c0_i32_0 : i32, i32, i32
  }
}

</mosaic_0001>

<bundles_post_ra>
// kernel: tpu_custom_call.1
= control target key start
LH: loop header
LB: loop body
LE: loop exit
PB: predicated region body
PF: predicated region fallthrough
CT: control target
= control target key end

     0   :  { %s8552_s0 = inlined_call_operand.hbm [shape: bf16[2,8,128], index: 0, kind: input, shape index: {}]   ;;  %s8553_s1 = inlined_call_operand.hbm [shape: f32[16,128], index: 1, kind: input, shape index: {}]   ;;  %s8554_s2 = inlined_call_operand.hbm [shape: bf16[128,128], index: 2, kind: input, shape index: {}]   ;;  %s8555_s3 = inlined_call_operand.hbm [shape: f32[1,128], index: 3, kind: input, shape index: {}]   ;;  %s8556_s4 = inlined_call_operand.hbm [shape: bf16[2,128,384], index: 4, kind: input, shape index: {}]   ;;  %s8557_s5 = inlined_call_operand.vmem [shape: f32[2,1,384], index: 5, kind: input, shape index: {}]   ;;  %s8558_s6 = inlined_call_operand.hbm [shape: bf16[2,128,128], index: 6, kind: input, shape index: {}]   ;;  %s8559_s7 = inlined_call_operand.vmem [shape: f32[2,1,128], index: 7, kind: input, shape index: {}]   ;;  %s8560_s8 = inlined_call_operand.hbm [shape: bf16[2,128,256], index: 8, kind: input, shape index: {}]   ;;  %s8561_s9 = inlined_call_operand.vmem [shape: f32[2,1,256], index: 9, kind: input, shape index: {}]   ;;  %s8562_s10 = inlined_call_operand.hbm [shape: bf16[2,256,128], index: 10, kind: input, shape index: {}]   ;;  %s8563_s11 = inlined_call_operand.vmem [shape: f32[2,1,128], index: 11, kind: input, shape index: {}]   ;;  %s8564_s12 = inlined_call_operand.vmem [shape: f32[2,1,128], index: 12, kind: input, shape index: {}]   ;;  %s8565_s13 = inlined_call_operand.vmem [shape: f32[2,1,128], index: 13, kind: input, shape index: {}]   ;;  %s8566_s14 = inlined_call_operand.vmem [shape: f32[2,1,128], index: 14, kind: input, shape index: {}]   ;;  %s8567_s15 = inlined_call_operand.vmem [shape: f32[2,1,128], index: 15, kind: input, shape index: {}]   ;;  %s8568_s16 = inlined_call_operand.hbm [shape: bf16[128,128], index: 16, kind: input, shape index: {}]   ;;  %s8569_s17 = inlined_call_operand.vmem [shape: f32[1,128], index: 17, kind: input, shape index: {}]   ;;  %s8570_s18 = inlined_call_operand.hbm [shape: f32[1,2,128], index: 18, kind: output, shape index: {}]  }
   0x1   :  { %8576 = sst [smem:[#allocation24_spill]] %s8552_s0 }
   0x2   :  { %8577 = sst [smem:[#allocation25_spill]] %s8553_s1 }
   0x3   :  { %8578 = sst [smem:[#allocation26_spill]] %s8554_s2 }
   0x4   :  { %8579 = sst [smem:[#allocation27_spill]] %s8570_s18 }
   0x5   :  { %23 = vsyncpa [#allocation3], 0 }
   0x6   :  { %24 = vsyncpa [#allocation6], 0 }
   0x7   :  { %25 = vsyncpa [#allocation9], 0 }
   0x8   :  { %26 = vsyncpa [#allocation12], 0 }
   0x9   :  { %27 = vsyncpa [#allocation15], 0 }
   0xa   :  { %28 = vsyncpa [#allocation4], 0  ;;  %s7370_s27 = smov [#allocation5]   ;;  %s8580_s0 = sld [smem:[#allocation25_spill]] }
   0xb   :  { %s46_s28 = sshll.u32 %s7370_s27, 4  ;;  %s47_s28 = int_to_ptr.vmem [resolvable:$true] %s46_s28 }
  0x10   :  { %s7138_s19 = scalar_lea.hbm %s8580_s0, 256 }
  0x11   :  { %p7139_p0 = scmp.ne.s32.totalorder %s8580_s0, %s7138_s19  ;;  %p7142_p1 = scmp.lt.u32.totalorder %s7138_s19, %s8580_s0 }
  0x13   :  { %p7144_p2 = pnand %p7142_p1, %p7139_p0 }
  0x15   :  { %7147 = shalt.err (!%p7144_p2)
}
  0x16   :  { %s7148_s2 = scalar_lea.vmem %s47_s28, 256  ;;  %p7153_p4 = scmp.lt.s32.totalorder %s47_s28, %s47_s28 }
  0x17   :  { %p7149_p3 = scmp.ne.s32.totalorder %s47_s28, %s7148_s2  ;;  %p7154_p5 = scmp.lt.s32.totalorder %s7148_s2, %s7148_s2 }
  0x19   :  { %p7155_p6 = por %p7154_p5, %p7153_p4 }
  0x1b   :  { %p7156_p7 = pnand %p7155_p6, %p7149_p3 }
  0x1d   :  { %7159 = shalt.err (!%p7156_p7)
}
  0x1e   :  { %s8575_s23 = smov 128   ;;  %s7372_s24 = smov 8  }
  0x1f   :  { %52 = dma.hbm_to_vmem [thread:$0]  %s8580_s0, 256, %s47_s28, [#allocation6], %s8575_s23, %s8575_s23, %s7372_s24  }
  0x20   :  { %s7373_s27 = smov [#allocation8]   ;;  %s7160_s1 = scalar_lea.hbm %s8555_s3, 16 }
  0x21   :  { %s71_s29 = sshll.u32 %s7373_s27, 4  ;;  %p7161_p8 = scmp.ne.s32.totalorder %s8555_s3, %s7160_s1  ;;  %s72_s29 = int_to_ptr.vmem [resolvable:$true] %s71_s29 }
  0x22   :  { %p7164_p9 = scmp.lt.u32.totalorder %s7160_s1, %s8555_s3 }
  0x24   :  { %p7166_p10 = pnand %p7164_p9, %p7161_p8 }
  0x26   :  { %7169 = shalt.err (!%p7166_p10)
}
  0x27   :  { %s7170_s18 = scalar_lea.vmem %s72_s29, 16  ;;  %s7174_s28 = scalar_lea.vmem %s72_s29, 32 }
  0x28   :  { %p7171_p11 = scmp.ne.s32.totalorder %s72_s29, %s7170_s18  ;;  %p7175_p12 = scmp.lt.s32.totalorder %s72_s29, %s72_s29 }
  0x29   :  { %p7176_p13 = scmp.lt.s32.totalorder %s7174_s28, %s7170_s18 }
  0x2b   :  { %p7177_p0 = por %p7176_p13, %p7175_p12 }
  0x2d   :  { %p7178_p1 = pnand %p7177_p0, %p7171_p11 }
  0x2f   :  { %7181 = shalt.err (!%p7178_p1)
}
  0x30   :  { %74 = dma.hbm_to_vmem [thread:$0]  %s8555_s3, 16, %s72_s29, [#allocation9]  }
  0x31   :  { %s7374_s26 = smov [#allocation11]   ;;  %s7375_s30 = smov [#allocation14]  }
  0x32   :  { %s94_s27 = sshll.u32 %s7374_s26, 4  ;;  %s122_s19 = sshll.u32 %s7375_s30, 4  ;;  %s95_s27 = int_to_ptr.vmem [resolvable:$true] %s94_s27  ;;  %s7517_s19 = int_to_ptr.vmem [resolvable:$true] %s122_s19 }
  0x33   :  { %s7182_s21 = scalar_lea.hbm %s8558_s6, 2048 }
  0x34   :  { %p7183_p2 = scmp.ne.s32.totalorder %s8558_s6, %s7182_s21  ;;  %p7186_p3 = scmp.lt.u32.totalorder %s7182_s21, %s8558_s6 }
  0x36   :  { %p7188_p4 = pnand %p7186_p3, %p7183_p2 }
  0x38   :  { %7191 = shalt.err (!%p7188_p4)
}
  0x39   :  { %s7192_s3 = scalar_lea.vmem %s95_s27, 2048  ;;  %p7197_p6 = scmp.lt.s32.totalorder %s95_s27, %s95_s27 }
  0x3a   :  { %p7193_p5 = scmp.ne.s32.totalorder %s95_s27, %s7192_s3  ;;  %p7198_p7 = scmp.lt.s32.totalorder %s7192_s3, %s7192_s3 }
  0x3c   :  { %p7199_p8 = por %p7198_p7, %p7197_p6 }
  0x3e   :  { %p7200_p9 = pnand %p7199_p8, %p7193_p5 }
  0x40   :  { %7203 = shalt.err (!%p7200_p9)
}
  0x41   :  { %s7376_s29 = smov 64   ;;  %s7377_s0 = smov 4  }
  0x42   :  { %100 = dma.hbm_to_vmem [thread:$0]  %s8558_s6, 2048, %s95_s27, [#allocation12], %s7376_s29, %s7376_s29, %s7377_s0  }
  0x43   :  { %s7204_s20 = scalar_lea.hbm %s8562_s10, 4096 }
  0x44   :  { %p7205_p10 = scmp.ne.s32.totalorder %s8562_s10, %s7204_s20  ;;  %p7208_p11 = scmp.lt.u32.totalorder %s7204_s20, %s8562_s10 }
  0x46   :  { %p7210_p12 = pnand %p7208_p11, %p7205_p10 }
  0x48   :  { %7213 = shalt.err (!%p7210_p12)
}
  0x49   :  { %s7214_s28 = scalar_lea.vmem %s7517_s19, 4096  ;;  %p7219_p0 = scmp.lt.s32.totalorder %s7517_s19, %s7517_s19 }
  0x4a   :  { %p7215_p13 = scmp.ne.s32.totalorder %s7517_s19, %s7214_s28  ;;  %p7220_p1 = scmp.lt.s32.totalorder %s7214_s28, %s7214_s28 }
  0x4c   :  { %p7221_p2 = por %p7220_p1, %p7219_p0 }
  0x4e   :  { %p7222_p3 = pnand %p7221_p2, %p7215_p13 }
  0x50   :  { %7225 = shalt.err (!%p7222_p3)
}
  0x51   :  { %128 = dma.hbm_to_vmem [thread:$0]  %s8562_s10, 4096, %s7517_s19, [#allocation15], %s7376_s29, %s7376_s29, %s7377_s0  }
  0x52   :  { %s7378_s3 = smov [#allocation2]   ;;  %s7379_s26 = smov [#allocation7]  }
  0x53   :  { %s34_s25 = sshll.u32 %s7378_s3, 4  ;;  %s58_s30 = sshll.u32 %s7379_s26, 4  ;;  %s35_s25 = int_to_ptr.vmem [resolvable:$true] %s34_s25  ;;  %s7554_s30 = int_to_ptr.vmem [resolvable:$true] %s58_s30 }
  0x54   :  { %s8581_s21 = sld [smem:[#allocation24_spill]] }
  0x5a   :  { %s7226_s22 = scalar_lea.hbm %s8581_s21, 128 }
  0x5b   :  { %p7227_p4 = scmp.ne.s32.totalorder %s8581_s21, %s7226_s22  ;;  %p7230_p5 = scmp.lt.u32.totalorder %s7226_s22, %s8581_s21 }
  0x5d   :  { %p7232_p6 = pnand %p7230_p5, %p7227_p4 }
  0x5f   :  { %7235 = shalt.err (!%p7232_p6)
}
  0x60   :  { %s7236_s10 = scalar_lea.vmem %s35_s25, 128  ;;  %p7241_p8 = scmp.lt.s32.totalorder %s35_s25, %s35_s25 }
  0x61   :  { %p7237_p7 = scmp.ne.s32.totalorder %s35_s25, %s7236_s10  ;;  %p7242_p9 = scmp.lt.s32.totalorder %s7236_s10, %s7236_s10 }
  0x63   :  { %p7243_p10 = por %p7242_p9, %p7241_p8 }
  0x65   :  { %p7244_p11 = pnand %p7243_p10, %p7237_p7 }
  0x67   :  { %7247 = shalt.err (!%p7244_p11)
}
  0x68   :  { %40 = dma.hbm_to_vmem [thread:$0]  %s8581_s21, 128, %s35_s25, [#allocation3], %s7376_s29, %s7376_s29, %s7377_s0  }
  0x69   :  { %s8582_s23 = sld [smem:[#allocation26_spill]] }
  0x6f   :  { %s7248_s26 = scalar_lea.hbm %s8582_s23, 1024 }
  0x70   :  { %p7249_p12 = scmp.ne.s32.totalorder %s8582_s23, %s7248_s26  ;;  %p7252_p13 = scmp.lt.u32.totalorder %s7248_s26, %s8582_s23 }
  0x72   :  { %p7254_p0 = pnand %p7252_p13, %p7249_p12 }
  0x74   :  { %7257 = shalt.err (!%p7254_p0)
}
  0x75   :  { %s7258_s2 = scalar_lea.vmem %s7554_s30, 1024  ;;  %p7263_p2 = scmp.lt.s32.totalorder %s7554_s30, %s7554_s30 }
  0x76   :  { %p7259_p1 = scmp.ne.s32.totalorder %s7554_s30, %s7258_s2  ;;  %p7264_p3 = scmp.lt.s32.totalorder %s7258_s2, %s7258_s2 }
  0x78   :  { %p7265_p4 = por %p7264_p3, %p7263_p2 }
  0x7a   :  { %p7266_p5 = pnand %p7265_p4, %p7259_p1 }
  0x7c   :  { %7269 = shalt.err (!%p7266_p5)
}
  0x7d   :  { %64 = dma.hbm_to_vmem [thread:$0]  %s8582_s23, 1024, %s7554_s30, [#allocation6], %s7376_s29, %s7376_s29, %s7377_s0  }
  0x7e   :  { %s7380_s28 = smov [#allocation10]   ;;  %s7270_s27 = scalar_lea.hbm %s8556_s4, 6144 }
  0x7f   :  { %s80_s10 = sshll.u32 %s7380_s28, 4  ;;  %p7271_p6 = scmp.ne.s32.totalorder %s8556_s4, %s7270_s27  ;;  %s81_s10 = int_to_ptr.vmem [resolvable:$true] %s80_s10 }
  0x80   :  { %p7274_p7 = scmp.lt.u32.totalorder %s7270_s27, %s8556_s4 }
  0x82   :  { %p7276_p8 = pnand %p7274_p7, %p7271_p6 }
  0x84   :  { %7279 = shalt.err (!%p7276_p8)
}
  0x85   :  { %s7280_s22 = scalar_lea.vmem %s81_s10, 6144  ;;  %p7285_p10 = scmp.lt.s32.totalorder %s81_s10, %s81_s10 }
  0x86   :  { %p7281_p9 = scmp.ne.s32.totalorder %s81_s10, %s7280_s22  ;;  %p7286_p11 = scmp.lt.s32.totalorder %s7280_s22, %s7280_s22 }
  0x88   :  { %p7287_p12 = por %p7286_p11, %p7285_p10 }
  0x8a   :  { %p7288_p13 = pnand %p7287_p12, %p7281_p9 }
  0x8c   :  { %7291 = shalt.err (!%p7288_p13)
}
  0x8d   :  { %s7381_s30 = smov 192   ;;  %s7382_s23 = smov 12  }
  0x8e   :  { %86 = dma.hbm_to_vmem [thread:$0]  %s8556_s4, 6144, %s81_s10, [#allocation9], %s7381_s30, %s7381_s30, %s7382_s23  }
  0x8f   :  { %s7383_s25 = smov [#allocation13]   ;;  %s7384_s28 = smov [#allocation16]  }
  0x90   :  { %s108_s21 = sshll.u32 %s7383_s25, 4  ;;  %s144_s19 = sshll.u32 %s7384_s28, 4  ;;  %s109_s21 = int_to_ptr.vmem [resolvable:$true] %s108_s21  ;;  %s145_s19 = int_to_ptr.vmem [resolvable:$true] %s144_s19 }
  0x91   :  { %s7292_s3 = scalar_lea.hbm %s8560_s8, 4096 }
  0x92   :  { %p7293_p0 = scmp.ne.s32.totalorder %s8560_s8, %s7292_s3  ;;  %p7296_p1 = scmp.lt.u32.totalorder %s7292_s3, %s8560_s8 }
  0x94   :  { %p7298_p2 = pnand %p7296_p1, %p7293_p0 }
  0x96   :  { %7301 = shalt.err (!%p7298_p2)
}
  0x97   :  { %s7302_s4 = scalar_lea.vmem %s109_s21, 4096  ;;  %p7307_p4 = scmp.lt.s32.totalorder %s109_s21, %s109_s21 }
  0x98   :  { %p7303_p3 = scmp.ne.s32.totalorder %s109_s21, %s7302_s4  ;;  %p7308_p5 = scmp.lt.s32.totalorder %s7302_s4, %s7302_s4 }
  0x9a   :  { %p7309_p6 = por %p7308_p5, %p7307_p4 }
  0x9c   :  { %p7310_p7 = pnand %p7309_p6, %p7303_p3 }
  0x9e   :  { %7313 = shalt.err (!%p7310_p7)
}
  0x9f   :  { %s8583_s10 = smov 128   ;;  %s7314_s25 = scalar_lea.hbm %s8568_s16, 1024 }
  0xa0   :  { %114 = dma.hbm_to_vmem [thread:$0]  %s8560_s8, 4096, %s109_s21, [#allocation12], %s8583_s10, %s8583_s10, %s7372_s24  }
  0xa1   :  { %p7315_p8 = scmp.ne.s32.totalorder %s8568_s16, %s7314_s25  ;;  %p7318_p9 = scmp.lt.u32.totalorder %s7314_s25, %s8568_s16 }
  0xa3   :  { %p7320_p10 = pnand %p7318_p9, %p7315_p8 }
  0xa5   :  { %7323 = shalt.err (!%p7320_p10)
}
  0xa6   :  { %s7324_s26 = scalar_lea.vmem %s145_s19, 1024  ;;  %p7329_p12 = scmp.lt.s32.totalorder %s145_s19, %s145_s19 }
  0xa7   :  { %p7325_p11 = scmp.ne.s32.totalorder %s145_s19, %s7324_s26  ;;  %p7330_p13 = scmp.lt.s32.totalorder %s7324_s26, %s7324_s26 }
  0xa9   :  { %p7331_p0 = por %p7330_p13, %p7329_p12 }
  0xab   :  { %p7332_p1 = pnand %p7331_p0, %p7325_p11 }
  0xad   :  { %7335 = shalt.err (!%p7332_p1)
}
  0xae   :  { %150 = dma.hbm_to_vmem [thread:$0]  %s8568_s16, 1024, %s145_s19, [#allocation15], %s7376_s29, %s7376_s29, %s7377_s0  }
  0xaf   :  { %7358 = dma.done.wait [#allocation3], 128  }
  0xb0   :  { %7359 = vsyncadd [#allocation3], 4294967168 }
  0xb1   :  { %7360 = dma.done.wait [#allocation6], 1280  }
  0xb2   :  { %7361 = vsyncadd [#allocation6], 4294966016 }
  0xb3   :  { %7362 = dma.done.wait [#allocation9], 6160  }
  0xb4   :  { %7363 = vsyncadd [#allocation9], 4294961136 }
  0xb5   :  { %7364 = dma.done.wait [#allocation12], 6144  }
  0xb6   :  { %7365 = vsyncadd [#allocation12], 4294961152 }
  0xb7   :  { %7366 = dma.done.wait [#allocation15], 5120  }
  0xb8   :  { %7367 = vsyncadd [#allocation15], 4294962176  ;;  %v7385_v0 = vmov 0.0   ;;  %vm7386_vm0 = vmmov 0   ;;  %v6817_v1 = vld [vmem:[#allocation7] sm:$0xff]   ;;  %v6818_v2 = vld [vmem:[#allocation7 + $0x8] sm:$0xff]   ;;  %v340_v47 = vlaneseq }
  0xb9   :  { %6218 = vmatprep.subr.bf16.mxu0 %v7385_v0  ;;  %6234 = vmatprep.mubr.msk.bf16.mxu0 %vm7386_vm0, %v7385_v0  ;;  %v6819_v3 = vld [vmem:[#allocation7 + $0x10] sm:$0xff]   ;;  %v6820_v4 = vld [vmem:[#allocation7 + $0x18] sm:$0xff]   ;;  %v6821_v9 = vld [vmem:[#allocation7 + $0x20] sm:$0xff]   ;;  %v7387_v34 = vmov 0   ;;  %vm573_vm1 = vcmask 130048   ;;  %vm696_vm2 = vcmask 1043456  }
  0xba   :  { %6219 = vmatpush3.bf16.msra.mxu0 %v6817_v1  ;;  %v6826_v5 = vld [vmem:[#allocation10 + $0x4] ss:$12 sps:$4 sm:$0xff]   ;;  %v6828_v6 = vld [vmem:[#allocation10] ss:$12 sps:$4 sm:$0xff]   ;;  %v6830_v7 = vld [vmem:[#allocation10 + $0x1c] ss:$12 sps:$4 sm:$0xff]   ;;  %515 = vmatprep.mubr.bf16.mxu1 %v7387_v34 }
  0xbb   :  { %6220 = vmatprep.subr.bf16.mxu0 %v7385_v0  ;;  %483 = vmatprep.subr.bf16.mxu1 %v6826_v5  ;;  %v6832_v8 = vld [vmem:[#allocation10 + $0x18] ss:$12 sps:$4 sm:$0xff]   ;;  %v6834_v10 = vld [vmem:[#allocation10 + $0x34] ss:$12 sps:$4 sm:$0xff]   ;;  %v6836_v11 = vld [vmem:[#allocation10 + $0x30] ss:$12 sps:$4 sm:$0xff]  }
  0xbc   :  { %484 = vmatpush1.bf16.msra.mxu1 %v6828_v6  ;;  %v6838_v12 = vld [vmem:[#allocation10 + $0x4c] ss:$12 sps:$4 sm:$0xff]   ;;  %v6840_v14 = vld [vmem:[#allocation10 + $0x48] ss:$12 sps:$4 sm:$0xff]   ;;  %v6842_v16 = vld [vmem:[#allocation10 + $0x64] ss:$12 sps:$4 sm:$0xff]  }
  0xbd   :  { %485 = vmatprep.subr.bf16.mxu1 %v6830_v7  ;;  %v6822_v13 = vld [vmem:[#allocation7 + $0x28] sm:$0xff]   ;;  %v6823_v15 = vld [vmem:[#allocation7 + $0x30] sm:$0xff]   ;;  %v6824_v19 = vld [vmem:[#allocation7 + $0x38] sm:$0xff]   ;;  %v7666_v48 = vshrl.u32 %v340_v47, 7  ;;  %vm668_vm3 = vcmask 64512   ;;  %s7388_s21 = smov 112  }
  0xbe   :  { %6221 = vmatpush3.bf16.msra.mxu0 %v6818_v2  ;;  %v6844_v17 = vld [vmem:[#allocation10 + $0x60] ss:$12 sps:$4 sm:$0xff]   ;;  %v6846_v18 = vld [vmem:[#allocation10 + $0x7c] ss:$12 sps:$4 sm:$0xff]   ;;  %v6848_v20 = vld [vmem:[#allocation10 + $0x78] ss:$12 sps:$4 sm:$0xff]  }
  0xbf   :  { %6222 = vmatprep.subr.bf16.mxu0 %v7385_v0  ;;  %v6825_v21 = vld [vmem:[#allocation2] sm:$0xff]   ;;  %v6841_v25 = vld [vmem:[#allocation10 + $0x50] ss:$12 sps:$4 sm:$0xff]   ;;  %v6850_v28 = vld [vmem:[#allocation10 + $0x94] ss:$12 sps:$4 sm:$0xff]   ;;  %v7669_v49 = vsub.s32 1, %v7666_v48 }
  0xc0   :  { %486 = vmatpush1.bf16.msra.mxu1 %v6832_v8  ;;  %v6829_v22 = vld [vmem:[#allocation10 + $0x8] ss:$12 sps:$4 sm:$0xff]   ;;  %v6833_v23 = vld [vmem:[#allocation10 + $0x20] ss:$12 sps:$4 sm:$0xff]   ;;  %v6837_v24 = vld [vmem:[#allocation10 + $0x38] ss:$12 sps:$4 sm:$0xff]  }
  0xc1   :  { %487 = vmatprep.subr.bf16.mxu1 %v6834_v10  ;;  %v6845_v26 = vld [vmem:[#allocation10 + $0x68] ss:$12 sps:$4 sm:$0xff]   ;;  %v6849_v27 = vld [vmem:[#allocation10 + $0x80] ss:$12 sps:$4 sm:$0xff]   ;;  %v6852_v29 = vld [vmem:[#allocation10 + $0x90] ss:$12 sps:$4 sm:$0xff]  }
  0xc2   :  { %6223 = vmatpush3.bf16.msra.mxu0 %v6819_v3  ;;  %v6853_v30 = vld [vmem:[#allocation10 + $0x98] ss:$12 sps:$4 sm:$0xff]   ;;  %v6856_v32 = vld [vmem:[#allocation10 + $0xa8] ss:$12 sps:$4 sm:$0xff]   ;;  %v6857_v33 = vld [vmem:[#allocation10 + $0xb0] ss:$12 sps:$4 sm:$0xff]  }
  0xc3   :  { %6224 = vmatprep.subr.bf16.mxu0 %v7385_v0  ;;  %v6854_v31 = vld [vmem:[#allocation10 + $0xac] ss:$12 sps:$4 sm:$0xff]   ;;  %v5761_v35 = vld [vmem:[#allocation8] ss:$0 sm:$0xff]  ;;  %v338_v50 = vld [vmem:[%s8557_s5] sm:$0x7] }
  0xc4   :  { %488 = vmatpush1.bf16.msra.mxu1 %v6836_v11  ;;  %v301_v39 = vld [vmem:[#allocation5] sm:$0xff]  ;;  %v302_v41 = vld [vmem:[#allocation5 + $0x8] sm:$0xff]  ;;  %v350_v51 = vsub.s32 2, %v7666_v48  ;;  %v347_v52 = vrot.slane %v338_v50, %v7669_v49  ;;  %v7677_v53 = vsub.s32 0, %v7666_v48  ;;  %s7389_s19 = smov 96   ;;  %s7390_s1 = smov 80  }
  0xc5   :  { %489 = vmatprep.subr.bf16.mxu1 %v6838_v12  ;;  %s7391_s20 = smov 48   ;;  %s7392_s22 = smov 32   ;;  %vm2404_vm4 = vcmask 261120   ;;  %vm2407_vm5 = vcmask 392192   ;;  %vm2410_vm6 = vcmask 523264   ;;  %vm2413_vm7 = vcmask 654336  }
  0xc6   :  { %6225 = vmatpush3.bf16.msra.mxu0 %v6820_v4  ;;  %v351_v56 = vrot.slane %v338_v50, %v350_v51  ;;  %v343_v2 = vrot.slane %v338_v50, %v7677_v53  ;;  %s7393_s4 = smov 16   ;;  %vm2416_vm8 = vcmask 785408   ;;  %vm2419_vm9 = vcmask 916480   ;;  %s7394_s23 = smov [#allocation17]  }
  0xc7   :  { %6226 = vmatprep.subr.bf16.mxu0 %v7385_v0  ;;  %vm5649_vm10 = vcmask 1041409   ;;  %s5748_s18 = sshll.u32 %s7394_s23, 4  ;;  %s5749_s18 = int_to_ptr.vmem [resolvable:$true] %s5748_s18 }
  0xc8   :  { %490 = vmatpush1.bf16.msra.mxu1 %v6840_v14  ;;  %s7336_s2 = scalar_lea.vmem %s5749_s18, 32  ;;  %p7341_p3 = scmp.lt.s32.totalorder %s5749_s18, %s5749_s18 }
  0xc9   :  { %491 = vmatprep.subr.bf16.mxu1 %v6842_v16  ;;  %p7337_p2 = scmp.ne.s32.totalorder %s5749_s18, %s7336_s2  ;;  %p7342_p4 = scmp.lt.s32.totalorder %s7336_s2, %s7336_s2 }
  0xca   :  { %6227 = vmatpush3.bf16.msra.mxu0 %v6821_v9 }
  0xcb   :  { %6228 = vmatprep.subr.bf16.mxu0 %v7385_v0  ;;  %p7343_p5 = por %p7342_p4, %p7341_p3 }
  0xcc   :  { %492 = vmatpush1.bf16.msra.mxu1 %v6844_v17 }
  0xcd   :  { %493 = vmatprep.subr.bf16.mxu1 %v6846_v18  ;;  %p7344_p6 = pnand %p7343_p5, %p7337_p2 }
  0xce   :  { %6229 = vmatpush3.bf16.msra.mxu0 %v6822_v13 }
  0xcf   :  { %6230 = vmatprep.subr.bf16.mxu0 %v7385_v0 }
  0xd0   :  { %494 = vmatpush1.bf16.msra.mxu1 %v6848_v20 }
  0xd1   :  { %495 = vmatprep.subr.bf16.mxu1 %v6850_v28 }
  0xd2   :  { %6231 = vmatpush3.bf16.msra.mxu0 %v6823_v15 }
  0xd3   :  { %6232 = vmatprep.subr.bf16.mxu0 %v7385_v0 }
  0xd4   :  { %496 = vmatpush1.bf16.msra.mxu1 %v6852_v29 }
  0xd5   :  { %497 = vmatprep.subr.bf16.mxu1 %v6854_v31 }
  0xd6   :  { %6233 = vmatpush3.bf16.msra.mxu0 %v6824_v19 }
  0xd7   :  { %6238 = vmatprep.subr.bf16.mxu0 %v7385_v0 }
  0xd8   :  { %498 = vmatpush1.bf16.msra.mxu1 %v6856_v32 }
  0xd9   :  { %6235 = vmatmul.mubr.bf16.vlgmr.msra.gmra.mrb[0].mxu0 %v6825_v21  ;;  %6258 = vmatprep.subr.bf16.mxu1 %v7385_v0 }
  0xda   :  { %6239 = vmatpush3.bf16.msra.mxu0 %v6829_v22  ;;  %6254 = vmatprep.mubr.msk.bf16.mxu0 %vm7386_vm0, %v7385_v0 }
  0xdb   :  { %6240 = vmatprep.subr.bf16.mxu0 %v7385_v0 }
  0xde   :  { %6241 = vmatpush3.bf16.msra.mxu0 %v6833_v23 }
  0xdf   :  { %6242 = vmatprep.subr.bf16.mxu0 %v7385_v0 }
  0xe2   :  { %6243 = vmatpush3.bf16.msra.mxu0 %v6837_v24 }
  0xe3   :  { %6244 = vmatprep.subr.bf16.mxu0 %v7385_v0 }
  0xe6   :  { %6245 = vmatpush3.bf16.msra.mxu0 %v6841_v25 }
  0xe7   :  { %6246 = vmatprep.subr.bf16.mxu0 %v7385_v0 }
  0xea   :  { %6247 = vmatpush3.bf16.msra.mxu0 %v6845_v26 }
  0xeb   :  { %6248 = vmatprep.subr.bf16.mxu0 %v7385_v0 }
  0xee   :  { %6249 = vmatpush3.bf16.msra.mxu0 %v6849_v27 }
  0xef   :  { %6250 = vmatprep.subr.bf16.mxu0 %v7385_v0 }
  0xf2   :  { %6251 = vmatpush3.bf16.msra.mxu0 %v6853_v30 }
  0xf3   :  { %6252 = vmatprep.subr.bf16.mxu0 %v7385_v0 }
  0xf6   :  { %6253 = vmatpush3.bf16.msra.mxu0 %v6857_v33 }
  0xf7   :  { %6282 = vmatprep.subr.bf16.mxu0 %v7385_v0 }
 0x1ac   :  { %v294_v36 = vpop.f32.mrb[0].mxu0 }
 0x1ad   :  { %v295_v37 = vadd.f32 %v5761_v35, %v294_v36  ;;  %v6236_v38 = vpop.f32.mrb[1].mxu0 }
 0x1ae   :  { %v297_v40 = vpop.f32.mrb[2].mxu0 }
 0x1af   :  { %v298_v42 = vadd.f32 %v5761_v35, %v297_v40  ;;  %v6237_v43 = vpop.f32.mrb[3].mxu0  ;;  %v7656_v44 = vadd.f32 %v301_v39, %v295_v37 }
 0x1b1   :  { %v7658_v45 = vadd.f32 %v302_v41, %v298_v42 }
 0x1b3   :  { %v305_v46 = vpack.c.bf16 %v7658_v45, %v7656_v44 }
 0x1b5   :  { %516 = vmatmul.mubr.bf16.vlgmr.msra.gmra.mrb[0].mxu1 %v305_v46  ;;  %6255 = vmatmul.mubr.bf16.vlgmr.msra.gmra.mrb[4].mxu0 %v305_v46 }
 0x1b6   :  { %6260 = vmatprep.mubr.msk.bf16.mxu1 %vm7386_vm0, %v7385_v0  ;;  %6284 = vmatprep.mubr.msk.bf16.mxu0 %vm7386_vm0, %v7385_v0 }
 0x288   :  { %v517_v54 = vpop.f32.mrb[0].mxu1  ;;  %v560_v55 = vpop.f32.mrb[4].mxu0 }
 0x289   :  { %v519_v57 = vpop.f32.mrb[1].mxu1  ;;  %v6256_v58 = vpop.f32.mrb[5].mxu0  ;;  %v518_v6 = vadd.f32 %v517_v54, %v343_v2  ;;  %v561_v9 = vadd.f32 %v560_v55, %v351_v56 }
 0x28a   :  { %v520_v59 = vadd.f32 %v519_v57, %v347_v52  ;;  %v521_v60 = vpop.f32.mrb[2].mxu1  ;;  %v563_v61 = vpop.f32.mrb[6].mxu0 }
 0x28b   :  { %v7681_v62 = vadd.f32 %v563_v61, %v351_v56  ;;  %v523_v63 = vpop.f32.mrb[3].mxu1  ;;  %v6257_v1 = vpop.f32.mrb[7].mxu0  ;;  %v7691_v8 = vpack.c.bf16 %v518_v6, %v518_v6  ;;  %v522_v11 = vadd.f32 %v521_v60, %v343_v2  ;;  %v7700_v12 = vpack.c.bf16 %v561_v9, %v561_v9 }
 0x28c   :  { %v7684_v3 = vpack.c.bf16 %v520_v59, %v520_v59  ;;  %v524_v4 = vadd.f32 %v523_v63, %v347_v52 }
 0x28d   :  { %v7702_v13 = vpack.c.bf16 %v522_v11, %v522_v11  ;;  %v698_v14 = vsel %vm696_vm2, %v7700_v12, 0  ;;  %v7727_v42 = vpack.c.bf16 %v7681_v62, %v7681_v62 }
 0x28e   :  { %v578_v5 = vsel %vm573_vm1, %v7684_v3, 0  ;;  %v7689_v7 = vpack.c.bf16 %v524_v4, %v524_v4 }
 0x28f   :  { %6259 = vmatpush3.bf16.xpose.msra.mxu1 %v578_v5  ;;  %v744_v47 = vsel %vm696_vm2, %v7727_v42, 0 }
 0x290   :  { %6264 = vmatprep.subr.bf16.mxu1 %v7385_v0  ;;  %v624_v10 = vsel %vm573_vm1, %v7689_v7, 0 }
 0x296   :  { %6261 = vmatmul.mubr.msk.bf16.vlgmr.msra.gmra.mrb[4].mxu1 %vm573_vm1, %v7691_v8 }
 0x297   :  { %6265 = vmatpush3.bf16.xpose.msra.mxu1 %v624_v10  ;;  %6266 = vmatprep.mubr.msk.bf16.mxu1 %vm7386_vm0, %v7385_v0 }
 0x298   :  { %6270 = vmatprep.subr.bf16.mxu1 %v7385_v0 }
 0x29e   :  { %6267 = vmatmul.mubr.msk.bf16.vlgmr.msra.gmra.mrb[8].mxu1 %vm573_vm1, %v7702_v13 }
 0x29f   :  { %6271 = vmatpush3.bf16.msra.mxu1 %v698_v14  ;;  %6272 = vmatprep.mubr.msk.bf16.mxu1 %vm7386_vm0, %v7385_v0 }
 0x2a0   :  { %6276 = vmatprep.subr.bf16.mxu1 %v7385_v0 }
 0x369   :  { %v614_v15 = vpop.f32.mrb[4].mxu1 }
 0x36a   :  { %v666_v16 = vmul.f32 0.25, %v614_v15  ;;  %v6262_v17 = vpop.f32.mrb[5].mxu1 }
 0x36b   :  { %v617_v18 = vpop.f32.mrb[6].mxu1 }
 0x36c   :  { %v6263_v19 = vpop.f32.mrb[7].mxu1  ;;  %v669_v20 = vsel %vm668_vm3, %v666_v16, -inf }
 0x36d   :  { %670 = vmax.xlane.f32.xlu0 %v669_v20 }
 0x371   :  { %v660_v21 = vpop.f32.mrb[8].mxu1 }
 0x372   :  { %v667_v22 = vmul.f32 0.25, %v660_v21  ;;  %v6268_v23 = vpop.f32.mrb[9].mxu1 }
 0x373   :  { %v663_v24 = vpop.f32.mrb[10].mxu1 }
 0x374   :  { %v6269_v25 = vpop.f32.mrb[11].mxu1  ;;  %v672_v26 = vsel %vm668_vm3, %v667_v22, -inf }
 0x375   :  { %673 = vmax.xlane.f32.xlu0 %v672_v26 }
 0x38b   :  { %790 = vrot.lane.b32.xlu0 %v7684_v3, %s7388_s21 }
 0x3fa   :  { %v671_v27 = vpop.xlane.xlu0 %670 }
 0x3fb   :  { %v675_v28 = vsub.f32 %v666_v16, %v671_v27 }
 0x3fd   :  { %v677_v29 = vmul.f32 1.442695, %v675_v28 }
 0x3ff   :  { %6994 = vpow2.f32 %v677_v29 }
 0x402   :  { %v674_v30 = vpop.xlane.xlu0 %673 }
 0x403   :  { %v676_v36 = vsub.f32 %v667_v22, %v674_v30 }
 0x405   :  { %v679_v37 = vmul.f32 1.442695, %v676_v36 }
 0x406   :  { %v791_v31 = vpop.permute.xlu0 %790 }
 0x407   :  { %v796_v32 = vsel %vm573_vm1, %v791_v31, 0  ;;  %6996 = vpow2.f32 %v679_v37 }
 0x408   :  { %6283 = vmatpush3.bf16.xpose.msra.mxu0 %v796_v32 }
 0x409   :  { %v6995_v33 = vpop.eup %6994  ;;  %6294 = vmatprep.subr.bf16.mxu0 %v7385_v0 }
 0x40a   :  { %v681_v35 = vsel %vm668_vm3, %v6995_v33, 0.0 }
 0x40b   :  { %682 = vadd.xlane.f32.xlu1 %v681_v35 }
 0x411   :  { %v6997_v38 = vpop.eup %6996 }
 0x412   :  { %v684_v39 = vsel %vm668_vm3, %v6997_v38, 0.0 }
 0x41c   :  { %842 = vrot.lane.b32.xlu1 %v7689_v7, %s7388_s21 }
 0x440   :  { %685 = vadd.xlane.f32.xlu1 %v684_v39 }
 0x451   :  { %787 = vrot.lane.b32.xlu1 %v7691_v8, %s7388_s21 }
 0x455   :  { %839 = vrot.lane.b32.xlu1 %v7702_v13, %s7388_s21 }
 0x498   :  { %v683_v40 = vpop.xlane.xlu1 %682 }
 0x499   :  { %6998 = vrcp.f32 %v683_v40 }
 0x49c   :  { %v843_v50 = vpop.permute.xlu1 %842 }
 0x49d   :  { %v848_v58 = vsel %vm573_vm1, %v843_v50, 0 }
 0x4a3   :  { %v6999_v41 = vpop.eup %6998 }
 0x4a4   :  { %v688_v43 = vmul.f32 %v6999_v41, %v6995_v33 }
 0x4a6   :  { %v691_v46 = vpack.c.bf16 %v688_v43, %v688_v43 }
 0x4a8   :  { %6273 = vmatmul.mubr.msk.bf16.vlgmr.msra.gmra.mrb[12].mxu1 %vm668_vm3, %v691_v46 }
 0x4a9   :  { %6277 = vmatpush3.bf16.msra.mxu1 %v744_v47  ;;  %6278 = vmatprep.mubr.msk.bf16.mxu1 %vm7386_vm0, %v7385_v0 }
 0x4aa   :  { %6288 = vmatprep.subr.bf16.mxu1 %v7385_v0 }
 0x4cd   :  { %v686_v52 = vpop.xlane.xlu1 %685 }
 0x4ce   :  { %7000 = vrcp.f32 %v686_v52 }
 0x4d1   :  { %v788_v54 = vpop.permute.xlu1 %787 }
 0x4d2   :  { %6285 = vmatmul.mubr.msk.bf16.vlgmr.msra.gmra.mrb[8].mxu0 %vm573_vm1, %v788_v54 }
 0x4d3   :  { %6296 = vmatprep.mubr.msk.bf16.mxu0 %vm7386_vm0, %v7385_v0 }
 0x4d5   :  { %v840_v59 = vpop.permute.xlu1 %839 }
 0x4d8   :  { %v7001_v55 = vpop.eup %7000 }
 0x4d9   :  { %v690_v56 = vmul.f32 %v7001_v55, %v6997_v38 }
 0x4db   :  { %v692_v57 = vpack.c.bf16 %v690_v56, %v690_v56 }
 0x4dd   :  { %6279 = vmatmul.mubr.msk.bf16.vlgmr.msra.gmra.mrb[16].mxu1 %vm668_vm3, %v692_v57 }
 0x4de   :  { %6289 = vmatpush3.bf16.xpose.msra.mxu1 %v848_v58  ;;  %6290 = vmatprep.mubr.msk.bf16.mxu1 %vm7386_vm0, %v7385_v0 }
 0x4df   :  { %6300 = vmatprep.subr.bf16.mxu1 %v7385_v0 }
 0x4e5   :  { %6291 = vmatmul.mubr.msk.bf16.vlgmr.msra.gmra.mrb[20].mxu1 %vm573_vm1, %v840_v59 }
 0x4e6   :  { %6302 = vmatprep.mubr.msk.bf16.mxu1 %vm7386_vm0, %v7385_v0 }
 0x57b   :  { %v7746_v60 = vpop.f32.mrb[12].mxu1 }
 0x57c   :  { %v6274_v61 = vpop.f32.mrb[13].mxu1 }
 0x57d   :  { %v737_v62 = vpop.f32.mrb[14].mxu1 }
 0x57e   :  { %v6275_v63 = vpop.f32.mrb[15].mxu1 }
 0x5a5   :  { %v832_v1 = vpop.f32.mrb[8].mxu0 }
 0x5a6   :  { %v890_v2 = vmul.f32 0.25, %v832_v1  ;;  %v6286_v4 = vpop.f32.mrb[9].mxu0 }
 0x5a7   :  { %v835_v5 = vpop.f32.mrb[10].mxu0 }
 0x5a8   :  { %v6287_v6 = vpop.f32.mrb[11].mxu0  ;;  %v892_v9 = vsel %vm668_vm3, %v890_v2, -inf }
 0x5a9   :  { %893 = vmax.xlane.f32.xlu0 %v892_v9 }
 0x5b0   :  { %v7749_v10 = vpop.f32.mrb[16].mxu1 }
 0x5b1   :  { %v6280_v11 = vpop.f32.mrb[17].mxu1 }
 0x5b2   :  { %v783_v14 = vpop.f32.mrb[18].mxu1 }
 0x5b3   :  { %v6281_v15 = vpop.f32.mrb[19].mxu1 }
 0x5b8   :  { %v884_v16 = vpop.f32.mrb[20].mxu1 }
 0x5b9   :  { %v891_v17 = vmul.f32 0.25, %v884_v16  ;;  %v6292_v18 = vpop.f32.mrb[21].mxu1 }
 0x5ba   :  { %v887_v19 = vpop.f32.mrb[22].mxu1 }
 0x5bb   :  { %v6293_v20 = vpop.f32.mrb[23].mxu1  ;;  %v895_v21 = vsel %vm668_vm3, %v891_v17, -inf }
 0x5bc   :  { %896 = vmax.xlane.f32.xlu1 %v895_v21 }
 0x5cd   :  { %966 = vrot.lane.b32.xlu1 %v7727_v42, %s7388_s21 }
 0x5d1   :  { %1016 = vrot.lane.b32.xlu1 %v7684_v3, %s7389_s19 }
 0x5d5   :  { %1066 = vrot.lane.b32.xlu1 %v7689_v7, %s7389_s19 }
 0x5d9   :  { %1064 = vrot.lane.b32.xlu1 %v7702_v13, %s7389_s19 }
 0x636   :  { %v894_v22 = vpop.xlane.xlu0 %893 }
 0x637   :  { %v898_v23 = vsub.f32 %v890_v2, %v894_v22 }
 0x639   :  { %v900_v24 = vmul.f32 1.442695, %v898_v23 }
 0x63b   :  { %7002 = vpow2.f32 %v900_v24 }
 0x645   :  { %v7003_v25 = vpop.eup %7002 }
 0x646   :  { %v904_v26 = vsel %vm668_vm3, %v7003_v25, 0.0 }
 0x647   :  { %905 = vadd.xlane.f32.xlu0 %v904_v26 }
 0x649   :  { %v897_v27 = vpop.xlane.xlu1 %896 }
 0x64a   :  { %v899_v28 = vsub.f32 %v891_v17, %v897_v27 }
 0x64c   :  { %v902_v29 = vmul.f32 1.442695, %v899_v28 }
 0x64d   :  { %v967_v30 = vpop.permute.xlu1 %966 }
 0x64e   :  { %7004 = vpow2.f32 %v902_v29  ;;  %v972_v31 = vsel %vm696_vm2, %v967_v30, 0 }
 0x64f   :  { %6301 = vmatpush3.bf16.msra.mxu1 %v972_v31 }
 0x650   :  { %6312 = vmatprep.subr.bf16.mxu1 %v7385_v0 }
 0x651   :  { %v1017_v41 = vpop.permute.xlu1 %1016 }
 0x652   :  { %v1022_v52 = vsel %vm573_vm1, %v1017_v41, 0 }
 0x655   :  { %v1067_v50 = vpop.permute.xlu1 %1066 }
 0x656   :  { %v1072_v55 = vsel %vm573_vm1, %v1067_v50, 0 }
 0x658   :  { %v7005_v32 = vpop.eup %7004 }
 0x659   :  { %v907_v33 = vsel %vm668_vm3, %v7005_v32, 0.0  ;;  %v1065_v57 = vpop.permute.xlu1 %1064 }
 0x65a   :  { %908 = vadd.xlane.f32.xlu0 %v907_v33 }
 0x670   :  { %917 = vrot.lane.b32.xlu0 %v7700_v12, %s7388_s21 }
 0x674   :  { %1014 = vrot.lane.b32.xlu0 %v7691_v8, %s7389_s19 }
 0x6d4   :  { %v906_v35 = vpop.xlane.xlu0 %905 }
 0x6d5   :  { %7006 = vrcp.f32 %v906_v35 }
 0x6df   :  { %v7007_v36 = vpop.eup %7006 }
 0x6e0   :  { %v911_v38 = vmul.f32 %v7007_v36, %v7003_v25 }
 0x6e2   :  { %v914_v43 = vpack.c.bf16 %v911_v38, %v911_v38 }
 0x6e7   :  { %v909_v37 = vpop.xlane.xlu0 %908 }
 0x6e8   :  { %7008 = vrcp.f32 %v909_v37 }
 0x6eb   :  { %v918_v39 = vpop.permute.xlu0 %917 }
 0x6ec   :  { %v923_v40 = vsel %vm696_vm2, %v918_v39, 0 }
 0x6ed   :  { %6295 = vmatpush3.bf16.msra.mxu0 %v923_v40 }
 0x6ee   :  { %6306 = vmatprep.subr.bf16.mxu0 %v7385_v0 }
 0x6ef   :  { %v1015_v56 = vpop.permute.xlu0 %1014 }
 0x6f0   :  { %6297 = vmatmul.mubr.msk.bf16.vlgmr.msra.gmra.mrb[12].mxu0 %vm668_vm3, %v914_v43 }
 0x6f1   :  { %6308 = vmatprep.mubr.msk.bf16.mxu0 %vm7386_vm0, %v7385_v0 }
 0x6f2   :  { %v7009_v46 = vpop.eup %7008 }
 0x6f3   :  { %v913_v47 = vmul.f32 %v7009_v46, %v7005_v32 }
 0x6f5   :  { %v915_v54 = vpack.c.bf16 %v913_v47, %v913_v47 }
 0x6f6   :  { %6307 = vmatpush3.bf16.xpose.msra.mxu0 %v1022_v52 }
 0x6f7   :  { %6303 = vmatmul.mubr.msk.bf16.vlgmr.msra.gmra.mrb[24].mxu1 %vm668_vm3, %v915_v54  ;;  %6318 = vmatprep.subr.bf16.mxu0 %v7385_v0 }
 0x6f8   :  { %6313 = vmatpush3.bf16.xpose.msra.mxu1 %v1072_v55  ;;  %6314 = vmatprep.mubr.msk.bf16.mxu1 %vm7386_vm0, %v7385_v0 }
 0x6f9   :  { %6324 = vmatprep.subr.bf16.mxu1 %v7385_v0 }
 0x6fd   :  { %6309 = vmatmul.mubr.msk.bf16.vlgmr.msra.gmra.mrb[16].mxu0 %vm573_vm1, %v1015_v56 }
 0x6fe   :  { %6320 = vmatprep.mubr.msk.bf16.mxu0 %vm7386_vm0, %v7385_v0 }
 0x6ff   :  { %6315 = vmatmul.mubr.msk.bf16.vlgmr.msra.gmra.mrb[28].mxu1 %vm573_vm1, %v1065_v57 }
 0x700   :  { %6326 = vmatprep.mubr.msk.bf16.mxu1 %vm7386_vm0, %v7385_v0 }
 0x7c3   :  { %v7786_v58 = vpop.f32.mrb[12].mxu0 }
 0x7c4   :  { %v6298_v59 = vpop.f32.mrb[13].mxu0 }
 0x7c5   :  { %v962_v61 = vpop.f32.mrb[14].mxu0 }
 0x7c6   :  { %v6299_v62 = vpop.f32.mrb[15].mxu0 }
 0x7ca   :  { %v7788_v63 = vpop.f32.mrb[24].mxu1 }
 0x7cb   :  { %v6747_v1 = vpack.i.bf16 %v7788_v63, %v7786_v58  ;;  %v6304_v2 = vpop.f32.mrb[25].mxu1 }
 0x7cc   :  { %v1011_v4 = vpop.f32.mrb[26].mxu1 }
 0x7cd   :  { %v6305_v5 = vpop.f32.mrb[27].mxu1 }
 0x7d0   :  { %v1058_v6 = vpop.f32.mrb[16].mxu0 }
 0x7d1   :  { %v1114_v9 = vmul.f32 0.25, %v1058_v6  ;;  %v6310_v11 = vpop.f32.mrb[17].mxu0 }
 0x7d2   :  { %v1061_v14 = vpop.f32.mrb[18].mxu0  ;;  %v1108_v15 = vpop.f32.mrb[28].mxu1 }
 0x7d3   :  { %v1115_v16 = vmul.f32 0.25, %v1108_v15  ;;  %v6311_v17 = vpop.f32.mrb[19].mxu0  ;;  %v6316_v18 = vpop.f32.mrb[29].mxu1  ;;  %v1116_v19 = vsel %vm668_vm3, %v1114_v9, -inf }
 0x7d4   :  { %v1111_v20 = vpop.f32.mrb[30].mxu1  ;;  %1117 = vmax.xlane.f32.xlu0 %v1116_v19 }
 0x7d5   :  { %v6317_v21 = vpop.f32.mrb[31].mxu1  ;;  %v1119_v22 = vsel %vm668_vm3, %v1115_v16, -inf }
 0x7d6   :  { %1120 = vmax.xlane.f32.xlu1 %v1119_v22 }
 0x7e7   :  { %1188 = vrot.lane.b32.xlu1 %v7727_v42, %s7389_s19 }
 0x7eb   :  { %1238 = vrot.lane.b32.xlu1 %v7684_v3, %s7390_s1 }
 0x7ef   :  { %1288 = vrot.lane.b32.xlu1 %v7689_v7, %s7390_s1 }
 0x7f3   :  { %1286 = vrot.lane.b32.xlu1 %v7702_v13, %s7390_s1 }
 0x861   :  { %v1118_v23 = vpop.xlane.xlu0 %1117 }
 0x862   :  { %v1122_v24 = vsub.f32 %v1114_v9, %v1118_v23 }
 0x863   :  { %v1121_v25 = vpop.xlane.xlu1 %1120 }
 0x864   :  { %v1124_v26 = vmul.f32 1.442695, %v1122_v24  ;;  %v1123_v27 = vsub.f32 %v1115_v16, %v1121_v25 }
 0x866   :  { %7010 = vpow2.f32 %v1124_v26  ;;  %v1126_v28 = vmul.f32 1.442695, %v1123_v27 }
 0x867   :  { %v1189_v29 = vpop.permute.xlu1 %1188 }
 0x868   :  { %7012 = vpow2.f32 %v1126_v28  ;;  %v1194_v30 = vsel %vm696_vm2, %v1189_v29, 0 }
 0x869   :  { %6325 = vmatpush3.bf16.msra.mxu1 %v1194_v30 }
 0x86a   :  { %6336 = vmatprep.subr.bf16.mxu1 %v7385_v0 }
 0x86b   :  { %v1239_v41 = vpop.permute.xlu1 %1238 }
 0x86c   :  { %v1244_v54 = vsel %vm573_vm1, %v1239_v41, 0 }
 0x86f   :  { %v1289_v52 = vpop.permute.xlu1 %1288 }
 0x870   :  { %v7011_v31 = vpop.eup %7010  ;;  %v1294_v56 = vsel %vm573_vm1, %v1289_v52, 0 }
 0x871   :  { %v1128_v32 = vsel %vm668_vm3, %v7011_v31, 0.0 }
 0x872   :  { %v7013_v33 = vpop.eup %7012  ;;  %1129 = vadd.xlane.f32.xlu0 %v1128_v32 }
 0x873   :  { %v1131_v35 = vsel %vm668_vm3, %v7013_v33, 0.0  ;;  %v1287_v59 = vpop.permute.xlu1 %1286 }
 0x876   :  { %1132 = vadd.xlane.f32.xlu0 %v1131_v35 }
 0x88c   :  { %1140 = vrot.lane.b32.xlu0 %v7700_v12, %s7389_s19 }
 0x890   :  { %1236 = vrot.lane.b32.xlu0 %v7691_v8, %s7390_s1 }
 0x8ff   :  { %v1130_v36 = vpop.xlane.xlu0 %1129 }
 0x900   :  { %7014 = vrcp.f32 %v1130_v36 }
 0x903   :  { %v1133_v37 = vpop.xlane.xlu0 %1132 }
 0x904   :  { %7016 = vrcp.f32 %v1133_v37 }
 0x907   :  { %v1141_v38 = vpop.permute.xlu0 %1140 }
 0x908   :  { %v1146_v39 = vsel %vm696_vm2, %v1141_v38, 0 }
 0x909   :  { %6319 = vmatpush3.bf16.msra.mxu0 %v1146_v39 }
 0x90a   :  { %v7015_v40 = vpop.eup %7014  ;;  %6330 = vmatprep.subr.bf16.mxu0 %v7385_v0 }
 0x90b   :  { %v1135_v43 = vmul.f32 %v7015_v40, %v7011_v31  ;;  %v1237_v57 = vpop.permute.xlu0 %1236 }
 0x90d   :  { %v1138_v46 = vpack.c.bf16 %v1135_v43, %v1135_v43 }
 0x90e   :  { %v7017_v47 = vpop.eup %7016 }
 0x90f   :  { %6321 = vmatmul.mubr.msk.bf16.vlgmr.msra.gmra.mrb[20].mxu0 %vm668_vm3, %v1138_v46  ;;  %v1137_v50 = vmul.f32 %v7017_v47, %v7013_v33 }
 0x910   :  { %6332 = vmatprep.mubr.msk.bf16.mxu0 %vm7386_vm0, %v7385_v0 }
 0x911   :  { %v1139_v55 = vpack.c.bf16 %v1137_v50, %v1137_v50 }
 0x912   :  { %6331 = vmatpush3.bf16.xpose.msra.mxu0 %v1244_v54 }
 0x913   :  { %6327 = vmatmul.mubr.msk.bf16.vlgmr.msra.gmra.mrb[32].mxu1 %vm668_vm3, %v1139_v55  ;;  %6342 = vmatprep.subr.bf16.mxu0 %v7385_v0 }
 0x914   :  { %6337 = vmatpush3.bf16.xpose.msra.mxu1 %v1294_v56  ;;  %6338 = vmatprep.mubr.msk.bf16.mxu1 %vm7386_vm0, %v7385_v0 }
 0x915   :  { %6348 = vmatprep.subr.bf16.mxu1 %v7385_v0 }
 0x919   :  { %6333 = vmatmul.mubr.msk.bf16.vlgmr.msra.gmra.mrb[24].mxu0 %vm573_vm1, %v1237_v57 }
 0x91a   :  { %6344 = vmatprep.mubr.msk.bf16.mxu0 %vm7386_vm0, %v7385_v0 }
 0x91b   :  { %6339 = vmatmul.mubr.msk.bf16.vlgmr.msra.gmra.mrb[36].mxu1 %vm573_vm1, %v1287_v59 }
 0x91c   :  { %6350 = vmatprep.mubr.msk.bf16.mxu1 %vm7386_vm0, %v7385_v0 }
 0x9e2   :  { %v7828_v61 = vpop.f32.mrb[20].mxu0 }
 0x9e3   :  { %v6322_v62 = vpop.f32.mrb[21].mxu0 }
 0x9e4   :  { %v1185_v2 = vpop.f32.mrb[22].mxu0 }
 0x9e5   :  { %v6323_v4 = vpop.f32.mrb[23].mxu0 }
 0x9e6   :  { %v7830_v5 = vpop.f32.mrb[32].mxu1 }
 0x9e7   :  { %v6752_v6 = vpack.i.bf16 %v7830_v5, %v7828_v61  ;;  %v6328_v9 = vpop.f32.mrb[33].mxu1 }
 0x9e8   :  { %v1233_v11 = vpop.f32.mrb[34].mxu1 }
 0x9e9   :  { %v6329_v14 = vpop.f32.mrb[35].mxu1 }
 0x9ec   :  { %v1280_v15 = vpop.f32.mrb[24].mxu0 }
 0x9ed   :  { %v1336_v16 = vmul.f32 0.25, %v1280_v15  ;;  %v6334_v17 = vpop.f32.mrb[25].mxu0 }
 0x9ee   :  { %v1283_v18 = vpop.f32.mrb[26].mxu0  ;;  %v1330_v19 = vpop.f32.mrb[36].mxu1 }
 0x9ef   :  { %v1337_v20 = vmul.f32 0.25, %v1330_v19  ;;  %v6335_v21 = vpop.f32.mrb[27].mxu0  ;;  %v6340_v22 = vpop.f32.mrb[37].mxu1  ;;  %v1338_v23 = vsel %vm668_vm3, %v1336_v16, -inf }
 0x9f0   :  { %v1333_v24 = vpop.f32.mrb[38].mxu1  ;;  %1339 = vmax.xlane.f32.xlu0 %v1338_v23 }
 0x9f1   :  { %v6341_v25 = vpop.f32.mrb[39].mxu1  ;;  %v1341_v26 = vsel %vm668_vm3, %v1337_v20, -inf }
 0x9f2   :  { %1342 = vmax.xlane.f32.xlu1 %v1341_v26 }
 0xa03   :  { %1410 = vrot.lane.b32.xlu1 %v7727_v42, %s7390_s1 }
 0xa07   :  { %1460 = vrot.lane.b32.xlu1 %v7684_v3, %s7376_s29 }
 0xa0b   :  { %1510 = vrot.lane.b32.xlu1 %v7689_v7, %s7376_s29 }
 0xa0f   :  { %1508 = vrot.lane.b32.xlu1 %v7702_v13, %s7376_s29 }
 0xa7d   :  { %v1340_v27 = vpop.xlane.xlu0 %1339 }
 0xa7e   :  { %v1344_v28 = vsub.f32 %v1336_v16, %v1340_v27 }
 0xa7f   :  { %v1343_v29 = vpop.xlane.xlu1 %1342 }
 0xa80   :  { %v1346_v30 = vmul.f32 1.442695, %v1344_v28  ;;  %v1345_v31 = vsub.f32 %v1337_v20, %v1343_v29 }
 0xa82   :  { %7018 = vpow2.f32 %v1346_v30  ;;  %v1348_v32 = vmul.f32 1.442695, %v1345_v31 }
 0xa83   :  { %v1411_v33 = vpop.permute.xlu1 %1410 }
 0xa84   :  { %7020 = vpow2.f32 %v1348_v32  ;;  %v1416_v35 = vsel %vm696_vm2, %v1411_v33, 0 }
 0xa85   :  { %6349 = vmatpush3.bf16.msra.mxu1 %v1416_v35 }
 0xa86   :  { %6360 = vmatprep.subr.bf16.mxu1 %v7385_v0 }
 0xa87   :  { %v1461_v50 = vpop.permute.xlu1 %1460 }
 0xa88   :  { %v1466_v59 = vsel %vm573_vm1, %v1461_v50, 0 }
 0xa8b   :  { %v1511_v57 = vpop.permute.xlu1 %1510 }
 0xa8c   :  { %v7019_v36 = vpop.eup %7018  ;;  %v1516_v2 = vsel %vm573_vm1, %v1511_v57, 0 }
 0xa8d   :  { %v1350_v37 = vsel %vm668_vm3, %v7019_v36, 0.0 }
 0xa8e   :  { %v7021_v38 = vpop.eup %7020  ;;  %1351 = vadd.xlane.f32.xlu0 %v1350_v37 }
 0xa8f   :  { %v1353_v39 = vsel %vm668_vm3, %v7021_v38, 0.0  ;;  %v1509_v9 = vpop.permute.xlu1 %1508 }
 0xa92   :  { %1354 = vadd.xlane.f32.xlu0 %v1353_v39 }
 0xaa8   :  { %1362 = vrot.lane.b32.xlu0 %v7700_v12, %s7390_s1 }
 0xaac   :  { %1458 = vrot.lane.b32.xlu0 %v7691_v8, %s7376_s29 }
 0xb1b   :  { %v1352_v40 = vpop.xlane.xlu0 %1351 }
 0xb1c   :  { %7022 = vrcp.f32 %v1352_v40 }
 0xb1f   :  { %v1355_v41 = vpop.xlane.xlu0 %1354 }
 0xb20   :  { %7024 = vrcp.f32 %v1355_v41 }
 0xb23   :  { %v1363_v43 = vpop.permute.xlu0 %1362 }
 0xb24   :  { %v1368_v46 = vsel %vm696_vm2, %v1363_v43, 0 }
 0xb25   :  { %6343 = vmatpush3.bf16.msra.mxu0 %v1368_v46 }
 0xb26   :  { %v7023_v47 = vpop.eup %7022  ;;  %6354 = vmatprep.subr.bf16.mxu0 %v7385_v0 }
 0xb27   :  { %v1357_v52 = vmul.f32 %v7023_v47, %v7019_v36  ;;  %v1459_v4 = vpop.permute.xlu0 %1458 }
 0xb29   :  { %v1360_v54 = vpack.c.bf16 %v1357_v52, %v1357_v52 }
 0xb2a   :  { %v7025_v55 = vpop.eup %7024 }
 0xb2b   :  { %6345 = vmatmul.mubr.msk.bf16.vlgmr.msra.gmra.mrb[28].mxu0 %vm668_vm3, %v1360_v54  ;;  %v1359_v56 = vmul.f32 %v7025_v55, %v7021_v38 }
 0xb2c   :  { %6356 = vmatprep.mubr.msk.bf16.mxu0 %vm7386_vm0, %v7385_v0 }
 0xb2d   :  { %v1361_v62 = vpack.c.bf16 %v1359_v56, %v1359_v56 }
 0xb2e   :  { %6355 = vmatpush3.bf16.xpose.msra.mxu0 %v1466_v59 }
 0xb2f   :  { %6351 = vmatmul.mubr.msk.bf16.vlgmr.msra.gmra.mrb[40].mxu1 %vm668_vm3, %v1361_v62  ;;  %6366 = vmatprep.subr.bf16.mxu0 %v7385_v0 }
 0xb30   :  { %6361 = vmatpush3.bf16.xpose.msra.mxu1 %v1516_v2  ;;  %6362 = vmatprep.mubr.msk.bf16.mxu1 %vm7386_vm0, %v7385_v0 }
 0xb31   :  { %6372 = vmatprep.subr.bf16.mxu1 %v7385_v0 }
 0xb35   :  { %6357 = vmatmul.mubr.msk.bf16.vlgmr.msra.gmra.mrb[32].mxu0 %vm573_vm1, %v1459_v4 }
 0xb36   :  { %6368 = vmatprep.mubr.msk.bf16.mxu0 %vm7386_vm0, %v7385_v0 }
 0xb37   :  { %6363 = vmatmul.mubr.msk.bf16.vlgmr.msra.gmra.mrb[44].mxu1 %vm573_vm1, %v1509_v9 }
 0xb38   :  { %6374 = vmatprep.mubr.msk.bf16.mxu1 %vm7386_vm0, %v7385_v0 }
 0xbfe   :  { %v7870_v11 = vpop.f32.mrb[28].mxu0 }
 0xbff   :  { %v6346_v14 = vpop.f32.mrb[29].mxu0 }
 0xc00   :  { %v1407_v15 = vpop.f32.mrb[30].mxu0 }
 0xc01   :  { %v6347_v16 = vpop.f32.mrb[31].mxu0 }
 0xc02   :  { %v7872_v17 = vpop.f32.mrb[40].mxu1 }
 0xc03   :  { %v6757_v18 = vpack.i.bf16 %v7872_v17, %v7870_v11  ;;  %v6352_v19 = vpop.f32.mrb[41].mxu1 }
 0xc04   :  { %v1455_v20 = vpop.f32.mrb[42].mxu1 }
 0xc05   :  { %v6353_v21 = vpop.f32.mrb[43].mxu1 }
 0xc08   :  { %v1502_v22 = vpop.f32.mrb[32].mxu0 }
 0xc09   :  { %v1558_v23 = vmul.f32 0.25, %v1502_v22  ;;  %v6358_v24 = vpop.f32.mrb[33].mxu0 }
 0xc0a   :  { %v1505_v25 = vpop.f32.mrb[34].mxu0  ;;  %v1552_v26 = vpop.f32.mrb[44].mxu1 }
 0xc0b   :  { %v1559_v27 = vmul.f32 0.25, %v1552_v26  ;;  %v6359_v28 = vpop.f32.mrb[35].mxu0  ;;  %v6364_v29 = vpop.f32.mrb[45].mxu1  ;;  %v1560_v30 = vsel %vm668_vm3, %v1558_v23, -inf }
 0xc0c   :  { %v1555_v31 = vpop.f32.mrb[46].mxu1  ;;  %1561 = vmax.xlane.f32.xlu0 %v1560_v30 }
 0xc0d   :  { %v6365_v32 = vpop.f32.mrb[47].mxu1  ;;  %v1563_v33 = vsel %vm668_vm3, %v1559_v27, -inf }
 0xc0e   :  { %1564 = vmax.xlane.f32.xlu1 %v1563_v33 }
 0xc1f   :  { %1632 = vrot.lane.b32.xlu1 %v7727_v42, %s7376_s29 }
 0xc23   :  { %1682 = vrot.lane.b32.xlu1 %v7684_v3, %s7391_s20 }
 0xc27   :  { %1732 = vrot.lane.b32.xlu1 %v7689_v7, %s7391_s20 }
 0xc2b   :  { %1730 = vrot.lane.b32.xlu1 %v7702_v13, %s7391_s20 }
 0xc99   :  { %v1562_v35 = vpop.xlane.xlu0 %1561 }
 0xc9a   :  { %v1566_v36 = vsub.f32 %v1558_v23, %v1562_v35 }
 0xc9b   :  { %v1565_v37 = vpop.xlane.xlu1 %1564 }
 0xc9c   :  { %v1568_v38 = vmul.f32 1.442695, %v1566_v36  ;;  %v1567_v39 = vsub.f32 %v1559_v27, %v1565_v37 }
 0xc9e   :  { %7026 = vpow2.f32 %v1568_v38  ;;  %v1570_v40 = vmul.f32 1.442695, %v1567_v39 }
 0xc9f   :  { %v1633_v41 = vpop.permute.xlu1 %1632 }
 0xca0   :  { %7028 = vpow2.f32 %v1570_v40  ;;  %v1638_v43 = vsel %vm696_vm2, %v1633_v41, 0 }
 0xca1   :  { %6373 = vmatpush3.bf16.msra.mxu1 %v1638_v43 }
 0xca2   :  { %6384 = vmatprep.subr.bf16.mxu1 %v7385_v0 }
 0xca3   :  { %v1683_v62 = vpop.permute.xlu1 %1682 }
 0xca4   :  { %v1688_v16 = vsel %vm573_vm1, %v1683_v62, 0 }
 0xca7   :  { %v1733_v15 = vpop.permute.xlu1 %1732 }
 0xca8   :  { %v7027_v46 = vpop.eup %7026  ;;  %v1738_v20 = vsel %vm573_vm1, %v1733_v15, 0 }
 0xca9   :  { %v1572_v47 = vsel %vm668_vm3, %v7027_v46, 0.0 }
 0xcaa   :  { %v7029_v50 = vpop.eup %7028  ;;  %1573 = vadd.xlane.f32.xlu0 %v1572_v47 }
 0xcab   :  { %v1575_v52 = vsel %vm668_vm3, %v7029_v50, 0.0  ;;  %v1731_v22 = vpop.permute.xlu1 %1730 }
 0xcae   :  { %1576 = vadd.xlane.f32.xlu0 %v1575_v52 }
 0xcc4   :  { %1584 = vrot.lane.b32.xlu0 %v7700_v12, %s7376_s29 }
 0xcc8   :  { %1680 = vrot.lane.b32.xlu0 %v7691_v8, %s7391_s20 }
 0xd37   :  { %v1574_v54 = vpop.xlane.xlu0 %1573 }
 0xd38   :  { %7030 = vrcp.f32 %v1574_v54 }
 0xd3b   :  { %v1577_v55 = vpop.xlane.xlu0 %1576 }
 0xd3c   :  { %7032 = vrcp.f32 %v1577_v55 }
 0xd3f   :  { %v1585_v56 = vpop.permute.xlu0 %1584 }
 0xd40   :  { %v1590_v57 = vsel %vm696_vm2, %v1585_v56, 0 }
 0xd41   :  { %6367 = vmatpush3.bf16.msra.mxu0 %v1590_v57 }
 0xd42   :  { %v7031_v59 = vpop.eup %7030  ;;  %6378 = vmatprep.subr.bf16.mxu0 %v7385_v0 }
 0xd43   :  { %v1579_v2 = vmul.f32 %v7031_v59, %v7027_v46  ;;  %v1681_v21 = vpop.permute.xlu0 %1680 }
 0xd45   :  { %v1582_v4 = vpack.c.bf16 %v1579_v2, %v1579_v2 }
 0xd46   :  { %v7033_v9 = vpop.eup %7032 }
 0xd47   :  { %6369 = vmatmul.mubr.msk.bf16.vlgmr.msra.gmra.mrb[36].mxu0 %vm668_vm3, %v1582_v4  ;;  %v1581_v14 = vmul.f32 %v7033_v9, %v7029_v50 }
 0xd48   :  { %6380 = vmatprep.mubr.msk.bf16.mxu0 %vm7386_vm0, %v7385_v0 }
 0xd49   :  { %v1583_v19 = vpack.c.bf16 %v1581_v14, %v1581_v14 }
 0xd4a   :  { %6379 = vmatpush3.bf16.xpose.msra.mxu0 %v1688_v16 }
 0xd4b   :  { %6375 = vmatmul.mubr.msk.bf16.vlgmr.msra.gmra.mrb[48].mxu1 %vm668_vm3, %v1583_v19  ;;  %6390 = vmatprep.subr.bf16.mxu0 %v7385_v0 }
 0xd4c   :  { %6385 = vmatpush3.bf16.xpose.msra.mxu1 %v1738_v20  ;;  %6386 = vmatprep.mubr.msk.bf16.mxu1 %vm7386_vm0, %v7385_v0 }
 0xd4d   :  { %6396 = vmatprep.subr.bf16.mxu1 %v7385_v0 }
 0xd51   :  { %6381 = vmatmul.mubr.msk.bf16.vlgmr.msra.gmra.mrb[40].mxu0 %vm573_vm1, %v1681_v21 }
 0xd52   :  { %6392 = vmatprep.mubr.msk.bf16.mxu0 %vm7386_vm0, %v7385_v0 }
 0xd53   :  { %6387 = vmatmul.mubr.msk.bf16.vlgmr.msra.gmra.mrb[52].mxu1 %vm573_vm1, %v1731_v22 }
 0xd54   :  { %6398 = vmatprep.mubr.msk.bf16.mxu1 %vm7386_vm0, %v7385_v0 }
 0xe1a   :  { %v7912_v23 = vpop.f32.mrb[36].mxu0 }
 0xe1b   :  { %v6370_v24 = vpop.f32.mrb[37].mxu0 }
 0xe1c   :  { %v1629_v25 = vpop.f32.mrb[38].mxu0 }
 0xe1d   :  { %v6371_v26 = vpop.f32.mrb[39].mxu0 }
 0xe1e   :  { %v7914_v27 = vpop.f32.mrb[48].mxu1 }
 0xe1f   :  { %v6762_v28 = vpack.i.bf16 %v7914_v27, %v7912_v23  ;;  %v6376_v29 = vpop.f32.mrb[49].mxu1 }
 0xe20   :  { %v1677_v30 = vpop.f32.mrb[50].mxu1 }
 0xe21   :  { %v6377_v31 = vpop.f32.mrb[51].mxu1 }
 0xe24   :  { %v1724_v32 = vpop.f32.mrb[40].mxu0 }
 0xe25   :  { %v1780_v33 = vmul.f32 0.25, %v1724_v32  ;;  %v6382_v35 = vpop.f32.mrb[41].mxu0 }
 0xe26   :  { %v1727_v36 = vpop.f32.mrb[42].mxu0  ;;  %v1774_v37 = vpop.f32.mrb[52].mxu1 }
 0xe27   :  { %v1781_v38 = vmul.f32 0.25, %v1774_v37  ;;  %v6383_v39 = vpop.f32.mrb[43].mxu0  ;;  %v6388_v40 = vpop.f32.mrb[53].mxu1  ;;  %v1782_v41 = vsel %vm668_vm3, %v1780_v33, -inf }
 0xe28   :  { %v1777_v43 = vpop.f32.mrb[54].mxu1  ;;  %1783 = vmax.xlane.f32.xlu0 %v1782_v41 }
 0xe29   :  { %v6389_v46 = vpop.f32.mrb[55].mxu1  ;;  %v1785_v47 = vsel %vm668_vm3, %v1781_v38, -inf }
 0xe2a   :  { %1786 = vmax.xlane.f32.xlu1 %v1785_v47 }
 0xe3b   :  { %1854 = vrot.lane.b32.xlu1 %v7727_v42, %s7391_s20 }
 0xe3f   :  { %1904 = vrot.lane.b32.xlu1 %v7684_v3, %s7392_s22 }
 0xe43   :  { %1954 = vrot.lane.b32.xlu1 %v7689_v7, %s7392_s22 }
 0xe47   :  { %1952 = vrot.lane.b32.xlu1 %v7702_v13, %s7392_s22 }
 0xeb5   :  { %v1784_v50 = vpop.xlane.xlu0 %1783 }
 0xeb6   :  { %v1788_v52 = vsub.f32 %v1780_v33, %v1784_v50 }
 0xeb7   :  { %v1787_v54 = vpop.xlane.xlu1 %1786 }
 0xeb8   :  { %v1790_v55 = vmul.f32 1.442695, %v1788_v52  ;;  %v1789_v56 = vsub.f32 %v1781_v38, %v1787_v54 }
 0xeba   :  { %7034 = vpow2.f32 %v1790_v55  ;;  %v1792_v57 = vmul.f32 1.442695, %v1789_v56 }
 0xebb   :  { %v1855_v59 = vpop.permute.xlu1 %1854 }
 0xebc   :  { %7036 = vpow2.f32 %v1792_v57  ;;  %v1860_v62 = vsel %vm696_vm2, %v1855_v59, 0 }
 0xebd   :  { %6397 = vmatpush3.bf16.msra.mxu1 %v1860_v62 }
 0xebe   :  { %6408 = vmatprep.subr.bf16.mxu1 %v7385_v0 }
 0xebf   :  { %v1905_v22 = vpop.permute.xlu1 %1904 }
 0xec0   :  { %v1910_v31 = vsel %vm573_vm1, %v1905_v22, 0 }
 0xec3   :  { %v1955_v30 = vpop.permute.xlu1 %1954 }
 0xec4   :  { %v7035_v2 = vpop.eup %7034  ;;  %v1960_v33 = vsel %vm573_vm1, %v1955_v30, 0 }
 0xec5   :  { %v1794_v4 = vsel %vm668_vm3, %v7035_v2, 0.0 }
 0xec6   :  { %v7037_v9 = vpop.eup %7036  ;;  %1795 = vadd.xlane.f32.xlu0 %v1794_v4 }
 0xec7   :  { %v1797_v14 = vsel %vm668_vm3, %v7037_v9, 0.0  ;;  %v1953_v36 = vpop.permute.xlu1 %1952 }
 0xeca   :  { %1798 = vadd.xlane.f32.xlu0 %v1797_v14 }
 0xee0   :  { %1806 = vrot.lane.b32.xlu0 %v7700_v12, %s7391_s20 }
 0xee4   :  { %1902 = vrot.lane.b32.xlu0 %v7691_v8, %s7392_s22 }
 0xf53   :  { %v1796_v15 = vpop.xlane.xlu0 %1795 }
 0xf54   :  { %7038 = vrcp.f32 %v1796_v15 }
 0xf57   :  { %v1799_v16 = vpop.xlane.xlu0 %1798 }
 0xf58   :  { %7040 = vrcp.f32 %v1799_v16 }
 0xf5b   :  { %v1807_v19 = vpop.permute.xlu0 %1806 }
 0xf5c   :  { %v1812_v20 = vsel %vm696_vm2, %v1807_v19, 0 }
 0xf5d   :  { %6391 = vmatpush3.bf16.msra.mxu0 %v1812_v20 }
 0xf5e   :  { %v7039_v21 = vpop.eup %7038  ;;  %6402 = vmatprep.subr.bf16.mxu0 %v7385_v0 }
 0xf5f   :  { %v1801_v24 = vmul.f32 %v7039_v21, %v7035_v2  ;;  %v1903_v35 = vpop.permute.xlu0 %1902 }
 0xf61   :  { %v1804_v25 = vpack.c.bf16 %v1801_v24, %v1801_v24 }
 0xf62   :  { %v7041_v26 = vpop.eup %7040 }
 0xf63   :  { %6393 = vmatmul.mubr.msk.bf16.vlgmr.msra.gmra.mrb[44].mxu0 %vm668_vm3, %v1804_v25  ;;  %v1803_v29 = vmul.f32 %v7041_v26, %v7037_v9 }
 0xf64   :  { %6404 = vmatprep.mubr.msk.bf16.mxu0 %vm7386_vm0, %v7385_v0 }
 0xf65   :  { %v1805_v32 = vpack.c.bf16 %v1803_v29, %v1803_v29 }
 0xf66   :  { %6403 = vmatpush3.bf16.xpose.msra.mxu0 %v1910_v31 }
 0xf67   :  { %6399 = vmatmul.mubr.msk.bf16.vlgmr.msra.gmra.mrb[56].mxu1 %vm668_vm3, %v1805_v32  ;;  %6414 = vmatprep.subr.bf16.mxu0 %v7385_v0 }
 0xf68   :  { %6409 = vmatpush3.bf16.xpose.msra.mxu1 %v1960_v33  ;;  %6410 = vmatprep.mubr.msk.bf16.mxu1 %vm7386_vm0, %v7385_v0 }
 0xf69   :  { %6420 = vmatprep.subr.bf16.mxu1 %v7385_v0 }
 0xf6d   :  { %6405 = vmatmul.mubr.msk.bf16.vlgmr.msra.gmra.mrb[48].mxu0 %vm573_vm1, %v1903_v35 }
 0xf6e   :  { %6416 = vmatprep.mubr.msk.bf16.mxu0 %vm7386_vm0, %v7385_v0 }
 0xf6f   :  { %6411 = vmatmul.mubr.msk.bf16.vlgmr.msra.gmra.mrb[60].mxu1 %vm573_vm1, %v1953_v36 }
 0xf70   :  { %6422 = vmatprep.mubr.msk.bf16.mxu1 %vm7386_vm0, %v7385_v0 }
0x1036   :  { %v7954_v37 = vpop.f32.mrb[44].mxu0 }
0x1037   :  { %v6394_v38 = vpop.f32.mrb[45].mxu0 }
0x1038   :  { %v1851_v39 = vpop.f32.mrb[46].mxu0 }
0x1039   :  { %v6395_v40 = vpop.f32.mrb[47].mxu0 }
0x103a   :  { %v7956_v41 = vpop.f32.mrb[56].mxu1 }
0x103b   :  { %v6767_v43 = vpack.i.bf16 %v7956_v41, %v7954_v37  ;;  %v6400_v46 = vpop.f32.mrb[57].mxu1  ;;  %v6858_v37 = vld [vmem:[#allocation11] sm:$0xff]   ;;  %v6859_v41 = vld [vmem:[#allocation11 + $0x8] sm:$0xff]  }
0x103c   :  { %v1899_v47 = vpop.f32.mrb[58].mxu1 }
0x103d   :  { %v6401_v50 = vpop.f32.mrb[59].mxu1 }
0x1040   :  { %v1946_v52 = vpop.f32.mrb[48].mxu0 }
0x1041   :  { %v2002_v54 = vmul.f32 0.25, %v1946_v52  ;;  %v6406_v55 = vpop.f32.mrb[49].mxu0 }
0x1042   :  { %v1949_v56 = vpop.f32.mrb[50].mxu0  ;;  %v1996_v57 = vpop.f32.mrb[60].mxu1 }
0x1043   :  { %v2003_v59 = vmul.f32 0.25, %v1996_v57  ;;  %v6407_v62 = vpop.f32.mrb[51].mxu0  ;;  %v6412_v2 = vpop.f32.mrb[61].mxu1  ;;  %v2004_v4 = vsel %vm668_vm3, %v2002_v54, -inf }
0x1044   :  { %v1999_v9 = vpop.f32.mrb[62].mxu1  ;;  %2005 = vmax.xlane.f32.xlu0 %v2004_v4 }
0x1045   :  { %v6413_v14 = vpop.f32.mrb[63].mxu1  ;;  %v2007_v15 = vsel %vm668_vm3, %v2003_v59, -inf }
0x1046   :  { %2008 = vmax.xlane.f32.xlu1 %v2007_v15 }
0x1057   :  { %2076 = vrot.lane.b32.xlu1 %v7727_v42, %s7392_s22 }
0x105b   :  { %2126 = vrot.lane.b32.xlu1 %v7684_v3, %s7393_s4 }
0x105f   :  { %2176 = vrot.lane.b32.xlu1 %v7689_v7, %s7393_s4 }
0x1063   :  { %2174 = vrot.lane.b32.xlu1 %v7702_v13, %s7393_s4 }
0x10d1   :  { %v2006_v16 = vpop.xlane.xlu0 %2005 }
0x10d2   :  { %v2010_v19 = vsub.f32 %v2002_v54, %v2006_v16 }
0x10d3   :  { %v2009_v20 = vpop.xlane.xlu1 %2008 }
0x10d4   :  { %v2012_v21 = vmul.f32 1.442695, %v2010_v19  ;;  %v2011_v22 = vsub.f32 %v2003_v59, %v2009_v20 }
0x10d6   :  { %7042 = vpow2.f32 %v2012_v21  ;;  %v2014_v24 = vmul.f32 1.442695, %v2011_v22 }
0x10d7   :  { %v2077_v25 = vpop.permute.xlu1 %2076 }
0x10d8   :  { %7044 = vpow2.f32 %v2014_v24  ;;  %v2082_v26 = vsel %vm696_vm2, %v2077_v25, 0 }
0x10d9   :  { %6421 = vmatpush3.bf16.msra.mxu1 %v2082_v26 }
0x10da   :  { %6432 = vmatprep.subr.bf16.mxu1 %v7385_v0 }
0x10db   :  { %v2127_v36 = vpop.permute.xlu1 %2126 }
0x10df   :  { %v2177_v47 = vpop.permute.xlu1 %2176 }
0x10e0   :  { %v7043_v3 = vpop.eup %7042  ;;  %v2182_v52 = vsel %vm573_vm1, %v2177_v47, 0  ;;  %v6863_v47 = vld [vmem:[#allocation11 + $0x28] sm:$0xff]  }
0x10e1   :  { %v2016_v7 = vsel %vm668_vm3, %v7043_v3, 0.0 }
0x10e2   :  { %v7045_v29 = vpop.eup %7044  ;;  %2017 = vadd.xlane.f32.xlu0 %v2016_v7 }
0x10e3   :  { %v2019_v13 = vsel %vm668_vm3, %v7045_v29, 0.0  ;;  %v2175_v55 = vpop.permute.xlu1 %2174 }
0x10e6   :  { %2020 = vadd.xlane.f32.xlu0 %v2019_v13 }
0x10fc   :  { %2028 = vrot.lane.b32.xlu0 %v7700_v12, %s7392_s22 }
0x1100   :  { %2124 = vrot.lane.b32.xlu0 %v7691_v8, %s7393_s4  ;;  %v2132_v8 = vsel %vm573_vm1, %v2127_v36, 0 }
0x116f   :  { %v2018_v30 = vpop.xlane.xlu0 %2017 }
0x1170   :  { %7046 = vrcp.f32 %v2018_v30 }
0x1173   :  { %v2021_v31 = vpop.xlane.xlu0 %2020 }
0x1174   :  { %7048 = vrcp.f32 %v2021_v31 }
0x1177   :  { %v2029_v32 = vpop.permute.xlu0 %2028 }
0x1178   :  { %v2034_v33 = vsel %vm696_vm2, %v2029_v32, 0 }
0x1179   :  { %6415 = vmatpush3.bf16.msra.mxu0 %v2034_v33 }
0x117a   :  { %v7047_v35 = vpop.eup %7046  ;;  %6426 = vmatprep.subr.bf16.mxu0 %v7385_v0 }
0x117b   :  { %v2023_v38 = vmul.f32 %v7047_v35, %v7043_v3  ;;  %v2125_v54 = vpop.permute.xlu0 %2124 }
0x117d   :  { %v2026_v39 = vpack.c.bf16 %v2023_v38, %v2023_v38 }
0x117e   :  { %v7049_v40 = vpop.eup %7048 }
0x117f   :  { %6417 = vmatmul.mubr.msk.bf16.vlgmr.msra.gmra.mrb[52].mxu0 %vm668_vm3, %v2026_v39  ;;  %v2025_v46 = vmul.f32 %v7049_v40, %v7045_v29  ;;  %v6861_v40 = vld [vmem:[#allocation11 + $0x18] sm:$0xff]  }
0x1180   :  { %6428 = vmatprep.mubr.msk.bf16.mxu0 %vm7386_vm0, %v7385_v0 }
0x1181   :  { %v2027_v50 = vpack.c.bf16 %v2025_v46, %v2025_v46  ;;  %v6862_v46 = vld [vmem:[#allocation11 + $0x20] sm:$0xff]  }
0x1182   :  { %6427 = vmatpush3.bf16.xpose.msra.mxu0 %v2132_v8  ;;  %v6864_v8 = vld [vmem:[#allocation11 + $0x30] sm:$0xff]  }
0x1183   :  { %6423 = vmatmul.mubr.msk.bf16.vlgmr.msra.gmra.mrb[64].mxu1 %vm668_vm3, %v2027_v50  ;;  %6438 = vmatprep.subr.bf16.mxu0 %v7385_v0  ;;  %v6865_v50 = vld [vmem:[#allocation11 + $0x38] sm:$0xff]  }
0x1184   :  { %6433 = vmatpush3.bf16.xpose.msra.mxu1 %v2182_v52  ;;  %6434 = vmatprep.mubr.msk.bf16.mxu1 %vm7386_vm0, %v7385_v0 }
0x1185   :  { %6444 = vmatprep.subr.bf16.mxu1 %v7385_v0 }
0x1189   :  { %6429 = vmatmul.mubr.msk.bf16.vlgmr.msra.gmra.mrb[56].mxu0 %vm573_vm1, %v2125_v54 }
0x118a   :  { %6440 = vmatprep.mubr.msk.bf16.mxu0 %vm7386_vm0, %v7385_v0 }
0x118b   :  { %6435 = vmatmul.mubr.msk.bf16.vlgmr.msra.gmra.mrb[68].mxu1 %vm573_vm1, %v2175_v55 }
0x118c   :  { %6446 = vmatprep.mubr.msk.bf16.mxu1 %vm7386_vm0, %v7385_v0 }
0x1252   :  { %v2070_v56 = vpop.f32.mrb[52].mxu0 }
0x1253   :  { %v6418_v57 = vpop.f32.mrb[53].mxu0 }
0x1254   :  { %v2073_v59 = vpop.f32.mrb[54].mxu0 }
0x1255   :  { %v6419_v62 = vpop.f32.mrb[55].mxu0 }
0x1256   :  { %v2118_v2 = vpop.f32.mrb[64].mxu1 }
0x1257   :  { %v6772_v4 = vpack.i.bf16 %v2118_v2, %v2070_v56  ;;  %v6424_v9 = vpop.f32.mrb[65].mxu1 }
0x1258   :  { %v2121_v14 = vpop.f32.mrb[66].mxu1 }
0x1259   :  { %v6425_v15 = vpop.f32.mrb[67].mxu1 }
0x125c   :  { %v2168_v16 = vpop.f32.mrb[56].mxu0 }
0x125d   :  { %v2224_v19 = vmul.f32 0.25, %v2168_v16  ;;  %v6430_v20 = vpop.f32.mrb[57].mxu0 }
0x125e   :  { %v2171_v21 = vpop.f32.mrb[58].mxu0  ;;  %v2218_v22 = vpop.f32.mrb[68].mxu1 }
0x125f   :  { %v2225_v24 = vmul.f32 0.25, %v2218_v22  ;;  %v6431_v25 = vpop.f32.mrb[59].mxu0  ;;  %v6436_v26 = vpop.f32.mrb[69].mxu1  ;;  %v2226_v3 = vsel %vm668_vm3, %v2224_v19, -inf }
0x1260   :  { %v2221_v7 = vpop.f32.mrb[70].mxu1  ;;  %2227 = vmax.xlane.f32.xlu0 %v2226_v3 }
0x1261   :  { %v6437_v29 = vpop.f32.mrb[71].mxu1  ;;  %v2229_v13 = vsel %vm668_vm3, %v2225_v24, -inf }
0x1262   :  { %2230 = vmax.xlane.f32.xlu1 %v2229_v13 }
0x1273   :  { %2298 = vrot.lane.b32.xlu1 %v7727_v42, %s7393_s4 }
0x1277   :  { %6748 = vrot.lane.b32.xlu1 %v6747_v1, %s7393_s4 }
0x127b   :  { %6753 = vrot.lane.b32.xlu1 %v6752_v6, %s7392_s22 }
0x127f   :  { %6763 = vrot.lane.b32.xlu1 %v6762_v28, %s7376_s29 }
0x1283   :  { %6773 = vrot.lane.b32.xlu1 %v6772_v4, %s7389_s19 }
0x12ed   :  { %v2228_v30 = vpop.xlane.xlu0 %2227 }
0x12ee   :  { %v2232_v31 = vsub.f32 %v2224_v19, %v2228_v30 }
0x12ef   :  { %v2231_v42 = vpop.xlane.xlu1 %2230 }
0x12f0   :  { %v2234_v32 = vmul.f32 1.442695, %v2232_v31  ;;  %v2233_v33 = vsub.f32 %v2225_v24, %v2231_v42 }
0x12f2   :  { %7050 = vpow2.f32 %v2234_v32  ;;  %v2236_v58 = vmul.f32 1.442695, %v2233_v33 }
0x12f3   :  { %v2299_v63 = vpop.permute.xlu1 %2298 }
0x12f4   :  { %7052 = vpow2.f32 %v2236_v58  ;;  %v2304_v1 = vsel %vm696_vm2, %v2299_v63, 0 }
0x12f5   :  { %6445 = vmatpush3.bf16.msra.mxu1 %v2304_v1 }
0x12f7   :  { %v6749_v9 = vpop.permute.xlu1 %6748 }
0x12f8   :  { %v6751_v16 = vunpack.i.h.bf16 %v6749_v9  ;;  %v6750_v19 = vunpack.i.l.bf16 %v6749_v9  ;;  %v6872_v9 = vld [vmem:[#allocation13 + $0x20] ss:$8 sps:$4 sm:$0xff]  }
0x12fa   :  { %v2403_v3 = vsel %vm573_vm1, %v7749_v10, %v6751_v16  ;;  %v2402_v7 = vsel %vm573_vm1, %v7746_v60, %v6750_v19  ;;  %v6880_v16 = vld [vmem:[#allocation13 + $0x44] ss:$8 sps:$4 sm:$0xff]   ;;  %v6878_v19 = vld [vmem:[#allocation13 + $0x40] ss:$8 sps:$4 sm:$0xff]  }
0x12fb   :  { %v6754_v14 = vpop.permute.xlu1 %6753 }
0x12fc   :  { %v7051_v61 = vpop.eup %7050  ;;  %v6756_v20 = vunpack.i.h.bf16 %v6754_v14  ;;  %v6755_v21 = vunpack.i.l.bf16 %v6754_v14  ;;  %v6877_v14 = vld [vmem:[#allocation13 + $0x34] ss:$8 sps:$4 sm:$0xff]  }
0x12fd   :  { %v2238_v5 = vsel %vm668_vm3, %v7051_v61, 0.0 }
0x12fe   :  { %v7053_v6 = vpop.eup %7052  ;;  %2239 = vadd.xlane.f32.xlu0 %v2238_v5  ;;  %v2405_v29 = vsel %vm2404_vm4, %v2402_v7, %v6755_v21  ;;  %v2406_v13 = vsel %vm2404_vm4, %v2403_v3, %v6756_v20  ;;  %v6883_v20 = vld [vmem:[#allocation13 + $0x54] ss:$8 sps:$4 sm:$0xff]   ;;  %v6881_v21 = vld [vmem:[#allocation13 + $0x50] ss:$8 sps:$4 sm:$0xff]   ;;  %v6890_v3 = vld [vmem:[#allocation14 + $0x40] sm:$0xff]  }
0x12ff   :  { %v2241_v23 = vsel %vm668_vm3, %v7053_v6, 0.0  ;;  %v6764_v22 = vpop.permute.xlu1 %6763  ;;  %v6891_v7 = vld [vmem:[#allocation14] sm:$0xff]  }
0x1300   :  { %v6766_v33 = vunpack.i.h.bf16 %v6764_v22  ;;  %v6765_v58 = vunpack.i.l.bf16 %v6764_v22  ;;  %v6886_v22 = vld [vmem:[#allocation13 + $0x64] ss:$8 sps:$4 sm:$0xff]  }
0x1302   :  { %2242 = vadd.xlane.f32.xlu0 %v2241_v23 }
0x1303   :  { %v6774_v63 = vpop.permute.xlu1 %6773 }
0x1304   :  { %v6776_v5 = vunpack.i.h.bf16 %v6774_v63 }
0x1318   :  { %2250 = vrot.lane.b32.xlu0 %v7700_v12, %s7393_s4 }
0x131c   :  { %6758 = vrot.lane.b32.xlu0 %v6757_v18, %s7391_s20 }
0x1320   :  { %6768 = vrot.lane.b32.xlu0 %v6767_v43, %s7390_s1  ;;  %v6860_v43 = vld [vmem:[#allocation11 + $0x10] sm:$0xff]  }
0x138b   :  { %v2240_v27 = vpop.xlane.xlu0 %2239 }
0x138c   :  { %7054 = vrcp.f32 %v2240_v27 }
0x138f   :  { %v2243_v28 = vpop.xlane.xlu0 %2242 }
0x1390   :  { %7056 = vrcp.f32 %v2243_v28 }
0x1393   :  { %v2251_v35 = vpop.permute.xlu0 %2250 }
0x1394   :  { %v2256_v36 = vsel %vm696_vm2, %v2251_v35, 0 }
0x1395   :  { %6439 = vmatpush3.bf16.msra.mxu0 %v2256_v36 }
0x1396   :  { %v7055_v38 = vpop.eup %7054  ;;  %6450 = vmatprep.subr.bf16.mxu0 %v7385_v0 }
0x1397   :  { %v2245_v12 = vmul.f32 %v7055_v38, %v7051_v61  ;;  %v6759_v15 = vpop.permute.xlu0 %6758 }
0x1398   :  { %v6761_v24 = vunpack.i.h.bf16 %v6759_v15  ;;  %v6760_v25 = vunpack.i.l.bf16 %v6759_v15  ;;  %v6875_v15 = vld [vmem:[#allocation13 + $0x30] ss:$8 sps:$4 sm:$0xff]  }
0x1399   :  { %v2248_v39 = vpack.c.bf16 %v2245_v12, %v2245_v12 }
0x139a   :  { %v7057_v11 = vpop.eup %7056  ;;  %v2409_v30 = vsel %vm2407_vm5, %v2406_v13, %v6761_v24  ;;  %v2408_v31 = vsel %vm2407_vm5, %v2405_v29, %v6760_v25  ;;  %v6884_v24 = vld [vmem:[#allocation13 + $0x60] ss:$8 sps:$4 sm:$0xff]   ;;  %v6889_v25 = vld [vmem:[#allocation13 + $0x74] ss:$8 sps:$4 sm:$0xff]  }
0x139b   :  { %6441 = vmatmul.mubr.msk.bf16.vlgmr.msra.gmra.mrb[60].mxu0 %vm668_vm3, %v2248_v39  ;;  %v2247_v17 = vmul.f32 %v7057_v11, %v7053_v6  ;;  %v6769_v26 = vpop.permute.xlu0 %6768  ;;  %v2411_v10 = vsel %vm2410_vm6, %v2408_v31, %v6765_v58  ;;  %v2412_v1 = vsel %vm2410_vm6, %v2409_v30, %v6766_v33  ;;  %v6775_v6 = vunpack.i.l.bf16 %v6774_v63  ;;  %v5827_v11 = vld [vmem:[%s8559_s7] ss:$0 sm:$0xff]  ;;  %v6892_v29 = vld [vmem:[#allocation14 + $0x48] sm:$0xff]   ;;  %v6894_v30 = vld [vmem:[#allocation14 + $0x50] sm:$0xff]  }
0x139c   :  { %6466 = vmatprep.mubr.msk.bf16.mxu0 %vm7386_vm0, %v7385_v0  ;;  %6451 = vmatpush3.bf16.msra.mxu0 %v6858_v37  ;;  %v6771_v42 = vunpack.i.h.bf16 %v6769_v26  ;;  %v6770_v32 = vunpack.i.l.bf16 %v6769_v26  ;;  %v6887_v26 = vld [vmem:[#allocation13 + $0x70] ss:$8 sps:$4 sm:$0xff]   ;;  %v6893_v13 = vld [vmem:[#allocation14 + $0x8] sm:$0xff]   ;;  %v6898_v33 = vld [vmem:[#allocation14 + $0x60] sm:$0xff]  }
0x139d   :  { %v2249_v18 = vpack.c.bf16 %v2247_v17, %v2247_v17  ;;  %6452 = vmatprep.subr.bf16.mxu0 %v7385_v0  ;;  %v6895_v31 = vld [vmem:[#allocation14 + $0x10] sm:$0xff]   ;;  %v6899_v58 = vld [vmem:[#allocation14 + $0x20] sm:$0xff]   ;;  %v6900_v63 = vld [vmem:[#allocation14 + $0x68] sm:$0xff]  }
0x139e   :  { %v2414_v60 = vsel %vm2413_vm7, %v2411_v10, %v6770_v32  ;;  %v2415_v61 = vsel %vm2413_vm7, %v2412_v1, %v6771_v42  ;;  %v6896_v42 = vld [vmem:[#allocation14 + $0x58] sm:$0xff]  }
0x139f   :  { %6447 = vmatmul.mubr.msk.bf16.vlgmr.msra.gmra.mrb[72].mxu1 %vm668_vm3, %v2249_v18  ;;  %v2417_v35 = vsel %vm2416_vm8, %v2414_v60, %v6775_v6  ;;  %v2418_v36 = vsel %vm2416_vm8, %v2415_v61, %v6776_v5  ;;  %v6897_v32 = vld [vmem:[#allocation14 + $0x18] sm:$0xff]  }
0x13a0   :  { %2719 = vmatprep.mubr.bf16.mxu1 %v7387_v34  ;;  %6453 = vmatpush3.bf16.msra.mxu0 %v6859_v41 }
0x13a1   :  { %6454 = vmatprep.subr.bf16.mxu0 %v7385_v0 }
0x13a4   :  { %6455 = vmatpush3.bf16.msra.mxu0 %v6860_v43 }
0x13a5   :  { %6456 = vmatprep.subr.bf16.mxu0 %v7385_v0 }
0x13a8   :  { %6457 = vmatpush3.bf16.msra.mxu0 %v6861_v40 }
0x13a9   :  { %6458 = vmatprep.subr.bf16.mxu0 %v7385_v0 }
0x13ac   :  { %6459 = vmatpush3.bf16.msra.mxu0 %v6862_v46 }
0x13ad   :  { %6460 = vmatprep.subr.bf16.mxu0 %v7385_v0 }
0x13b0   :  { %6461 = vmatpush3.bf16.msra.mxu0 %v6863_v47 }
0x13b1   :  { %6462 = vmatprep.subr.bf16.mxu0 %v7385_v0 }
0x13b4   :  { %6463 = vmatpush3.bf16.msra.mxu0 %v6864_v8  ;;  %v6866_v8 = vld [vmem:[#allocation13] ss:$8 sps:$4 sm:$0xff]  }
0x13b5   :  { %6464 = vmatprep.subr.bf16.mxu0 %v7385_v0 }
0x13b8   :  { %6465 = vmatpush3.bf16.msra.mxu0 %v6865_v50  ;;  %v6868_v50 = vld [vmem:[#allocation13 + $0x4] ss:$8 sps:$4 sm:$0xff]  }
0x13b9   :  { %2687 = vmatprep.subr.bf16.mxu1 %v6868_v50  ;;  %6083 = vmatprep.subr.bf16.mxu0 %v6890_v3 }
0x13ba   :  { %2688 = vmatpush1.bf16.msra.mxu1 %v6866_v8 }
0x146e   :  { %v2292_v52 = vpop.f32.mrb[60].mxu0 }
0x146f   :  { %v6442_v54 = vpop.f32.mrb[61].mxu0 }
0x1470   :  { %v2295_v55 = vpop.f32.mrb[62].mxu0  ;;  %v6869_v54 = vld [vmem:[#allocation13 + $0x10] ss:$8 sps:$4 sm:$0xff]  }
0x1471   :  { %v6443_v56 = vpop.f32.mrb[63].mxu0 }
0x1472   :  { %v2340_v57 = vpop.f32.mrb[72].mxu1 }
0x1473   :  { %v6777_v59 = vpack.i.bf16 %v2340_v57, %v2292_v52  ;;  %v6448_v62 = vpop.f32.mrb[73].mxu1  ;;  %v6871_v52 = vld [vmem:[#allocation13 + $0x14] ss:$8 sps:$4 sm:$0xff]  }
0x1474   :  { %v2343_v2 = vpop.f32.mrb[74].mxu1  ;;  %2689 = vmatprep.subr.bf16.mxu1 %v6871_v52 }
0x1475   :  { %v6449_v4 = vpop.f32.mrb[75].mxu1  ;;  %6778 = vrot.lane.b32.xlu0 %v6777_v59, %s7388_s21  ;;  %2690 = vmatpush1.bf16.msra.mxu1 %v6869_v54 }
0x1476   :  { %v6874_v4 = vld [vmem:[#allocation13 + $0x24] ss:$8 sps:$4 sm:$0xff]  }
0x1477   :  { %2691 = vmatprep.subr.bf16.mxu1 %v6874_v4 }
0x1479   :  { %2692 = vmatpush1.bf16.msra.mxu1 %v6872_v9 }
0x147a   :  { %2693 = vmatprep.subr.bf16.mxu1 %v6877_v14 }
0x147d   :  { %2694 = vmatpush1.bf16.msra.mxu1 %v6875_v15 }
0x147e   :  { %2695 = vmatprep.subr.bf16.mxu1 %v6880_v16 }
0x1481   :  { %2696 = vmatpush1.bf16.msra.mxu1 %v6878_v19  ;;  %v5854_v19 = vld [vmem:[%s8563_s11] ss:$0 sm:$0xff] }
0x1482   :  { %2697 = vmatprep.subr.bf16.mxu1 %v6883_v20 }
0x1485   :  { %2698 = vmatpush1.bf16.msra.mxu1 %v6881_v21 }
0x1486   :  { %2699 = vmatprep.subr.bf16.mxu1 %v6886_v22 }
0x1489   :  { %2700 = vmatpush1.bf16.msra.mxu1 %v6884_v24 }
0x148a   :  { %2701 = vmatprep.subr.bf16.mxu1 %v6889_v25 }
0x148d   :  { %2702 = vmatpush1.bf16.msra.mxu1 %v6887_v26 }
0x14e7   :  { %v6779_v23 = vpop.permute.xlu0 %6778 }
0x14e8   :  { %v6781_v27 = vunpack.i.h.bf16 %v6779_v23  ;;  %v6780_v28 = vunpack.i.l.bf16 %v6779_v23 }
0x14ea   :  { %v2421_v38 = vsel %vm2419_vm9, %v2418_v36, %v6781_v27  ;;  %v2420_v12 = vsel %vm2419_vm9, %v2417_v35, %v6780_v28  ;;  %v5836_v28 = vld [vmem:[%s8564_s12] ss:$0 sm:$0xff] }
0x14eb   :  { %v2422_v39 = vpack.c.bf16 %v2421_v38, %v2420_v12  ;;  %v5837_v12 = vld [vmem:[%s8565_s13] ss:$0 sm:$0xff] }
0x14ed   :  { %6467 = vmatmul.mubr.bf16.vlgmr.msra.gmra.mrb[64].mxu0 %v2422_v39 }
0x14ee   :  { %6084 = vmatpush3.bf16.msra.mxu0 %v6891_v7 }
0x14ef   :  { %6085 = vmatprep.subr.bf16.mxu0 %v6892_v29 }
0x14f2   :  { %6086 = vmatpush3.bf16.msra.mxu0 %v6893_v13  ;;  %v6906_v13 = vld [vmem:[#allocation10 + $0xc0] ss:$12 sps:$4 sm:$0xff]  }
0x14f3   :  { %6087 = vmatprep.subr.bf16.mxu0 %v6894_v30  ;;  %v6908_v30 = vld [vmem:[#allocation10 + $0xc4] ss:$12 sps:$4 sm:$0xff]  }
0x14f4   :  { %3134 = vmatprep.subr.bf16.mxu1 %v6908_v30 }
0x14f6   :  { %6088 = vmatpush3.bf16.msra.mxu0 %v6895_v31  ;;  %v6909_v31 = vld [vmem:[#allocation10 + $0xc8] ss:$12 sps:$4 sm:$0xff]  }
0x14f7   :  { %6089 = vmatprep.subr.bf16.mxu0 %v6896_v42  ;;  %v6912_v42 = vld [vmem:[#allocation10 + $0xdc] ss:$12 sps:$4 sm:$0xff]  }
0x14fa   :  { %6090 = vmatpush3.bf16.msra.mxu0 %v6897_v32  ;;  %v6913_v32 = vld [vmem:[#allocation10 + $0xe0] ss:$12 sps:$4 sm:$0xff]  }
0x14fb   :  { %6091 = vmatprep.subr.bf16.mxu0 %v6898_v33  ;;  %v6910_v33 = vld [vmem:[#allocation10 + $0xd8] ss:$12 sps:$4 sm:$0xff]  }
0x14fe   :  { %6092 = vmatpush3.bf16.msra.mxu0 %v6899_v58 }
0x14ff   :  { %6093 = vmatprep.subr.bf16.mxu0 %v6900_v63 }
0x15c0   :  { %v2528_v17 = vpop.f32.mrb[64].mxu0 }
0x15c1   :  { %v2529_v18 = vadd.f32 %v5827_v11, %v2528_v17  ;;  %v6468_v37 = vpop.f32.mrb[65].mxu0 }
0x15c2   :  { %v2531_v41 = vpop.f32.mrb[66].mxu0  ;;  %v6901_v37 = vld [vmem:[#allocation14 + $0x28] sm:$0xff]  }
0x15c3   :  { %v2532_v43 = vadd.f32 %v5827_v11, %v2531_v41  ;;  %v6469_v40 = vpop.f32.mrb[67].mxu0  ;;  %v2535_v46 = vadd.f32 %v2529_v18, %v7656_v44  ;;  %6094 = vmatpush3.bf16.msra.mxu0 %v6901_v37  ;;  %v6902_v41 = vld [vmem:[#allocation14 + $0x70] sm:$0xff]   ;;  %v6929_v37 = vld [vmem:[#allocation10 + $0x140] ss:$12 sps:$4 sm:$0xff]  }
0x15c4   :  { %6095 = vmatprep.subr.bf16.mxu0 %v6902_v41  ;;  %v6904_v40 = vld [vmem:[#allocation14 + $0x78] sm:$0xff]   ;;  %v6932_v41 = vld [vmem:[#allocation10 + $0x154] ss:$12 sps:$4 sm:$0xff]  }
0x15c5   :  { %2539 = vadd.xlane.f32.xlu1 %v2535_v46  ;;  %v2536_v47 = vadd.f32 %v2532_v43, %v7658_v45  ;;  %v6903_v43 = vld [vmem:[#allocation14 + $0x30] sm:$0xff]  }
0x15c7   :  { %2541 = vadd.xlane.f32.xlu0 %v2536_v47  ;;  %6096 = vmatpush3.bf16.msra.mxu0 %v6903_v43  ;;  %v6930_v43 = vld [vmem:[#allocation10 + $0x150] ss:$12 sps:$4 sm:$0xff]  }
0x15c8   :  { %6097 = vmatprep.subr.bf16.mxu0 %v6904_v40  ;;  %v6933_v40 = vld [vmem:[#allocation10 + $0x158] ss:$12 sps:$4 sm:$0xff]  }
0x1652   :  { %v2540_v55 = vpop.xlane.xlu1 %2539 }
0x1653   :  { %v2544_v56 = vmul.f32 0.0078125, %v2540_v55 }
0x1654   :  { %v2542_v57 = vpop.xlane.xlu0 %2541 }
0x1655   :  { %v2546_v59 = vsub.f32 %v2535_v46, %v2544_v56  ;;  %v2545_v62 = vmul.f32 0.0078125, %v2542_v57  ;;  %v6905_v46 = vld [vmem:[#allocation14 + $0x38] sm:$0xff]  }
0x1656   :  { %6098 = vmatpush3.bf16.msra.mxu0 %v6905_v46  ;;  %v6936_v46 = vld [vmem:[#allocation10 + $0x16c] ss:$12 sps:$4 sm:$0xff]  }
0x1657   :  { %v8062_v2 = vsub.f32 %v2536_v47, %v2545_v62  ;;  %v2548_v44 = vmul.f32 %v2546_v59, %v2546_v59  ;;  %6470 = vmatprep.subr.bf16.mxu0 %v7385_v0  ;;  %v2595_v47 = vld [vmem:[%s8561_s9] sm:$0x3] }
0x1658   :  { %v2600_v8 = vrot.slane %v2595_v47, %v7677_v53  ;;  %v2604_v50 = vrot.slane %v2595_v47, %v7669_v49  ;;  %v6934_v47 = vld [vmem:[#allocation10 + $0x168] ss:$12 sps:$4 sm:$0xff]  }
0x1659   :  { %2550 = vadd.xlane.f32.xlu0 %v2548_v44  ;;  %v2549_v45 = vmul.f32 %v8062_v2, %v8062_v2 }
0x165d   :  { %2552 = vadd.xlane.f32.xlu0 %v2549_v45 }
0x16e6   :  { %v2551_v10 = vpop.xlane.xlu0 %2550 }
0x16e7   :  { %v2554_v1 = vmul.f32 0.0078125, %v2551_v10 }
0x16e9   :  { %v2556_v60 = vadd.f32 1e-05, %v2554_v1 }
0x16ea   :  { %v2553_v61 = vpop.xlane.xlu0 %2552 }
0x16eb   :  { %7058 = vrsqrt.f32 %v2556_v60  ;;  %v2555_v5 = vmul.f32 0.0078125, %v2553_v61 }
0x16ed   :  { %v2557_v6 = vadd.f32 1e-05, %v2555_v5 }
0x16ef   :  { %7060 = vrsqrt.f32 %v2557_v6 }
0x16f5   :  { %v7059_v23 = vpop.eup %7058 }
0x16f6   :  { %v2560_v27 = vmul.f32 %v7059_v23, %v2546_v59  ;;  %v6916_v23 = vld [vmem:[#allocation10 + $0xf4] ss:$12 sps:$4 sm:$0xff]  }
0x16f8   :  { %v2568_v38 = vmul.f32 %v5836_v28, %v2560_v27  ;;  %v6914_v27 = vld [vmem:[#allocation10 + $0xf0] ss:$12 sps:$4 sm:$0xff]  }
0x16f9   :  { %v7061_v35 = vpop.eup %7060 }
0x16fa   :  { %v2561_v36 = vmul.f32 %v7061_v35, %v8062_v2  ;;  %v2576_v11 = vadd.f32 %v5837_v12, %v2568_v38  ;;  %v6920_v35 = vld [vmem:[#allocation10 + $0x10c] ss:$12 sps:$4 sm:$0xff]   ;;  %v6921_v38 = vld [vmem:[#allocation10 + $0x110] ss:$12 sps:$4 sm:$0xff]  }
0x16fc   :  { %v2569_v39 = vmul.f32 %v5836_v28, %v2561_v36  ;;  %v6917_v28 = vld [vmem:[#allocation10 + $0xf8] ss:$12 sps:$4 sm:$0xff]   ;;  %v6918_v36 = vld [vmem:[#allocation10 + $0x108] ss:$12 sps:$4 sm:$0xff]  }
0x16fe   :  { %v2577_v17 = vadd.f32 %v5837_v12, %v2569_v39  ;;  %v6924_v12 = vld [vmem:[#allocation10 + $0x124] ss:$12 sps:$4 sm:$0xff]   ;;  %v6922_v39 = vld [vmem:[#allocation10 + $0x120] ss:$12 sps:$4 sm:$0xff]  }
0x1700   :  { %v2578_v18 = vpack.c.bf16 %v2577_v17, %v2576_v11 }
0x1702   :  { %2720 = vmatmul.mubr.bf16.vlgmr.msra.gmra.mrb[76].mxu1 %v2578_v18  ;;  %v6926_v18 = vld [vmem:[#allocation10 + $0x138] ss:$12 sps:$4 sm:$0xff]  }
0x1703   :  { %3166 = vmatprep.mubr.bf16.mxu1 %v7387_v34  ;;  %3135 = vmatpush1.bf16.msra.mxu1 %v6906_v13 }
0x1704   :  { %3136 = vmatprep.subr.bf16.mxu1 %v6912_v42 }
0x1707   :  { %3137 = vmatpush1.bf16.msra.mxu1 %v6910_v33 }
0x1708   :  { %3138 = vmatprep.subr.bf16.mxu1 %v6916_v23 }
0x170b   :  { %3139 = vmatpush1.bf16.msra.mxu1 %v6914_v27 }
0x170c   :  { %3140 = vmatprep.subr.bf16.mxu1 %v6920_v35 }
0x170f   :  { %3141 = vmatpush1.bf16.msra.mxu1 %v6918_v36 }
0x1710   :  { %3142 = vmatprep.subr.bf16.mxu1 %v6924_v12 }
0x1713   :  { %3143 = vmatpush1.bf16.msra.mxu1 %v6922_v39 }
0x17d5   :  { %v2721_v52 = vpop.f32.mrb[76].mxu1 }
0x17d6   :  { %v2722_v54 = vadd.f32 %v2721_v52, %v2600_v8  ;;  %v2723_v55 = vpop.f32.mrb[77].mxu1 }
0x17d7   :  { %v2724_v56 = vadd.f32 %v2723_v55, %v2604_v50  ;;  %v2725_v57 = vpop.f32.mrb[78].mxu1 }
0x17d8   :  { %v2726_v59 = vadd.f32 %v2725_v57, %v2600_v8  ;;  %v2727_v62 = vpop.f32.mrb[79].mxu1  ;;  %v2730_v44 = vmax.f32 %v2722_v54, 0.0  ;;  %v6937_v8 = vld [vmem:[#allocation10 + $0x170] ss:$12 sps:$4 sm:$0xff]  }
0x17d9   :  { %v2728_v2 = vadd.f32 %v2727_v62, %v2604_v50  ;;  %v2731_v4 = vmax.f32 %v2724_v56, 0.0  ;;  %v5871_v62 = vld [vmem:[%s8566_s14] ss:$0 sm:$0xff] }
0x17da   :  { %v2732_v45 = vmax.f32 %v2726_v59, 0.0 }
0x17db   :  { %v2733_v9 = vmax.f32 %v2728_v2, 0.0 }
0x17dc   :  { %v2734_v14 = vpack.c.bf16 %v2732_v45, %v2730_v44 }
0x17dd   :  { %v2735_v15 = vpack.c.bf16 %v2733_v9, %v2731_v4  ;;  %v5872_v9 = vld [vmem:[%s8567_s15] ss:$0 sm:$0xff] }
0x17df   :  { %2903 = vmatprep.mubr.bf16.mxu0 %v2735_v15 }
0x17e0   :  { %2904 = vmatmul.mubr.bf16.vlgmr.msra.gmra.mrb[68].mxu0 %v2734_v14 }
0x17e1   :  { %6486 = vmatprep.mubr.msk.bf16.mxu0 %vm7386_vm0, %v7385_v0  ;;  %6471 = vmatpush3.bf16.msra.mxu0 %v6909_v31 }
0x17e2   :  { %6472 = vmatprep.subr.bf16.mxu0 %v7385_v0 }
0x17e5   :  { %6473 = vmatpush3.bf16.msra.mxu0 %v6913_v32 }
0x17e6   :  { %6474 = vmatprep.subr.bf16.mxu0 %v7385_v0 }
0x17e9   :  { %6475 = vmatpush3.bf16.msra.mxu0 %v6917_v28 }
0x17ea   :  { %6476 = vmatprep.subr.bf16.mxu0 %v7385_v0 }
0x17ed   :  { %6477 = vmatpush3.bf16.msra.mxu0 %v6921_v38 }
0x17ee   :  { %6478 = vmatprep.subr.bf16.mxu0 %v7385_v0 }
0x18b3   :  { %v6099_v16 = vpop.f32.mrb[68].mxu0 }
0x18b4   :  { %v6100_v20 = vpop.f32.mrb[69].mxu0 }
0x18b5   :  { %v6101_v21 = vadd.f32 %v6100_v20, %v6099_v16  ;;  %v6102_v22 = vpop.f32.mrb[70].mxu0  ;;  %v5873_v20 = vld [vmem:[%s8557_s5 + $0x3] sm:$0x7] }
0x18b6   :  { %v6103_v24 = vpop.f32.mrb[71].mxu0  ;;  %v2994_v32 = vrot.slane %v5873_v20, %v7677_v53 }
0x18b7   :  { %v2906_v25 = vadd.f32 %v6101_v21, %v5854_v19  ;;  %v6104_v26 = vadd.f32 %v6103_v24, %v6102_v22  ;;  %v2998_v21 = vrot.slane %v5873_v20, %v7669_v49 }
0x18b9   :  { %v2909_v3 = vadd.f32 %v6104_v26, %v5854_v19  ;;  %v2912_v7 = vadd.f32 %v2906_v25, %v2576_v11  ;;  %v6925_v11 = vld [vmem:[#allocation10 + $0x128] ss:$12 sps:$4 sm:$0xff]   ;;  %v3002_v25 = vrot.slane %v5873_v20, %v350_v51 }
0x18ba   :  { %6479 = vmatpush3.bf16.msra.mxu0 %v6925_v11 }
0x18bb   :  { %2916 = vadd.xlane.f32.xlu1 %v2912_v7  ;;  %v2913_v29 = vadd.f32 %v2909_v3, %v2577_v17  ;;  %v6928_v17 = vld [vmem:[#allocation10 + $0x13c] ss:$12 sps:$4 sm:$0xff]   ;;  %6480 = vmatprep.subr.bf16.mxu0 %v7385_v0 }
0x18bc   :  { %3144 = vmatprep.subr.bf16.mxu1 %v6928_v17 }
0x18bd   :  { %2918 = vadd.xlane.f32.xlu0 %v2913_v29  ;;  %3145 = vmatpush1.bf16.msra.mxu1 %v6926_v18 }
0x18be   :  { %6481 = vmatpush3.bf16.msra.mxu0 %v6929_v37  ;;  %3146 = vmatprep.subr.bf16.mxu1 %v6932_v41 }
0x18bf   :  { %6482 = vmatprep.subr.bf16.mxu0 %v7385_v0 }
0x18c1   :  { %3147 = vmatpush1.bf16.msra.mxu1 %v6930_v43 }
0x18c2   :  { %6483 = vmatpush3.bf16.msra.mxu0 %v6933_v40  ;;  %3148 = vmatprep.subr.bf16.mxu1 %v6936_v46 }
0x18c3   :  { %6484 = vmatprep.subr.bf16.mxu0 %v7385_v0 }
0x18c5   :  { %3149 = vmatpush1.bf16.msra.mxu1 %v6934_v47 }
0x18c6   :  { %6485 = vmatpush3.bf16.msra.mxu0 %v6937_v8  ;;  %6490 = vmatprep.subr.bf16.mxu1 %v7385_v0 }
0x18c7   :  { %6514 = vmatprep.subr.bf16.mxu0 %v7385_v0 }
0x1948   :  { %v2917_v58 = vpop.xlane.xlu1 %2916 }
0x1949   :  { %v2920_v63 = vmul.f32 0.0078125, %v2917_v58 }
0x194a   :  { %v2919_v10 = vpop.xlane.xlu0 %2918 }
0x194b   :  { %v2922_v1 = vsub.f32 %v2912_v7, %v2920_v63  ;;  %v2921_v60 = vmul.f32 0.0078125, %v2919_v10 }
0x194d   :  { %v2923_v61 = vsub.f32 %v2913_v29, %v2921_v60  ;;  %v2924_v5 = vmul.f32 %v2922_v1, %v2922_v1 }
0x194f   :  { %2926 = vadd.xlane.f32.xlu1 %v2924_v5  ;;  %v2925_v6 = vmul.f32 %v2923_v61, %v2923_v61 }
0x1951   :  { %2928 = vadd.xlane.f32.xlu0 %v2925_v6 }
0x19dc   :  { %v2927_v50 = vpop.xlane.xlu1 %2926 }
0x19dd   :  { %v2930_v52 = vmul.f32 0.0078125, %v2927_v50 }
0x19de   :  { %v2929_v54 = vpop.xlane.xlu0 %2928 }
0x19df   :  { %v2932_v55 = vadd.f32 1e-05, %v2930_v52  ;;  %v2931_v56 = vmul.f32 0.0078125, %v2929_v54 }
0x19e1   :  { %7062 = vrsqrt.f32 %v2932_v55  ;;  %v2933_v57 = vadd.f32 1e-05, %v2931_v56 }
0x19e3   :  { %7064 = vrsqrt.f32 %v2933_v57 }
0x19eb   :  { %v7063_v59 = vpop.eup %7062 }
0x19ec   :  { %v2936_v2 = vmul.f32 %v7063_v59, %v2922_v1 }
0x19ed   :  { %v7065_v44 = vpop.eup %7064 }
0x19ee   :  { %v2937_v45 = vmul.f32 %v7065_v44, %v2923_v61  ;;  %v2944_v4 = vmul.f32 %v5871_v62, %v2936_v2 }
0x19f0   :  { %v2945_v14 = vmul.f32 %v5871_v62, %v2937_v45  ;;  %v8100_v15 = vadd.f32 %v5872_v9, %v2944_v4 }
0x19f2   :  { %v8102_v16 = vadd.f32 %v5872_v9, %v2945_v14 }
0x19f4   :  { %v2954_v19 = vpack.c.bf16 %v8102_v16, %v8100_v15 }
0x19f6   :  { %3167 = vmatmul.mubr.bf16.vlgmr.msra.gmra.mrb[80].mxu1 %v2954_v19  ;;  %6487 = vmatmul.mubr.bf16.vlgmr.msra.gmra.mrb[72].mxu0 %v2954_v19 }
0x19f7   :  { %6492 = vmatprep.mubr.msk.bf16.mxu1 %vm7386_vm0, %v7385_v0  ;;  %6516 = vmatprep.mubr.msk.bf16.mxu0 %vm7386_vm0, %v7385_v0 }
0x1ac9   :  { %v3168_v22 = vpop.f32.mrb[80].mxu1  ;;  %v3211_v24 = vpop.f32.mrb[72].mxu0 }
0x1aca   :  { %v3170_v26 = vpop.f32.mrb[81].mxu1  ;;  %v6488_v3 = vpop.f32.mrb[73].mxu0  ;;  %v3169_v48 = vadd.f32 %v3168_v22, %v2994_v32  ;;  %v3212_v1 = vadd.f32 %v3211_v24, %v3002_v25 }
0x1acb   :  { %v3171_v7 = vadd.f32 %v3170_v26, %v2998_v21  ;;  %v3172_v29 = vpop.f32.mrb[82].mxu1  ;;  %v3214_v13 = vpop.f32.mrb[74].mxu0 }
0x1acc   :  { %v8116_v30 = vadd.f32 %v3214_v13, %v3002_v25  ;;  %v3174_v31 = vpop.f32.mrb[83].mxu1  ;;  %v6489_v42 = vpop.f32.mrb[75].mxu0  ;;  %v8126_v10 = vpack.c.bf16 %v3169_v48, %v3169_v48  ;;  %v3173_v61 = vadd.f32 %v3172_v29, %v2994_v32  ;;  %v8135_v5 = vpack.c.bf16 %v3212_v1, %v3212_v1 }
0x1acd   :  { %v8119_v33 = vpack.c.bf16 %v3171_v7, %v3171_v7  ;;  %v3175_v58 = vadd.f32 %v3174_v31, %v2998_v21 }
0x1ace   :  { %v8137_v6 = vpack.c.bf16 %v3173_v61, %v3173_v61  ;;  %v3346_v23 = vsel %vm696_vm2, %v8135_v5, 0  ;;  %v8162_v45 = vpack.c.bf16 %v8116_v30, %v8116_v30 }
0x1acf   :  { %v3228_v63 = vsel %vm573_vm1, %v8119_v33, 0  ;;  %v8124_v51 = vpack.c.bf16 %v3175_v58, %v3175_v58 }
0x1ad0   :  { %6491 = vmatpush3.bf16.xpose.msra.mxu1 %v3228_v63  ;;  %v3392_v19 = vsel %vm696_vm2, %v8162_v45, 0 }
0x1ad1   :  { %6496 = vmatprep.subr.bf16.mxu1 %v7385_v0  ;;  %v3274_v60 = vsel %vm573_vm1, %v8124_v51, 0 }
0x1ad7   :  { %6493 = vmatmul.mubr.msk.bf16.vlgmr.msra.gmra.mrb[84].mxu1 %vm573_vm1, %v8126_v10 }
0x1ad8   :  { %6497 = vmatpush3.bf16.xpose.msra.mxu1 %v3274_v60  ;;  %6498 = vmatprep.mubr.msk.bf16.mxu1 %vm7386_vm0, %v7385_v0 }
0x1ad9   :  { %6502 = vmatprep.subr.bf16.mxu1 %v7385_v0 }
0x1adf   :  { %6499 = vmatmul.mubr.msk.bf16.vlgmr.msra.gmra.mrb[88].mxu1 %vm573_vm1, %v8137_v6 }
0x1ae0   :  { %6503 = vmatpush3.bf16.msra.mxu1 %v3346_v23  ;;  %6504 = vmatprep.mubr.msk.bf16.mxu1 %vm7386_vm0, %v7385_v0 }
0x1ae1   :  { %6508 = vmatprep.subr.bf16.mxu1 %v7385_v0 }
0x1baa   :  { %v3264_v27 = vpop.f32.mrb[84].mxu1 }
0x1bab   :  { %v3316_v28 = vmul.f32 0.25, %v3264_v27  ;;  %v6494_v35 = vpop.f32.mrb[85].mxu1 }
0x1bac   :  { %v3267_v36 = vpop.f32.mrb[86].mxu1 }
0x1bad   :  { %v6495_v38 = vpop.f32.mrb[87].mxu1  ;;  %v3318_v12 = vsel %vm668_vm3, %v3316_v28, -inf }
0x1bae   :  { %3319 = vmax.xlane.f32.xlu1 %v3318_v12 }
0x1bb2   :  { %v3310_v39 = vpop.f32.mrb[88].mxu1 }
0x1bb3   :  { %v3317_v11 = vmul.f32 0.25, %v3310_v39  ;;  %v6500_v17 = vpop.f32.mrb[89].mxu1 }
0x1bb4   :  { %v3313_v18 = vpop.f32.mrb[90].mxu1 }
0x1bb5   :  { %v6501_v37 = vpop.f32.mrb[91].mxu1  ;;  %v3321_v41 = vsel %vm668_vm3, %v3317_v11, -inf }
0x1bb6   :  { %3322 = vmax.xlane.f32.xlu0 %v3321_v41 }
0x1c3b   :  { %v3320_v43 = vpop.xlane.xlu1 %3319 }
0x1c3c   :  { %v3324_v40 = vsub.f32 %v3316_v28, %v3320_v43 }
0x1c3e   :  { %v3326_v46 = vmul.f32 1.442695, %v3324_v40 }
0x1c40   :  { %7066 = vpow2.f32 %v3326_v46 }
0x1c43   :  { %v3323_v47 = vpop.xlane.xlu0 %3322 }
0x1c44   :  { %v3325_v8 = vsub.f32 %v3317_v11, %v3323_v47 }
0x1c46   :  { %v3328_v50 = vmul.f32 1.442695, %v3325_v8 }
0x1c48   :  { %7068 = vpow2.f32 %v3328_v50 }
0x1c4a   :  { %v7067_v52 = vpop.eup %7066 }
0x1c4b   :  { %v3330_v54 = vsel %vm668_vm3, %v7067_v52, 0.0 }
0x1c4c   :  { %3331 = vadd.xlane.f32.xlu1 %v3330_v54 }
0x1c52   :  { %v7069_v55 = vpop.eup %7068 }
0x1c53   :  { %v3333_v56 = vsel %vm668_vm3, %v7069_v55, 0.0 }
0x1c54   :  { %3334 = vadd.xlane.f32.xlu0 %v3333_v56 }
0x1c5d   :  { %3438 = vrot.lane.b32.xlu1 %v8119_v33, %s7388_s21 }
0x1c61   :  { %3435 = vrot.lane.b32.xlu1 %v8126_v10, %s7388_s21 }
0x1c65   :  { %3487 = vrot.lane.b32.xlu1 %v8137_v6, %s7388_s21 }
0x1c6a   :  { %3490 = vrot.lane.b32.xlu0 %v8124_v51, %s7388_s21 }
0x1cd9   :  { %v3332_v57 = vpop.xlane.xlu1 %3331 }
0x1cda   :  { %7070 = vrcp.f32 %v3332_v57 }
0x1cdd   :  { %v3439_v59 = vpop.permute.xlu1 %3438 }
0x1cde   :  { %v3444_v62 = vsel %vm573_vm1, %v3439_v59, 0 }
0x1cdf   :  { %6515 = vmatpush3.bf16.xpose.msra.mxu0 %v3444_v62 }
0x1ce0   :  { %6526 = vmatprep.subr.bf16.mxu0 %v7385_v0 }
0x1ce1   :  { %v3335_v2 = vpop.xlane.xlu0 %3334  ;;  %v3436_v9 = vpop.permute.xlu1 %3435 }
0x1ce2   :  { %7072 = vrcp.f32 %v3335_v2 }
0x1ce4   :  { %v7071_v44 = vpop.eup %7070 }
0x1ce5   :  { %v3337_v4 = vmul.f32 %v7071_v44, %v7067_v52  ;;  %v3491_v22 = vpop.permute.xlu0 %3490  ;;  %v3488_v26 = vpop.permute.xlu1 %3487 }
0x1ce6   :  { %6517 = vmatmul.mubr.msk.bf16.vlgmr.msra.gmra.mrb[76].mxu0 %vm573_vm1, %v3436_v9  ;;  %v3496_v25 = vsel %vm573_vm1, %v3491_v22, 0 }
0x1ce7   :  { %v3340_v14 = vpack.c.bf16 %v3337_v4, %v3337_v4  ;;  %6528 = vmatprep.mubr.msk.bf16.mxu0 %vm7386_vm0, %v7385_v0 }
0x1ce9   :  { %6505 = vmatmul.mubr.msk.bf16.vlgmr.msra.gmra.mrb[92].mxu1 %vm668_vm3, %v3340_v14 }
0x1cea   :  { %6509 = vmatpush3.bf16.msra.mxu1 %v3392_v19  ;;  %6510 = vmatprep.mubr.msk.bf16.mxu1 %vm7386_vm0, %v7385_v0 }
0x1ceb   :  { %6520 = vmatprep.subr.bf16.mxu1 %v7385_v0 }
0x1cec   :  { %v7073_v20 = vpop.eup %7072 }
0x1ced   :  { %v3339_v21 = vmul.f32 %v7073_v20, %v7069_v55 }
0x1cef   :  { %v3341_v24 = vpack.c.bf16 %v3339_v21, %v3339_v21 }
0x1cf1   :  { %6511 = vmatmul.mubr.msk.bf16.vlgmr.msra.gmra.mrb[96].mxu1 %vm668_vm3, %v3341_v24 }
0x1cf2   :  { %6522 = vmatprep.mubr.msk.bf16.mxu1 %vm7386_vm0, %v7385_v0 }
0x1cf3   :  { %6521 = vmatpush3.bf16.xpose.msra.mxu1 %v3496_v25 }
0x1cf4   :  { %6532 = vmatprep.subr.bf16.mxu1 %v7385_v0 }
0x1cfa   :  { %6523 = vmatmul.mubr.msk.bf16.vlgmr.msra.gmra.mrb[100].mxu1 %vm573_vm1, %v3488_v26 }
0x1cfb   :  { %6534 = vmatprep.mubr.msk.bf16.mxu1 %vm7386_vm0, %v7385_v0 }
0x1db9   :  { %v3480_v3 = vpop.f32.mrb[76].mxu0 }
0x1dba   :  { %v3538_v7 = vmul.f32 0.25, %v3480_v3  ;;  %v6518_v29 = vpop.f32.mrb[77].mxu0 }
0x1dbb   :  { %v3483_v13 = vpop.f32.mrb[78].mxu0 }
0x1dbc   :  { %v8181_v30 = vpop.f32.mrb[92].mxu1  ;;  %v6519_v31 = vpop.f32.mrb[79].mxu0  ;;  %v3540_v42 = vsel %vm668_vm3, %v3538_v7, -inf }
0x1dbd   :  { %3541 = vmax.xlane.f32.xlu1 %v3540_v42  ;;  %v6506_v32 = vpop.f32.mrb[93].mxu1 }
0x1dbe   :  { %v3385_v58 = vpop.f32.mrb[94].mxu1 }
0x1dbf   :  { %v6507_v63 = vpop.f32.mrb[95].mxu1 }
0x1dc4   :  { %v8184_v48 = vpop.f32.mrb[96].mxu1 }
0x1dc5   :  { %v6512_v1 = vpop.f32.mrb[97].mxu1 }
0x1dc6   :  { %v3431_v60 = vpop.f32.mrb[98].mxu1 }
0x1dc7   :  { %v6513_v61 = vpop.f32.mrb[99].mxu1 }
0x1dcd   :  { %v3532_v23 = vpop.f32.mrb[100].mxu1 }
0x1dce   :  { %v3539_v27 = vmul.f32 0.25, %v3532_v23  ;;  %v6524_v28 = vpop.f32.mrb[101].mxu1  ;;  %3565 = vrot.lane.b32.xlu1 %v8135_v5, %s7388_s21 }
0x1dcf   :  { %v3535_v35 = vpop.f32.mrb[102].mxu1 }
0x1dd0   :  { %v6525_v36 = vpop.f32.mrb[103].mxu1  ;;  %v3543_v38 = vsel %vm668_vm3, %v3539_v27, -inf }
0x1dd1   :  { %3544 = vmax.xlane.f32.xlu0 %v3543_v38 }
0x1dd2   :  { %3664 = vrot.lane.b32.xlu1 %v8119_v33, %s7389_s19 }
0x1dd6   :  { %3714 = vrot.lane.b32.xlu1 %v8124_v51, %s7389_s19 }
0x1dda   :  { %3662 = vrot.lane.b32.xlu1 %v8126_v10, %s7389_s19 }
0x1e4a   :  { %v3542_v12 = vpop.xlane.xlu1 %3541 }
0x1e4b   :  { %v3546_v39 = vsub.f32 %v3538_v7, %v3542_v12 }
0x1e4d   :  { %v3548_v11 = vmul.f32 1.442695, %v3546_v39 }
0x1e4e   :  { %v3566_v17 = vpop.permute.xlu1 %3565 }
0x1e4f   :  { %7074 = vpow2.f32 %v3548_v11  ;;  %v3571_v18 = vsel %vm696_vm2, %v3566_v17, 0 }
0x1e50   :  { %6527 = vmatpush3.bf16.msra.mxu0 %v3571_v18 }
0x1e51   :  { %6538 = vmatprep.subr.bf16.mxu0 %v7385_v0 }
0x1e52   :  { %v3665_v54 = vpop.permute.xlu1 %3664 }
0x1e53   :  { %v3670_v57 = vsel %vm573_vm1, %v3665_v54, 0 }
0x1e56   :  { %v3715_v59 = vpop.permute.xlu1 %3714 }
0x1e57   :  { %v3720_v20 = vsel %vm573_vm1, %v3715_v59, 0 }
0x1e59   :  { %v7075_v37 = vpop.eup %7074 }
0x1e5a   :  { %v3552_v41 = vsel %vm668_vm3, %v7075_v37, 0.0  ;;  %v3663_v2 = vpop.permute.xlu1 %3662 }
0x1e5b   :  { %3553 = vadd.xlane.f32.xlu0 %v3552_v41 }
0x1e5e   :  { %v3545_v43 = vpop.xlane.xlu0 %3544 }
0x1e5f   :  { %v3547_v40 = vsub.f32 %v3539_v27, %v3545_v43 }
0x1e61   :  { %v3550_v46 = vmul.f32 1.442695, %v3547_v40 }
0x1e63   :  { %7076 = vpow2.f32 %v3550_v46 }
0x1e6d   :  { %v7077_v47 = vpop.eup %7076 }
0x1e6e   :  { %v3555_v8 = vsel %vm668_vm3, %v7077_v47, 0.0 }
0x1e6f   :  { %3556 = vadd.xlane.f32.xlu0 %v3555_v8 }
0x1e85   :  { %3614 = vrot.lane.b32.xlu0 %v8162_v45, %s7388_s21 }
0x1e89   :  { %3712 = vrot.lane.b32.xlu0 %v8137_v6, %s7389_s19 }
0x1ee8   :  { %v3554_v50 = vpop.xlane.xlu0 %3553 }
0x1ee9   :  { %7078 = vrcp.f32 %v3554_v50 }
0x1ef3   :  { %v7079_v52 = vpop.eup %7078 }
0x1ef4   :  { %v3559_v55 = vmul.f32 %v7079_v52, %v7075_v37 }
0x1ef6   :  { %v3562_v56 = vpack.c.bf16 %v3559_v55, %v3559_v55 }
0x1ef8   :  { %6529 = vmatmul.mubr.msk.bf16.vlgmr.msra.gmra.mrb[80].mxu0 %vm668_vm3, %v3562_v56 }
0x1ef9   :  { %6539 = vmatpush3.bf16.xpose.msra.mxu0 %v3670_v57  ;;  %6540 = vmatprep.mubr.msk.bf16.mxu0 %vm7386_vm0, %v7385_v0 }
0x1efa   :  { %6550 = vmatprep.subr.bf16.mxu0 %v7385_v0 }
0x1efc   :  { %v3557_v62 = vpop.xlane.xlu0 %3556 }
0x1efd   :  { %7080 = vrcp.f32 %v3557_v62 }
0x1f00   :  { %v3615_v44 = vpop.permute.xlu0 %3614  ;;  %6541 = vmatmul.mubr.msk.bf16.vlgmr.msra.gmra.mrb[84].mxu0 %vm573_vm1, %v3663_v2 }
0x1f01   :  { %v3620_v4 = vsel %vm696_vm2, %v3615_v44, 0  ;;  %6552 = vmatprep.mubr.msk.bf16.mxu0 %vm7386_vm0, %v7385_v0 }
0x1f02   :  { %6533 = vmatpush3.bf16.msra.mxu1 %v3620_v4 }
0x1f03   :  { %6544 = vmatprep.subr.bf16.mxu1 %v7385_v0 }
0x1f04   :  { %v3713_v21 = vpop.permute.xlu0 %3712 }
0x1f07   :  { %v7081_v9 = vpop.eup %7080 }
0x1f08   :  { %v3561_v14 = vmul.f32 %v7081_v9, %v7077_v47 }
0x1f0a   :  { %v3563_v19 = vpack.c.bf16 %v3561_v14, %v3561_v14 }
0x1f0c   :  { %6535 = vmatmul.mubr.msk.bf16.vlgmr.msra.gmra.mrb[104].mxu1 %vm668_vm3, %v3563_v19 }
0x1f0d   :  { %6545 = vmatpush3.bf16.xpose.msra.mxu1 %v3720_v20  ;;  %6546 = vmatprep.mubr.msk.bf16.mxu1 %vm7386_vm0, %v7385_v0 }
0x1f0e   :  { %6556 = vmatprep.subr.bf16.mxu1 %v7385_v0 }
0x1f14   :  { %6547 = vmatmul.mubr.msk.bf16.vlgmr.msra.gmra.mrb[108].mxu1 %vm573_vm1, %v3713_v21 }
0x1f15   :  { %6558 = vmatprep.mubr.msk.bf16.mxu1 %vm7386_vm0, %v7385_v0 }
0x1fcb   :  { %v8221_v22 = vpop.f32.mrb[80].mxu0 }
0x1fcc   :  { %v6530_v24 = vpop.f32.mrb[81].mxu0 }
0x1fcd   :  { %v3610_v25 = vpop.f32.mrb[82].mxu0 }
0x1fce   :  { %v6531_v26 = vpop.f32.mrb[83].mxu0 }
0x1fd3   :  { %v3706_v3 = vpop.f32.mrb[84].mxu0 }
0x1fd4   :  { %v3762_v7 = vmul.f32 0.25, %v3706_v3  ;;  %v6542_v29 = vpop.f32.mrb[85].mxu0 }
0x1fd5   :  { %v3709_v13 = vpop.f32.mrb[86].mxu0 }
0x1fd6   :  { %v6543_v31 = vpop.f32.mrb[87].mxu0  ;;  %v3764_v42 = vsel %vm668_vm3, %v3762_v7, -inf }
0x1fd7   :  { %3765 = vmax.xlane.f32.xlu1 %v3764_v42 }
0x1fdf   :  { %v8224_v32 = vpop.f32.mrb[104].mxu1 }
0x1fe0   :  { %v6782_v58 = vpack.i.bf16 %v8224_v32, %v8221_v22  ;;  %v6536_v63 = vpop.f32.mrb[105].mxu1 }
0x1fe1   :  { %v3659_v1 = vpop.f32.mrb[106].mxu1 }
0x1fe2   :  { %v6537_v60 = vpop.f32.mrb[107].mxu1 }
0x1fe7   :  { %v3756_v61 = vpop.f32.mrb[108].mxu1 }
0x1fe8   :  { %v3763_v23 = vmul.f32 0.25, %v3756_v61  ;;  %v6548_v27 = vpop.f32.mrb[109].mxu1  ;;  %3788 = vrot.lane.b32.xlu1 %v8135_v5, %s7389_s19 }
0x1fe9   :  { %v3759_v28 = vpop.f32.mrb[110].mxu1 }
0x1fea   :  { %v6549_v35 = vpop.f32.mrb[111].mxu1  ;;  %v3767_v36 = vsel %vm668_vm3, %v3763_v23, -inf }
0x1feb   :  { %3768 = vmax.xlane.f32.xlu0 %v3767_v36 }
0x1fec   :  { %3886 = vrot.lane.b32.xlu1 %v8119_v33, %s7390_s1 }
0x1ff0   :  { %3936 = vrot.lane.b32.xlu1 %v8124_v51, %s7390_s1 }
0x1ff4   :  { %3884 = vrot.lane.b32.xlu1 %v8126_v10, %s7390_s1 }
0x2064   :  { %v3766_v38 = vpop.xlane.xlu1 %3765 }
0x2065   :  { %v3770_v12 = vsub.f32 %v3762_v7, %v3766_v38 }
0x2067   :  { %v3772_v39 = vmul.f32 1.442695, %v3770_v12 }
0x2068   :  { %v3789_v11 = vpop.permute.xlu1 %3788 }
0x2069   :  { %7082 = vpow2.f32 %v3772_v39  ;;  %v3794_v17 = vsel %vm696_vm2, %v3789_v11, 0 }
0x206a   :  { %6551 = vmatpush3.bf16.msra.mxu0 %v3794_v17 }
0x206b   :  { %6562 = vmatprep.subr.bf16.mxu0 %v7385_v0 }
0x206c   :  { %v3887_v52 = vpop.permute.xlu1 %3886 }
0x206d   :  { %v3892_v56 = vsel %vm573_vm1, %v3887_v52, 0 }
0x2070   :  { %v3937_v57 = vpop.permute.xlu1 %3936 }
0x2071   :  { %v3942_v19 = vsel %vm573_vm1, %v3937_v57, 0 }
0x2073   :  { %v7083_v18 = vpop.eup %7082 }
0x2074   :  { %v3776_v37 = vsel %vm668_vm3, %v7083_v18, 0.0  ;;  %v3885_v62 = vpop.permute.xlu1 %3884 }
0x2075   :  { %3777 = vadd.xlane.f32.xlu0 %v3776_v37 }
0x2078   :  { %v3769_v41 = vpop.xlane.xlu0 %3768 }
0x2079   :  { %v3771_v43 = vsub.f32 %v3763_v23, %v3769_v41 }
0x207b   :  { %v3774_v40 = vmul.f32 1.442695, %v3771_v43 }
0x207d   :  { %7084 = vpow2.f32 %v3774_v40 }
0x2087   :  { %v7085_v46 = vpop.eup %7084 }
0x2088   :  { %v3779_v47 = vsel %vm668_vm3, %v7085_v46, 0.0 }
0x2089   :  { %3780 = vadd.xlane.f32.xlu0 %v3779_v47 }
0x209f   :  { %3836 = vrot.lane.b32.xlu0 %v8162_v45, %s7389_s19 }
0x20a3   :  { %3934 = vrot.lane.b32.xlu0 %v8137_v6, %s7390_s1 }
0x2102   :  { %v3778_v8 = vpop.xlane.xlu0 %3777 }
0x2103   :  { %7086 = vrcp.f32 %v3778_v8 }
0x210d   :  { %v7087_v50 = vpop.eup %7086 }
0x210e   :  { %v3783_v54 = vmul.f32 %v7087_v50, %v7083_v18 }
0x2110   :  { %v3786_v55 = vpack.c.bf16 %v3783_v54, %v3783_v54 }
0x2112   :  { %6553 = vmatmul.mubr.msk.bf16.vlgmr.msra.gmra.mrb[88].mxu0 %vm668_vm3, %v3786_v55 }
0x2113   :  { %6563 = vmatpush3.bf16.xpose.msra.mxu0 %v3892_v56  ;;  %6564 = vmatprep.mubr.msk.bf16.mxu0 %vm7386_vm0, %v7385_v0 }
0x2114   :  { %6574 = vmatprep.subr.bf16.mxu0 %v7385_v0 }
0x2116   :  { %v3781_v59 = vpop.xlane.xlu0 %3780 }
0x2117   :  { %7088 = vrcp.f32 %v3781_v59 }
0x211a   :  { %v3837_v2 = vpop.permute.xlu0 %3836  ;;  %6565 = vmatmul.mubr.msk.bf16.vlgmr.msra.gmra.mrb[92].mxu0 %vm573_vm1, %v3885_v62 }
0x211b   :  { %v3842_v44 = vsel %vm696_vm2, %v3837_v2, 0  ;;  %6576 = vmatprep.mubr.msk.bf16.mxu0 %vm7386_vm0, %v7385_v0 }
0x211c   :  { %6557 = vmatpush3.bf16.msra.mxu1 %v3842_v44 }
0x211d   :  { %6568 = vmatprep.subr.bf16.mxu1 %v7385_v0 }
0x211e   :  { %v3935_v20 = vpop.permute.xlu0 %3934 }
0x2121   :  { %v7089_v4 = vpop.eup %7088 }
0x2122   :  { %v3785_v9 = vmul.f32 %v7089_v4, %v7085_v46 }
0x2124   :  { %v3787_v14 = vpack.c.bf16 %v3785_v9, %v3785_v9 }
0x2126   :  { %6559 = vmatmul.mubr.msk.bf16.vlgmr.msra.gmra.mrb[112].mxu1 %vm668_vm3, %v3787_v14 }
0x2127   :  { %6569 = vmatpush3.bf16.xpose.msra.mxu1 %v3942_v19  ;;  %6570 = vmatprep.mubr.msk.bf16.mxu1 %vm7386_vm0, %v7385_v0 }
0x2128   :  { %6580 = vmatprep.subr.bf16.mxu1 %v7385_v0 }
0x212e   :  { %6571 = vmatmul.mubr.msk.bf16.vlgmr.msra.gmra.mrb[116].mxu1 %vm573_vm1, %v3935_v20 }
0x212f   :  { %6582 = vmatprep.mubr.msk.bf16.mxu1 %vm7386_vm0, %v7385_v0 }
0x21e5   :  { %v8263_v21 = vpop.f32.mrb[88].mxu0 }
0x21e6   :  { %v6554_v24 = vpop.f32.mrb[89].mxu0 }
0x21e7   :  { %v3833_v25 = vpop.f32.mrb[90].mxu0 }
0x21e8   :  { %v6555_v26 = vpop.f32.mrb[91].mxu0 }
0x21ed   :  { %v3928_v3 = vpop.f32.mrb[92].mxu0 }
0x21ee   :  { %v3984_v7 = vmul.f32 0.25, %v3928_v3  ;;  %v6566_v29 = vpop.f32.mrb[93].mxu0 }
0x21ef   :  { %v3931_v13 = vpop.f32.mrb[94].mxu0 }
0x21f0   :  { %v6567_v31 = vpop.f32.mrb[95].mxu0  ;;  %v3986_v42 = vsel %vm668_vm3, %v3984_v7, -inf }
0x21f1   :  { %3987 = vmax.xlane.f32.xlu1 %v3986_v42 }
0x21f9   :  { %v8266_v63 = vpop.f32.mrb[112].mxu1 }
0x21fa   :  { %v6787_v1 = vpack.i.bf16 %v8266_v63, %v8263_v21  ;;  %v6560_v60 = vpop.f32.mrb[113].mxu1 }
0x21fb   :  { %v3881_v61 = vpop.f32.mrb[114].mxu1 }
0x21fc   :  { %v6561_v23 = vpop.f32.mrb[115].mxu1 }
0x2201   :  { %v3978_v27 = vpop.f32.mrb[116].mxu1 }
0x2202   :  { %v3985_v28 = vmul.f32 0.25, %v3978_v27  ;;  %v6572_v35 = vpop.f32.mrb[117].mxu1  ;;  %4010 = vrot.lane.b32.xlu1 %v8135_v5, %s7390_s1 }
0x2203   :  { %v3981_v36 = vpop.f32.mrb[118].mxu1 }
0x2204   :  { %v6573_v38 = vpop.f32.mrb[119].mxu1  ;;  %v3989_v12 = vsel %vm668_vm3, %v3985_v28, -inf }
0x2205   :  { %3990 = vmax.xlane.f32.xlu0 %v3989_v12 }
0x2206   :  { %4108 = vrot.lane.b32.xlu1 %v8119_v33, %s7376_s29 }
0x220a   :  { %4158 = vrot.lane.b32.xlu1 %v8124_v51, %s7376_s29 }
0x220e   :  { %4106 = vrot.lane.b32.xlu1 %v8126_v10, %s7376_s29 }
0x227e   :  { %v3988_v39 = vpop.xlane.xlu1 %3987 }
0x227f   :  { %v3992_v11 = vsub.f32 %v3984_v7, %v3988_v39 }
0x2281   :  { %v3994_v17 = vmul.f32 1.442695, %v3992_v11 }
0x2282   :  { %v4011_v18 = vpop.permute.xlu1 %4010 }
0x2283   :  { %7090 = vpow2.f32 %v3994_v17  ;;  %v4016_v37 = vsel %vm696_vm2, %v4011_v18, 0 }
0x2284   :  { %6575 = vmatpush3.bf16.msra.mxu0 %v4016_v37 }
0x2285   :  { %6586 = vmatprep.subr.bf16.mxu0 %v7385_v0 }
0x2286   :  { %v4109_v55 = vpop.permute.xlu1 %4108 }
0x2287   :  { %v4114_v59 = vsel %vm573_vm1, %v4109_v55, 0 }
0x228a   :  { %v4159_v62 = vpop.permute.xlu1 %4158 }
0x228b   :  { %v4164_v24 = vsel %vm573_vm1, %v4159_v62, 0 }
0x228d   :  { %v7091_v41 = vpop.eup %7090 }
0x228e   :  { %v3998_v43 = vsel %vm668_vm3, %v7091_v41, 0.0  ;;  %v4107_v44 = vpop.permute.xlu1 %4106 }
0x228f   :  { %3999 = vadd.xlane.f32.xlu0 %v3998_v43 }
0x2292   :  { %v3991_v40 = vpop.xlane.xlu0 %3990 }
0x2293   :  { %v3993_v46 = vsub.f32 %v3985_v28, %v3991_v40 }
0x2295   :  { %v3996_v47 = vmul.f32 1.442695, %v3993_v46 }
0x2297   :  { %7092 = vpow2.f32 %v3996_v47 }
0x22a1   :  { %v7093_v8 = vpop.eup %7092 }
0x22a2   :  { %v4001_v50 = vsel %vm668_vm3, %v7093_v8, 0.0 }
0x22a3   :  { %4002 = vadd.xlane.f32.xlu0 %v4001_v50 }
0x22b9   :  { %4058 = vrot.lane.b32.xlu0 %v8162_v45, %s7390_s1 }
0x22bd   :  { %4156 = vrot.lane.b32.xlu0 %v8137_v6, %s7376_s29 }
0x231c   :  { %v4000_v52 = vpop.xlane.xlu0 %3999 }
0x231d   :  { %7094 = vrcp.f32 %v4000_v52 }
0x2327   :  { %v7095_v54 = vpop.eup %7094 }
0x2328   :  { %v4005_v56 = vmul.f32 %v7095_v54, %v7091_v41 }
0x232a   :  { %v4008_v57 = vpack.c.bf16 %v4005_v56, %v4005_v56 }
0x232c   :  { %6577 = vmatmul.mubr.msk.bf16.vlgmr.msra.gmra.mrb[96].mxu0 %vm668_vm3, %v4008_v57 }
0x232d   :  { %6587 = vmatpush3.bf16.xpose.msra.mxu0 %v4114_v59  ;;  %6588 = vmatprep.mubr.msk.bf16.mxu0 %vm7386_vm0, %v7385_v0 }
0x232e   :  { %6598 = vmatprep.subr.bf16.mxu0 %v7385_v0 }
0x2330   :  { %v4003_v2 = vpop.xlane.xlu0 %4002 }
0x2331   :  { %7096 = vrcp.f32 %v4003_v2 }
0x2334   :  { %v4059_v4 = vpop.permute.xlu0 %4058  ;;  %6589 = vmatmul.mubr.msk.bf16.vlgmr.msra.gmra.mrb[100].mxu0 %vm573_vm1, %v4107_v44 }
0x2335   :  { %v4064_v9 = vsel %vm696_vm2, %v4059_v4, 0  ;;  %6600 = vmatprep.mubr.msk.bf16.mxu0 %vm7386_vm0, %v7385_v0 }
0x2336   :  { %6581 = vmatpush3.bf16.msra.mxu1 %v4064_v9 }
0x2337   :  { %6592 = vmatprep.subr.bf16.mxu1 %v7385_v0 }
0x2338   :  { %v4157_v25 = vpop.permute.xlu0 %4156 }
0x233b   :  { %v7097_v14 = vpop.eup %7096 }
0x233c   :  { %v4007_v19 = vmul.f32 %v7097_v14, %v7093_v8 }
0x233e   :  { %v4009_v20 = vpack.c.bf16 %v4007_v19, %v4007_v19 }
0x2340   :  { %6583 = vmatmul.mubr.msk.bf16.vlgmr.msra.gmra.mrb[120].mxu1 %vm668_vm3, %v4009_v20 }
0x2341   :  { %6593 = vmatpush3.bf16.xpose.msra.mxu1 %v4164_v24  ;;  %6594 = vmatprep.mubr.msk.bf16.mxu1 %vm7386_vm0, %v7385_v0 }
0x2342   :  { %6604 = vmatprep.subr.bf16.mxu1 %v7385_v0 }
0x2348   :  { %6595 = vmatmul.mubr.msk.bf16.vlgmr.msra.gmra.mrb[124].mxu1 %vm573_vm1, %v4157_v25 }
0x2349   :  { %6606 = vmatprep.mubr.msk.bf16.mxu1 %vm7386_vm0, %v7385_v0 }
0x23ff   :  { %v8305_v26 = vpop.f32.mrb[96].mxu0 }
0x2400   :  { %v6578_v3 = vpop.f32.mrb[97].mxu0 }
0x2401   :  { %v4055_v7 = vpop.f32.mrb[98].mxu0 }
0x2402   :  { %v6579_v29 = vpop.f32.mrb[99].mxu0 }
0x2407   :  { %v4150_v13 = vpop.f32.mrb[100].mxu0 }
0x2408   :  { %v4206_v31 = vmul.f32 0.25, %v4150_v13  ;;  %v6590_v42 = vpop.f32.mrb[101].mxu0 }
0x2409   :  { %v4153_v60 = vpop.f32.mrb[102].mxu0 }
0x240a   :  { %v6591_v61 = vpop.f32.mrb[103].mxu0  ;;  %v4208_v23 = vsel %vm668_vm3, %v4206_v31, -inf }
0x240b   :  { %4209 = vmax.xlane.f32.xlu1 %v4208_v23 }
0x2413   :  { %v8308_v27 = vpop.f32.mrb[120].mxu1 }
0x2414   :  { %v6792_v28 = vpack.i.bf16 %v8308_v27, %v8305_v26  ;;  %v6584_v35 = vpop.f32.mrb[121].mxu1 }
0x2415   :  { %v4103_v36 = vpop.f32.mrb[122].mxu1 }
0x2416   :  { %v6585_v38 = vpop.f32.mrb[123].mxu1 }
0x241b   :  { %v4200_v12 = vpop.f32.mrb[124].mxu1 }
0x241c   :  { %v4207_v39 = vmul.f32 0.25, %v4200_v12  ;;  %v6596_v11 = vpop.f32.mrb[125].mxu1  ;;  %4232 = vrot.lane.b32.xlu1 %v8135_v5, %s7376_s29 }
0x241d   :  { %v4203_v17 = vpop.f32.mrb[126].mxu1 }
0x241e   :  { %v6597_v18 = vpop.f32.mrb[127].mxu1  ;;  %v4211_v37 = vsel %vm668_vm3, %v4207_v39, -inf }
0x241f   :  { %4212 = vmax.xlane.f32.xlu0 %v4211_v37 }
0x2420   :  { %4330 = vrot.lane.b32.xlu1 %v8119_v33, %s7391_s20 }
0x2424   :  { %4380 = vrot.lane.b32.xlu1 %v8124_v51, %s7391_s20 }
0x2428   :  { %4328 = vrot.lane.b32.xlu1 %v8126_v10, %s7391_s20 }
0x2498   :  { %v4210_v41 = vpop.xlane.xlu1 %4209 }
0x2499   :  { %v4214_v43 = vsub.f32 %v4206_v31, %v4210_v41 }
0x249b   :  { %v4216_v40 = vmul.f32 1.442695, %v4214_v43 }
0x249c   :  { %v4233_v46 = vpop.permute.xlu1 %4232 }
0x249d   :  { %7098 = vpow2.f32 %v4216_v40  ;;  %v4238_v47 = vsel %vm696_vm2, %v4233_v46, 0 }
0x249e   :  { %6599 = vmatpush3.bf16.msra.mxu0 %v4238_v47 }
0x249f   :  { %6610 = vmatprep.subr.bf16.mxu0 %v7385_v0 }
0x24a0   :  { %v4331_v2 = vpop.permute.xlu1 %4330 }
0x24a1   :  { %v4336_v9 = vsel %vm573_vm1, %v4331_v2, 0 }
0x24a4   :  { %v4381_v14 = vpop.permute.xlu1 %4380 }
0x24a5   :  { %v4386_v13 = vsel %vm573_vm1, %v4381_v14, 0 }
0x24a7   :  { %v7099_v8 = vpop.eup %7098 }
0x24a8   :  { %v4220_v50 = vsel %vm668_vm3, %v7099_v8, 0.0  ;;  %v4329_v20 = vpop.permute.xlu1 %4328 }
0x24a9   :  { %4221 = vadd.xlane.f32.xlu0 %v4220_v50 }
0x24ac   :  { %v4213_v52 = vpop.xlane.xlu0 %4212 }
0x24ad   :  { %v4215_v54 = vsub.f32 %v4207_v39, %v4213_v52 }
0x24af   :  { %v4218_v55 = vmul.f32 1.442695, %v4215_v54 }
0x24b1   :  { %7100 = vpow2.f32 %v4218_v55 }
0x24bb   :  { %v7101_v56 = vpop.eup %7100 }
0x24bc   :  { %v4223_v57 = vsel %vm668_vm3, %v7101_v56, 0.0 }
0x24bd   :  { %4224 = vadd.xlane.f32.xlu0 %v4223_v57 }
0x24d3   :  { %4280 = vrot.lane.b32.xlu0 %v8162_v45, %s7376_s29 }
0x24d7   :  { %4378 = vrot.lane.b32.xlu0 %v8137_v6, %s7391_s20 }
0x2536   :  { %v4222_v59 = vpop.xlane.xlu0 %4221 }
0x2537   :  { %7102 = vrcp.f32 %v4222_v59 }
0x2541   :  { %v7103_v62 = vpop.eup %7102 }
0x2542   :  { %v4227_v44 = vmul.f32 %v7103_v62, %v7099_v8 }
0x2544   :  { %v4230_v4 = vpack.c.bf16 %v4227_v44, %v4227_v44 }
0x2546   :  { %6601 = vmatmul.mubr.msk.bf16.vlgmr.msra.gmra.mrb[104].mxu0 %vm668_vm3, %v4230_v4 }
0x2547   :  { %6611 = vmatpush3.bf16.xpose.msra.mxu0 %v4336_v9  ;;  %6612 = vmatprep.mubr.msk.bf16.mxu0 %vm7386_vm0, %v7385_v0 }
0x2548   :  { %6622 = vmatprep.subr.bf16.mxu0 %v7385_v0 }
0x254a   :  { %v4225_v19 = vpop.xlane.xlu0 %4224 }
0x254b   :  { %7104 = vrcp.f32 %v4225_v19 }
0x254e   :  { %v4281_v24 = vpop.permute.xlu0 %4280  ;;  %6613 = vmatmul.mubr.msk.bf16.vlgmr.msra.gmra.mrb[108].mxu0 %vm573_vm1, %v4329_v20 }
0x254f   :  { %v4286_v25 = vsel %vm696_vm2, %v4281_v24, 0  ;;  %6624 = vmatprep.mubr.msk.bf16.mxu0 %vm7386_vm0, %v7385_v0 }
0x2550   :  { %6605 = vmatpush3.bf16.msra.mxu1 %v4286_v25 }
0x2551   :  { %6616 = vmatprep.subr.bf16.mxu1 %v7385_v0 }
0x2552   :  { %v4379_v31 = vpop.permute.xlu0 %4378 }
0x2555   :  { %v7105_v3 = vpop.eup %7104 }
0x2556   :  { %v4229_v7 = vmul.f32 %v7105_v3, %v7101_v56 }
0x2558   :  { %v4231_v29 = vpack.c.bf16 %v4229_v7, %v4229_v7 }
0x255a   :  { %6607 = vmatmul.mubr.msk.bf16.vlgmr.msra.gmra.mrb[128].mxu1 %vm668_vm3, %v4231_v29 }
0x255b   :  { %6617 = vmatpush3.bf16.xpose.msra.mxu1 %v4386_v13  ;;  %6618 = vmatprep.mubr.msk.bf16.mxu1 %vm7386_vm0, %v7385_v0 }
0x255c   :  { %6628 = vmatprep.subr.bf16.mxu1 %v7385_v0 }
0x2562   :  { %6619 = vmatmul.mubr.msk.bf16.vlgmr.msra.gmra.mrb[132].mxu1 %vm573_vm1, %v4379_v31 }
0x2563   :  { %6630 = vmatprep.mubr.msk.bf16.mxu1 %vm7386_vm0, %v7385_v0 }
0x2619   :  { %v8347_v42 = vpop.f32.mrb[104].mxu0 }
0x261a   :  { %v6602_v60 = vpop.f32.mrb[105].mxu0 }
0x261b   :  { %v4277_v61 = vpop.f32.mrb[106].mxu0 }
0x261c   :  { %v6603_v23 = vpop.f32.mrb[107].mxu0 }
0x2621   :  { %v4372_v35 = vpop.f32.mrb[108].mxu0 }
0x2622   :  { %v4428_v36 = vmul.f32 0.25, %v4372_v35  ;;  %v6614_v38 = vpop.f32.mrb[109].mxu0 }
0x2623   :  { %v4375_v12 = vpop.f32.mrb[110].mxu0 }
0x2624   :  { %v6615_v39 = vpop.f32.mrb[111].mxu0  ;;  %v4430_v11 = vsel %vm668_vm3, %v4428_v36, -inf }
0x2625   :  { %4431 = vmax.xlane.f32.xlu1 %v4430_v11 }
0x262d   :  { %v8350_v17 = vpop.f32.mrb[128].mxu1 }
0x262e   :  { %v6797_v18 = vpack.i.bf16 %v8350_v17, %v8347_v42  ;;  %v6608_v37 = vpop.f32.mrb[129].mxu1 }
0x262f   :  { %v4325_v41 = vpop.f32.mrb[130].mxu1 }
0x2630   :  { %v6609_v43 = vpop.f32.mrb[131].mxu1 }
0x2635   :  { %v4422_v40 = vpop.f32.mrb[132].mxu1 }
0x2636   :  { %v4429_v46 = vmul.f32 0.25, %v4422_v40  ;;  %v6620_v47 = vpop.f32.mrb[133].mxu1  ;;  %4454 = vrot.lane.b32.xlu1 %v8135_v5, %s7391_s20 }
0x2637   :  { %v4425_v8 = vpop.f32.mrb[134].mxu1 }
0x2638   :  { %v6621_v50 = vpop.f32.mrb[135].mxu1  ;;  %v4433_v52 = vsel %vm668_vm3, %v4429_v46, -inf }
0x2639   :  { %4434 = vmax.xlane.f32.xlu0 %v4433_v52 }
0x263a   :  { %4552 = vrot.lane.b32.xlu1 %v8119_v33, %s7392_s22 }
0x263e   :  { %4602 = vrot.lane.b32.xlu1 %v8124_v51, %s7392_s22 }
0x2642   :  { %4550 = vrot.lane.b32.xlu1 %v8126_v10, %s7392_s22 }
0x26b2   :  { %v4432_v54 = vpop.xlane.xlu1 %4431 }
0x26b3   :  { %v4436_v55 = vsub.f32 %v4428_v36, %v4432_v54 }
0x26b5   :  { %v4438_v56 = vmul.f32 1.442695, %v4436_v55 }
0x26b6   :  { %v4455_v57 = vpop.permute.xlu1 %4454 }
0x26b7   :  { %7106 = vpow2.f32 %v4438_v56  ;;  %v4460_v59 = vsel %vm696_vm2, %v4455_v57, 0 }
0x26b8   :  { %6623 = vmatpush3.bf16.msra.mxu0 %v4460_v59 }
0x26b9   :  { %6634 = vmatprep.subr.bf16.mxu0 %v7385_v0 }
0x26ba   :  { %v4553_v25 = vpop.permute.xlu1 %4552 }
0x26bb   :  { %v4558_v29 = vsel %vm573_vm1, %v4553_v25, 0 }
0x26be   :  { %v4603_v13 = vpop.permute.xlu1 %4602 }
0x26bf   :  { %v4608_v12 = vsel %vm573_vm1, %v4603_v13, 0 }
0x26c1   :  { %v7107_v62 = vpop.eup %7106 }
0x26c2   :  { %v4442_v2 = vsel %vm668_vm3, %v7107_v62, 0.0  ;;  %v4551_v60 = vpop.permute.xlu1 %4550 }
0x26c3   :  { %4443 = vadd.xlane.f32.xlu0 %v4442_v2 }
0x26c6   :  { %v4435_v44 = vpop.xlane.xlu0 %4434 }
0x26c7   :  { %v4437_v4 = vsub.f32 %v4429_v46, %v4435_v44 }
0x26c9   :  { %v4440_v9 = vmul.f32 1.442695, %v4437_v4 }
0x26cb   :  { %7108 = vpow2.f32 %v4440_v9 }
0x26d5   :  { %v7109_v14 = vpop.eup %7108 }
0x26d6   :  { %v4445_v19 = vsel %vm668_vm3, %v7109_v14, 0.0 }
0x26d7   :  { %4446 = vadd.xlane.f32.xlu0 %v4445_v19 }
0x26ed   :  { %4502 = vrot.lane.b32.xlu0 %v8162_v45, %s7391_s20 }
0x26f1   :  { %4600 = vrot.lane.b32.xlu0 %v8137_v6, %s7392_s22 }
0x2750   :  { %v4444_v20 = vpop.xlane.xlu0 %4443 }
0x2751   :  { %7110 = vrcp.f32 %v4444_v20 }
0x275b   :  { %v7111_v24 = vpop.eup %7110 }
0x275c   :  { %v4449_v3 = vmul.f32 %v7111_v24, %v7107_v62 }
0x275e   :  { %v4452_v7 = vpack.c.bf16 %v4449_v3, %v4449_v3 }
0x2760   :  { %6625 = vmatmul.mubr.msk.bf16.vlgmr.msra.gmra.mrb[112].mxu0 %vm668_vm3, %v4452_v7 }
0x2761   :  { %6635 = vmatpush3.bf16.xpose.msra.mxu0 %v4558_v29  ;;  %6636 = vmatprep.mubr.msk.bf16.mxu0 %vm7386_vm0, %v7385_v0 }
0x2762   :  { %6646 = vmatprep.subr.bf16.mxu0 %v7385_v0 }
0x2764   :  { %v4447_v31 = vpop.xlane.xlu0 %4446 }
0x2765   :  { %7112 = vrcp.f32 %v4447_v31 }
0x2768   :  { %v4503_v61 = vpop.permute.xlu0 %4502  ;;  %6637 = vmatmul.mubr.msk.bf16.vlgmr.msra.gmra.mrb[116].mxu0 %vm573_vm1, %v4551_v60 }
0x2769   :  { %v4508_v23 = vsel %vm696_vm2, %v4503_v61, 0  ;;  %6648 = vmatprep.mubr.msk.bf16.mxu0 %vm7386_vm0, %v7385_v0 }
0x276a   :  { %6629 = vmatpush3.bf16.msra.mxu1 %v4508_v23 }
0x276b   :  { %6640 = vmatprep.subr.bf16.mxu1 %v7385_v0 }
0x276c   :  { %v4601_v39 = vpop.permute.xlu0 %4600 }
0x276f   :  { %v7113_v35 = vpop.eup %7112 }
0x2770   :  { %v4451_v36 = vmul.f32 %v7113_v35, %v7109_v14 }
0x2772   :  { %v4453_v38 = vpack.c.bf16 %v4451_v36, %v4451_v36 }
0x2774   :  { %6631 = vmatmul.mubr.msk.bf16.vlgmr.msra.gmra.mrb[136].mxu1 %vm668_vm3, %v4453_v38 }
0x2775   :  { %6641 = vmatpush3.bf16.xpose.msra.mxu1 %v4608_v12  ;;  %6642 = vmatprep.mubr.msk.bf16.mxu1 %vm7386_vm0, %v7385_v0 }
0x2776   :  { %6652 = vmatprep.subr.bf16.mxu1 %v7385_v0 }
0x277c   :  { %6643 = vmatmul.mubr.msk.bf16.vlgmr.msra.gmra.mrb[140].mxu1 %vm573_vm1, %v4601_v39 }
0x277d   :  { %6654 = vmatprep.mubr.msk.bf16.mxu1 %vm7386_vm0, %v7385_v0 }
0x2833   :  { %v8389_v11 = vpop.f32.mrb[112].mxu0 }
0x2834   :  { %v6626_v37 = vpop.f32.mrb[113].mxu0 }
0x2835   :  { %v4499_v41 = vpop.f32.mrb[114].mxu0 }
0x2836   :  { %v6627_v43 = vpop.f32.mrb[115].mxu0 }
0x283b   :  { %v4594_v40 = vpop.f32.mrb[116].mxu0 }
0x283c   :  { %v4650_v46 = vmul.f32 0.25, %v4594_v40  ;;  %v6638_v47 = vpop.f32.mrb[117].mxu0 }
0x283d   :  { %v4597_v8 = vpop.f32.mrb[118].mxu0 }
0x283e   :  { %v6639_v50 = vpop.f32.mrb[119].mxu0  ;;  %v4652_v52 = vsel %vm668_vm3, %v4650_v46, -inf }
0x283f   :  { %4653 = vmax.xlane.f32.xlu1 %v4652_v52 }
0x2847   :  { %v8392_v54 = vpop.f32.mrb[136].mxu1 }
0x2848   :  { %v6802_v55 = vpack.i.bf16 %v8392_v54, %v8389_v11  ;;  %v6632_v56 = vpop.f32.mrb[137].mxu1 }
0x2849   :  { %v4547_v57 = vpop.f32.mrb[138].mxu1 }
0x284a   :  { %v6633_v59 = vpop.f32.mrb[139].mxu1 }
0x284f   :  { %v4644_v62 = vpop.f32.mrb[140].mxu1 }
0x2850   :  { %v4651_v2 = vmul.f32 0.25, %v4644_v62  ;;  %v6644_v44 = vpop.f32.mrb[141].mxu1  ;;  %4676 = vrot.lane.b32.xlu1 %v8135_v5, %s7392_s22 }
0x2851   :  { %v4647_v4 = vpop.f32.mrb[142].mxu1 }
0x2852   :  { %v6645_v9 = vpop.f32.mrb[143].mxu1  ;;  %v4655_v14 = vsel %vm668_vm3, %v4651_v2, -inf }
0x2853   :  { %4656 = vmax.xlane.f32.xlu0 %v4655_v14 }
0x2854   :  { %4774 = vrot.lane.b32.xlu1 %v8119_v33, %s7393_s4 }
0x2858   :  { %4824 = vrot.lane.b32.xlu1 %v8124_v51, %s7393_s4 }
0x285c   :  { %4772 = vrot.lane.b32.xlu1 %v8126_v10, %s7393_s4 }
0x28cc   :  { %v4654_v19 = vpop.xlane.xlu1 %4653 }
0x28cd   :  { %v4658_v20 = vsub.f32 %v4650_v46, %v4654_v19 }
0x28cf   :  { %v4660_v24 = vmul.f32 1.442695, %v4658_v20 }
0x28d0   :  { %v4677_v25 = vpop.permute.xlu1 %4676 }
0x28d1   :  { %7114 = vpow2.f32 %v4660_v24  ;;  %v4682_v3 = vsel %vm696_vm2, %v4677_v25, 0 }
0x28d2   :  { %6647 = vmatpush3.bf16.msra.mxu0 %v4682_v3 }
0x28d3   :  { %6658 = vmatprep.subr.bf16.mxu0 %v7385_v0 }
0x28d4   :  { %v4775_v23 = vpop.permute.xlu1 %4774 }
0x28d5   :  { %v4780_v38 = vsel %vm573_vm1, %v4775_v23, 0 }
0x28d8   :  { %v4825_v12 = vpop.permute.xlu1 %4824 }
0x28d9   :  { %v4830_v47 = vsel %vm573_vm1, %v4825_v12, 0  ;;  %v6941_v12 = vld [vmem:[#allocation11 + $0x58] sm:$0xff]  }
0x28db   :  { %v7115_v7 = vpop.eup %7114 }
0x28dc   :  { %v4664_v29 = vsel %vm668_vm3, %v7115_v7, 0.0 }
0x28dd   :  { %4665 = vadd.xlane.f32.xlu0 %v4664_v29 }
0x28e0   :  { %v4657_v33 = vpop.xlane.xlu0 %4656 }
0x28e1   :  { %v4659_v13 = vsub.f32 %v4651_v2, %v4657_v33 }
0x28e3   :  { %v4662_v51 = vmul.f32 1.442695, %v4659_v13 }
0x28e5   :  { %7116 = vpow2.f32 %v4662_v51 }
0x28ef   :  { %v7117_v31 = vpop.eup %7116 }
0x28f0   :  { %v4667_v10 = vsel %vm668_vm3, %v7117_v31, 0.0 }
0x28f1   :  { %4668 = vadd.xlane.f32.xlu0 %v4667_v10 }
0x2907   :  { %4724 = vrot.lane.b32.xlu0 %v8162_v45, %s7392_s22 }
0x290b   :  { %4822 = vrot.lane.b32.xlu0 %v8137_v6, %s7393_s4  ;;  %v4773_v6 = vpop.permute.xlu1 %4772 }
0x296a   :  { %v4666_v60 = vpop.xlane.xlu0 %4665 }
0x296b   :  { %7118 = vrcp.f32 %v4666_v60 }
0x2975   :  { %v7119_v61 = vpop.eup %7118 }
0x2976   :  { %v4671_v35 = vmul.f32 %v7119_v61, %v7115_v7 }
0x2978   :  { %v4674_v36 = vpack.c.bf16 %v4671_v35, %v4671_v35  ;;  %v6938_v35 = vld [vmem:[#allocation11 + $0x40] sm:$0xff]  }
0x297a   :  { %6649 = vmatmul.mubr.msk.bf16.vlgmr.msra.gmra.mrb[120].mxu0 %vm668_vm3, %v4674_v36  ;;  %v6939_v36 = vld [vmem:[#allocation11 + $0x48] sm:$0xff]  }
0x297b   :  { %6659 = vmatpush3.bf16.xpose.msra.mxu0 %v4780_v38  ;;  %6660 = vmatprep.mubr.msk.bf16.mxu0 %vm7386_vm0, %v7385_v0  ;;  %v6940_v38 = vld [vmem:[#allocation11 + $0x50] sm:$0xff]  }
0x297c   :  { %6670 = vmatprep.subr.bf16.mxu0 %v7385_v0 }
0x297e   :  { %v4669_v39 = vpop.xlane.xlu0 %4668 }
0x297f   :  { %7120 = vrcp.f32 %v4669_v39  ;;  %v6942_v39 = vld [vmem:[#allocation11 + $0x60] sm:$0xff]  }
0x2982   :  { %v4725_v37 = vpop.permute.xlu0 %4724  ;;  %6661 = vmatmul.mubr.msk.bf16.vlgmr.msra.gmra.mrb[124].mxu0 %vm573_vm1, %v4773_v6  ;;  %v6943_v6 = vld [vmem:[#allocation11 + $0x68] sm:$0xff]  }
0x2983   :  { %v4730_v41 = vsel %vm696_vm2, %v4725_v37, 0  ;;  %6672 = vmatprep.mubr.msk.bf16.mxu0 %vm7386_vm0, %v7385_v0 }
0x2984   :  { %6653 = vmatpush3.bf16.msra.mxu1 %v4730_v41 }
0x2985   :  { %6664 = vmatprep.subr.bf16.mxu1 %v7385_v0 }
0x2986   :  { %v4823_v8 = vpop.permute.xlu0 %4822 }
0x2989   :  { %v7121_v43 = vpop.eup %7120 }
0x298a   :  { %v4673_v40 = vmul.f32 %v7121_v43, %v7117_v31 }
0x298c   :  { %v4675_v46 = vpack.c.bf16 %v4673_v40, %v4673_v40 }
0x298e   :  { %6655 = vmatmul.mubr.msk.bf16.vlgmr.msra.gmra.mrb[144].mxu1 %vm668_vm3, %v4675_v46  ;;  %v6945_v46 = vld [vmem:[#allocation11 + $0x78] sm:$0xff]  }
0x298f   :  { %6665 = vmatpush3.bf16.xpose.msra.mxu1 %v4830_v47  ;;  %6666 = vmatprep.mubr.msk.bf16.mxu1 %vm7386_vm0, %v7385_v0 }
0x2990   :  { %6676 = vmatprep.subr.bf16.mxu1 %v7385_v0 }
0x2996   :  { %6667 = vmatmul.mubr.msk.bf16.vlgmr.msra.gmra.mrb[148].mxu1 %vm573_vm1, %v4823_v8 }
0x2997   :  { %6678 = vmatprep.mubr.msk.bf16.mxu1 %vm7386_vm0, %v7385_v0 }
0x2a4d   :  { %v4718_v50 = vpop.f32.mrb[120].mxu0 }
0x2a4e   :  { %v6650_v52 = vpop.f32.mrb[121].mxu0 }
0x2a4f   :  { %v4721_v56 = vpop.f32.mrb[122].mxu0 }
0x2a50   :  { %v6651_v57 = vpop.f32.mrb[123].mxu0 }
0x2a55   :  { %v4816_v59 = vpop.f32.mrb[124].mxu0 }
0x2a56   :  { %v4872_v62 = vmul.f32 0.25, %v4816_v59  ;;  %v6662_v2 = vpop.f32.mrb[125].mxu0 }
0x2a57   :  { %v4819_v44 = vpop.f32.mrb[126].mxu0 }
0x2a58   :  { %v6663_v4 = vpop.f32.mrb[127].mxu0  ;;  %v4874_v9 = vsel %vm668_vm3, %v4872_v62, -inf }
0x2a59   :  { %4875 = vmax.xlane.f32.xlu1 %v4874_v9 }
0x2a61   :  { %v4766_v14 = vpop.f32.mrb[144].mxu1 }
0x2a62   :  { %v6807_v19 = vpack.i.bf16 %v4766_v14, %v4718_v50  ;;  %v6656_v20 = vpop.f32.mrb[145].mxu1 }
0x2a63   :  { %v4769_v24 = vpop.f32.mrb[146].mxu1 }
0x2a64   :  { %v6657_v25 = vpop.f32.mrb[147].mxu1 }
0x2a69   :  { %v4866_v3 = vpop.f32.mrb[148].mxu1 }
0x2a6a   :  { %v4873_v7 = vmul.f32 0.25, %v4866_v3  ;;  %v6668_v29 = vpop.f32.mrb[149].mxu1  ;;  %4898 = vrot.lane.b32.xlu1 %v8135_v5, %s7393_s4 }
0x2a6b   :  { %v4869_v33 = vpop.f32.mrb[150].mxu1 }
0x2a6c   :  { %v6669_v13 = vpop.f32.mrb[151].mxu1  ;;  %v4877_v51 = vsel %vm668_vm3, %v4873_v7, -inf }
0x2a6d   :  { %4878 = vmax.xlane.f32.xlu0 %v4877_v51 }
0x2a6e   :  { %6783 = vrot.lane.b32.xlu1 %v6782_v58, %s7393_s4 }
0x2a72   :  { %6788 = vrot.lane.b32.xlu1 %v6787_v1, %s7392_s22 }
0x2a76   :  { %6793 = vrot.lane.b32.xlu1 %v6792_v28, %s7391_s20 }
0x2a7a   :  { %6803 = vrot.lane.b32.xlu1 %v6802_v55, %s7390_s1 }
0x2ae6   :  { %v4876_v5 = vpop.xlane.xlu1 %4875 }
0x2ae7   :  { %v4880_v31 = vsub.f32 %v4872_v62, %v4876_v5 }
0x2ae9   :  { %v4882_v10 = vmul.f32 1.442695, %v4880_v31 }
0x2aea   :  { %v4899_v22 = vpop.permute.xlu1 %4898 }
0x2aeb   :  { %7122 = vpow2.f32 %v4882_v10  ;;  %v4904_v32 = vsel %vm696_vm2, %v4899_v22, 0 }
0x2aec   :  { %6671 = vmatpush3.bf16.msra.mxu0 %v4904_v32 }
0x2aed   :  { %6682 = vmatprep.subr.bf16.mxu0 %v7385_v0 }
0x2aee   :  { %v6784_v57 = vpop.permute.xlu1 %6783 }
0x2aef   :  { %v6786_v44 = vunpack.i.h.bf16 %v6784_v57  ;;  %v6785_v4 = vunpack.i.l.bf16 %v6784_v57  ;;  %v6960_v57 = vld [vmem:[#allocation13 + $0xc4] ss:$8 sps:$4 sm:$0xff]  }
0x2af1   :  { %v5051_v3 = vsel %vm573_vm1, %v8184_v48, %v6786_v44  ;;  %v6966_v44 = vld [vmem:[#allocation13 + $0xe4] ss:$8 sps:$4 sm:$0xff]  }
0x2af2   :  { %v6789_v59 = vpop.permute.xlu1 %6788 }
0x2af3   :  { %v6791_v9 = vunpack.i.h.bf16 %v6789_v59  ;;  %v6790_v14 = vunpack.i.l.bf16 %v6789_v59  ;;  %v6958_v59 = vld [vmem:[#allocation13 + $0xc0] ss:$8 sps:$4 sm:$0xff]  }
0x2af5   :  { %v7123_v58 = vpop.eup %7122  ;;  %v5053_v13 = vsel %vm2404_vm4, %v5051_v3, %v6791_v9  ;;  %v6969_v9 = vld [vmem:[#allocation13 + $0xf4] ss:$8 sps:$4 sm:$0xff]  }
0x2af6   :  { %v4886_v21 = vsel %vm668_vm3, %v7123_v58, 0.0  ;;  %v6794_v2 = vpop.permute.xlu1 %6793  ;;  %v6974_v3 = vld [vmem:[#allocation14 + $0xd0] sm:$0xff]  }
0x2af7   :  { %4887 = vadd.xlane.f32.xlu0 %v4886_v21  ;;  %v6795_v20 = vunpack.i.l.bf16 %v6794_v2 }
0x2afa   :  { %v4879_v63 = vpop.xlane.xlu0 %4878  ;;  %v6804_v51 = vpop.permute.xlu1 %6803 }
0x2afb   :  { %v4881_v1 = vsub.f32 %v4873_v7, %v4879_v63  ;;  %v5050_v7 = vsel %vm573_vm1, %v8181_v30, %v6785_v4  ;;  %v6806_v48 = vunpack.i.h.bf16 %v6804_v51  ;;  %v6805_v21 = vunpack.i.l.bf16 %v6804_v51  ;;  %v6964_v4 = vld [vmem:[#allocation13 + $0xe0] ss:$8 sps:$4 sm:$0xff]  }
0x2afc   :  { %v5052_v33 = vsel %vm2404_vm4, %v5050_v7, %v6790_v14  ;;  %v6967_v14 = vld [vmem:[#allocation13 + $0xf0] ss:$8 sps:$4 sm:$0xff]   ;;  %v6979_v51 = vld [vmem:[#allocation14 + $0xa0] sm:$0xff]  }
0x2afd   :  { %v4884_v26 = vmul.f32 1.442695, %v4881_v1  ;;  %v5054_v5 = vsel %vm2407_vm5, %v5052_v33, %v6795_v20  ;;  %v6971_v20 = vld [vmem:[#allocation14 + $0x80] sm:$0xff]   ;;  %v6975_v7 = vld [vmem:[#allocation14 + $0x90] sm:$0xff]   ;;  %v6977_v33 = vld [vmem:[#allocation14 + $0x98] sm:$0xff]  }
0x2aff   :  { %7124 = vpow2.f32 %v4884_v26 }
0x2b09   :  { %v7125_v27 = vpop.eup %7124 }
0x2b0a   :  { %v4889_v28 = vsel %vm668_vm3, %v7125_v27, 0.0 }
0x2b0b   :  { %4890 = vadd.xlane.f32.xlu0 %v4889_v28 }
0x2b21   :  { %4946 = vrot.lane.b32.xlu0 %v8162_v45, %s7393_s4 }
0x2b25   :  { %6798 = vrot.lane.b32.xlu0 %v6797_v18, %s7376_s29 }
0x2b29   :  { %6808 = vrot.lane.b32.xlu0 %v6807_v19, %s7389_s19  ;;  %v6796_v19 = vunpack.i.h.bf16 %v6794_v2  ;;  %v6961_v2 = vld [vmem:[#allocation13 + $0xd0] ss:$8 sps:$4 sm:$0xff]  }
0x2b2b   :  { %v5055_v31 = vsel %vm2407_vm5, %v5053_v13, %v6796_v19  ;;  %v6970_v19 = vld [vmem:[#allocation14 + $0xc0] sm:$0xff]  }
0x2b2c   :  { %v6978_v13 = vld [vmem:[#allocation14 + $0xe0] sm:$0xff]  }
0x2b84   :  { %v4888_v11 = vpop.xlane.xlu0 %4887 }
0x2b85   :  { %7126 = vrcp.f32 %v4888_v11 }
0x2b8f   :  { %v7127_v54 = vpop.eup %7126 }
0x2b90   :  { %v4893_v55 = vmul.f32 %v7127_v54, %v7123_v58 }
0x2b92   :  { %v4896_v60 = vpack.c.bf16 %v4893_v55, %v4893_v55 }
0x2b94   :  { %6673 = vmatmul.mubr.msk.bf16.vlgmr.msra.gmra.mrb[128].mxu0 %vm668_vm3, %v4896_v60 }
0x2b95   :  { %6698 = vmatprep.mubr.msk.bf16.mxu0 %vm7386_vm0, %v7385_v0  ;;  %6683 = vmatpush3.bf16.msra.mxu0 %v6938_v35 }
0x2b96   :  { %6684 = vmatprep.subr.bf16.mxu0 %v7385_v0 }
0x2b98   :  { %v4891_v61 = vpop.xlane.xlu0 %4890 }
0x2b99   :  { %7128 = vrcp.f32 %v4891_v61  ;;  %6685 = vmatpush3.bf16.msra.mxu0 %v6939_v36  ;;  %v5931_v61 = vld [vmem:[%s8559_s7 + $0x1] ss:$0 sm:$0xff] }
0x2b9a   :  { %6686 = vmatprep.subr.bf16.mxu0 %v7385_v0 }
0x2b9c   :  { %v4947_v45 = vpop.permute.xlu0 %4946 }
0x2b9d   :  { %v4952_v23 = vsel %vm696_vm2, %v4947_v45, 0  ;;  %6687 = vmatpush3.bf16.msra.mxu0 %v6940_v38 }
0x2b9e   :  { %6677 = vmatpush3.bf16.msra.mxu1 %v4952_v23  ;;  %6688 = vmatprep.subr.bf16.mxu0 %v7385_v0 }
0x2ba0   :  { %v6799_v62 = vpop.permute.xlu0 %6798 }
0x2ba1   :  { %6689 = vmatpush3.bf16.msra.mxu0 %v6941_v12  ;;  %v6801_v24 = vunpack.i.h.bf16 %v6799_v62  ;;  %v6800_v25 = vunpack.i.l.bf16 %v6799_v62  ;;  %v6946_v12 = vld [vmem:[#allocation13 + $0x80] ss:$8 sps:$4 sm:$0xff]   ;;  %v6963_v62 = vld [vmem:[#allocation13 + $0xd4] ss:$8 sps:$4 sm:$0xff]  }
0x2ba2   :  { %6690 = vmatprep.subr.bf16.mxu0 %v7385_v0 }
0x2ba3   :  { %v7129_v42 = vpop.eup %7128  ;;  %v5057_v10 = vsel %vm2410_vm6, %v5055_v31, %v6801_v24  ;;  %v5056_v22 = vsel %vm2410_vm6, %v5054_v5, %v6800_v25  ;;  %v6972_v24 = vld [vmem:[#allocation14 + $0xc8] sm:$0xff]  }
0x2ba4   :  { %v4895_v17 = vmul.f32 %v7129_v42, %v7125_v27  ;;  %v6809_v29 = vpop.permute.xlu0 %6808  ;;  %v5058_v30 = vsel %vm2413_vm7, %v5056_v22, %v6805_v21  ;;  %v5059_v1 = vsel %vm2413_vm7, %v5057_v10, %v6806_v48  ;;  %v6973_v25 = vld [vmem:[#allocation14 + $0x88] sm:$0xff]  }
0x2ba5   :  { %6691 = vmatpush3.bf16.msra.mxu0 %v6942_v39  ;;  %v6811_v32 = vunpack.i.h.bf16 %v6809_v29  ;;  %v6810_v58 = vunpack.i.l.bf16 %v6809_v29  ;;  %v6948_v39 = vld [vmem:[#allocation13 + $0x84] ss:$8 sps:$4 sm:$0xff]   ;;  %v6976_v29 = vld [vmem:[#allocation14 + $0xd8] sm:$0xff]  }
0x2ba6   :  { %v4897_v18 = vpack.c.bf16 %v4895_v17, %v4895_v17  ;;  %6692 = vmatprep.subr.bf16.mxu0 %v7385_v0  ;;  %5334 = vmatprep.subr.bf16.mxu1 %v6948_v39  ;;  %v6980_v5 = vld [vmem:[#allocation14 + $0xe8] sm:$0xff]  }
0x2ba7   :  { %v5060_v28 = vsel %vm2416_vm8, %v5058_v30, %v6810_v58  ;;  %v5061_v11 = vsel %vm2416_vm8, %v5059_v1, %v6811_v32  ;;  %v5942_v30 = vld [vmem:[%s8564_s12 + $0x1] ss:$0 sm:$0xff] }
0x2ba8   :  { %6679 = vmatmul.mubr.msk.bf16.vlgmr.msra.gmra.mrb[152].mxu1 %vm668_vm3, %v4897_v18 }
0x2ba9   :  { %5366 = vmatprep.mubr.bf16.mxu1 %v7387_v34  ;;  %6693 = vmatpush3.bf16.msra.mxu0 %v6943_v6  ;;  %v6944_v34 = vld [vmem:[#allocation11 + $0x70] sm:$0xff]  }
0x2baa   :  { %6694 = vmatprep.subr.bf16.mxu0 %v7385_v0  ;;  %v6951_v6 = vld [vmem:[#allocation13 + $0x94] ss:$8 sps:$4 sm:$0xff]   ;;  %5335 = vmatpush1.bf16.msra.mxu1 %v6946_v12 }
0x2bab   :  { %5336 = vmatprep.subr.bf16.mxu1 %v6951_v6 }
0x2bad   :  { %6695 = vmatpush3.bf16.msra.mxu0 %v6944_v34  ;;  %v6949_v34 = vld [vmem:[#allocation13 + $0x90] ss:$8 sps:$4 sm:$0xff]  }
0x2bae   :  { %6696 = vmatprep.subr.bf16.mxu0 %v7385_v0  ;;  %5337 = vmatpush1.bf16.msra.mxu1 %v6949_v34 }
0x2bb1   :  { %6697 = vmatpush3.bf16.msra.mxu0 %v6945_v46 }
0x2bb2   :  { %6187 = vmatprep.subr.bf16.mxu0 %v6970_v19 }
0x2c67   :  { %v4940_v37 = vpop.f32.mrb[128].mxu0 }
0x2c68   :  { %v6674_v41 = vpop.f32.mrb[129].mxu0 }
0x2c69   :  { %v4943_v43 = vpop.f32.mrb[130].mxu0 }
0x2c6a   :  { %v6675_v40 = vpop.f32.mrb[131].mxu0 }
0x2c7b   :  { %v4988_v47 = vpop.f32.mrb[152].mxu1 }
0x2c7c   :  { %v6812_v8 = vpack.i.bf16 %v4988_v47, %v4940_v37  ;;  %v6680_v50 = vpop.f32.mrb[153].mxu1 }
0x2c7d   :  { %v4991_v52 = vpop.f32.mrb[154].mxu1  ;;  %v6952_v50 = vld [vmem:[#allocation13 + $0xa0] ss:$8 sps:$4 sm:$0xff]  }
0x2c7e   :  { %6813 = vrot.lane.b32.xlu1 %v6812_v8, %s7388_s21  ;;  %v6681_v56 = vpop.f32.mrb[155].mxu1  ;;  %v6954_v8 = vld [vmem:[#allocation13 + $0xa4] ss:$8 sps:$4 sm:$0xff]   ;;  %v6957_v52 = vld [vmem:[#allocation13 + $0xb4] ss:$8 sps:$4 sm:$0xff]  }
0x2c7f   :  { %5338 = vmatprep.subr.bf16.mxu1 %v6954_v8  ;;  %v6955_v56 = vld [vmem:[#allocation13 + $0xb0] ss:$8 sps:$4 sm:$0xff]  }
0x2c80   :  { %5339 = vmatpush1.bf16.msra.mxu1 %v6952_v50 }
0x2c81   :  { %5340 = vmatprep.subr.bf16.mxu1 %v6957_v52 }
0x2c84   :  { %5341 = vmatpush1.bf16.msra.mxu1 %v6955_v56 }
0x2c85   :  { %5342 = vmatprep.subr.bf16.mxu1 %v6960_v57 }
0x2c88   :  { %5343 = vmatpush1.bf16.msra.mxu1 %v6958_v59 }
0x2c89   :  { %5344 = vmatprep.subr.bf16.mxu1 %v6963_v62 }
0x2c8c   :  { %5345 = vmatpush1.bf16.msra.mxu1 %v6961_v2 }
0x2c8d   :  { %5346 = vmatprep.subr.bf16.mxu1 %v6966_v44 }
0x2c90   :  { %5347 = vmatpush1.bf16.msra.mxu1 %v6964_v4 }
0x2c91   :  { %5348 = vmatprep.subr.bf16.mxu1 %v6969_v9 }
0x2c94   :  { %5349 = vmatpush1.bf16.msra.mxu1 %v6967_v14 }
0x2c95   :  { %6702 = vmatprep.subr.bf16.mxu1 %v7385_v0 }
0x2cf0   :  { %v6814_v63 = vpop.permute.xlu1 %6813 }
0x2cf1   :  { %v6816_v26 = vunpack.i.h.bf16 %v6814_v63  ;;  %v6815_v27 = vunpack.i.l.bf16 %v6814_v63 }
0x2cf3   :  { %v5063_v54 = vsel %vm2419_vm9, %v5061_v11, %v6816_v26  ;;  %v5062_v55 = vsel %vm2419_vm9, %v5060_v28, %v6815_v27  ;;  %v5943_v28 = vld [vmem:[%s8565_s13 + $0x1] ss:$0 sm:$0xff] }
0x2cf4   :  { %v5064_v60 = vpack.c.bf16 %v5063_v54, %v5062_v55 }
0x2cf6   :  { %6699 = vmatmul.mubr.bf16.vlgmr.msra.gmra.mrb[132].mxu0 %v5064_v60 }
0x2cf7   :  { %6188 = vmatpush3.bf16.msra.mxu0 %v6971_v20 }
0x2cf8   :  { %6189 = vmatprep.subr.bf16.mxu0 %v6972_v24 }
0x2cfb   :  { %6190 = vmatpush3.bf16.msra.mxu0 %v6973_v25 }
0x2cfc   :  { %6191 = vmatprep.subr.bf16.mxu0 %v6974_v3 }
0x2cff   :  { %6192 = vmatpush3.bf16.msra.mxu0 %v6975_v7 }
0x2d00   :  { %6193 = vmatprep.subr.bf16.mxu0 %v6976_v29  ;;  %v6986_v29 = vld [vmem:[#allocation16] sm:$0xff]  }
0x2d03   :  { %6194 = vmatpush3.bf16.msra.mxu0 %v6977_v33  ;;  %v6987_v33 = vld [vmem:[#allocation16 + $0x8] sm:$0xff]  }
0x2d04   :  { %6195 = vmatprep.subr.bf16.mxu0 %v6978_v13  ;;  %v6988_v13 = vld [vmem:[#allocation16 + $0x10] sm:$0xff]  }
0x2d07   :  { %6196 = vmatpush3.bf16.msra.mxu0 %v6979_v51  ;;  %v6989_v51 = vld [vmem:[#allocation16 + $0x18] sm:$0xff]  }
0x2d08   :  { %6197 = vmatprep.subr.bf16.mxu0 %v6980_v5  ;;  %v6990_v5 = vld [vmem:[#allocation16 + $0x20] sm:$0xff]  }
0x2dc9   :  { %v5172_v45 = vpop.f32.mrb[132].mxu0 }
0x2dca   :  { %v5173_v23 = vadd.f32 %v5931_v61, %v5172_v45  ;;  %v6700_v42 = vpop.f32.mrb[133].mxu0  ;;  %v6982_v45 = vld [vmem:[#allocation14 + $0xf0] sm:$0xff]  }
0x2dcb   :  { %v5175_v17 = vpop.f32.mrb[134].mxu0  ;;  %v6984_v42 = vld [vmem:[#allocation14 + $0xf8] sm:$0xff]  }
0x2dcc   :  { %v5179_v18 = vadd.f32 %v5173_v23, %v8100_v15  ;;  %v5176_v35 = vadd.f32 %v5931_v61, %v5175_v17  ;;  %v6701_v36 = vpop.f32.mrb[135].mxu0  ;;  %v6981_v61 = vld [vmem:[#allocation14 + $0xa8] sm:$0xff]   ;;  %v6983_v23 = vld [vmem:[#allocation14 + $0xb0] sm:$0xff]   ;;  %v6985_v17 = vld [vmem:[#allocation14 + $0xb8] sm:$0xff]  }
0x2dcd   :  { %6198 = vmatpush3.bf16.msra.mxu0 %v6981_v61 }
0x2dce   :  { %v5180_v38 = vadd.f32 %v5176_v35, %v8102_v16  ;;  %5185 = vadd.xlane.f32.xlu0 %v5179_v18  ;;  %6199 = vmatprep.subr.bf16.mxu0 %v6982_v45 }
0x2dd0   :  { %5187 = vadd.xlane.f32.xlu1 %v5180_v38 }
0x2dd1   :  { %6200 = vmatpush3.bf16.msra.mxu0 %v6983_v23 }
0x2dd2   :  { %6201 = vmatprep.subr.bf16.mxu0 %v6984_v42 }
0x2dd5   :  { %6202 = vmatpush3.bf16.msra.mxu0 %v6985_v17 }
0x2e5b   :  { %v5186_v37 = vpop.xlane.xlu0 %5185 }
0x2e5c   :  { %v5189_v41 = vmul.f32 0.0078125, %v5186_v37 }
0x2e5d   :  { %v5188_v43 = vpop.xlane.xlu1 %5187 }
0x2e5e   :  { %v8497_v40 = vsub.f32 %v5179_v18, %v5189_v41  ;;  %v5190_v15 = vmul.f32 0.0078125, %v5188_v43  ;;  %v5944_v18 = vld [vmem:[%s8561_s9 + $0x2] sm:$0x3] }
0x2e5f   :  { %v5247_v35 = vrot.slane %v5944_v18, %v7677_v53  ;;  %v5251_v36 = vrot.slane %v5944_v18, %v7669_v49  ;;  %v5962_v49 = vld [vmem:[%s8563_s11 + $0x1] ss:$0 sm:$0xff] }
0x2e60   :  { %v8499_v46 = vsub.f32 %v5180_v38, %v5190_v15  ;;  %v5193_v16 = vmul.f32 %v8497_v40, %v8497_v40 }
0x2e62   :  { %5195 = vadd.xlane.f32.xlu0 %v5193_v16  ;;  %v5194_v47 = vmul.f32 %v8499_v46, %v8499_v46 }
0x2e66   :  { %5197 = vadd.xlane.f32.xlu0 %v5194_v47 }
0x2eef   :  { %v5196_v31 = vpop.xlane.xlu0 %5195 }
0x2ef0   :  { %v5199_v10 = vmul.f32 0.0078125, %v5196_v31  ;;  %v6991_v31 = vld [vmem:[#allocation16 + $0x28] sm:$0xff]  }
0x2ef2   :  { %v5201_v22 = vadd.f32 1e-05, %v5199_v10  ;;  %v6992_v10 = vld [vmem:[#allocation16 + $0x30] sm:$0xff]  }
0x2ef3   :  { %v5198_v32 = vpop.xlane.xlu0 %5197 }
0x2ef4   :  { %7130 = vrsqrt.f32 %v5201_v22  ;;  %v5200_v58 = vmul.f32 0.0078125, %v5198_v32  ;;  %v6993_v22 = vld [vmem:[#allocation16 + $0x38] sm:$0xff]  }
0x2ef6   :  { %v5202_v48 = vadd.f32 1e-05, %v5200_v58 }
0x2ef8   :  { %7132 = vrsqrt.f32 %v5202_v48 }
0x2efe   :  { %v7131_v21 = vpop.eup %7130 }
0x2eff   :  { %v5205_v63 = vmul.f32 %v7131_v21, %v8497_v40 }
0x2f01   :  { %v5213_v27 = vmul.f32 %v5942_v30, %v5205_v63 }
0x2f02   :  { %v7133_v1 = vpop.eup %7132 }
0x2f03   :  { %v5206_v26 = vmul.f32 %v7133_v1, %v8499_v46  ;;  %v5221_v54 = vadd.f32 %v5943_v28, %v5213_v27 }
0x2f05   :  { %v5214_v11 = vmul.f32 %v5942_v30, %v5206_v26  ;;  %v5981_v26 = vld [vmem:[%s8566_s14 + $0x1] ss:$0 sm:$0xff] }
0x2f07   :  { %v5222_v55 = vadd.f32 %v5943_v28, %v5214_v11 }
0x2f09   :  { %v5223_v60 = vpack.c.bf16 %v5222_v55, %v5221_v54 }
0x2f0b   :  { %5367 = vmatmul.mubr.bf16.vlgmr.msra.gmra.mrb[156].mxu1 %v5223_v60 }
0x2f0c   :  { %6718 = vmatprep.mubr.msk.bf16.mxu1 %vm7386_vm0, %v7385_v0  ;;  %6703 = vmatpush3.bf16.msra.mxu1 %v6986_v29 }
0x2f0d   :  { %6704 = vmatprep.subr.bf16.mxu1 %v7385_v0 }
0x2f10   :  { %6705 = vmatpush3.bf16.msra.mxu1 %v6987_v33 }
0x2f11   :  { %6706 = vmatprep.subr.bf16.mxu1 %v7385_v0 }
0x2f14   :  { %6707 = vmatpush3.bf16.msra.mxu1 %v6988_v13 }
0x2f15   :  { %6708 = vmatprep.subr.bf16.mxu1 %v7385_v0 }
0x2f18   :  { %6709 = vmatpush3.bf16.msra.mxu1 %v6989_v51 }
0x2f19   :  { %6710 = vmatprep.subr.bf16.mxu1 %v7385_v0 }
0x2f1c   :  { %6711 = vmatpush3.bf16.msra.mxu1 %v6990_v5 }
0x2f1d   :  { %6712 = vmatprep.subr.bf16.mxu1 %v7385_v0 }
0x2f20   :  { %6713 = vmatpush3.bf16.msra.mxu1 %v6991_v31 }
0x2f21   :  { %6714 = vmatprep.subr.bf16.mxu1 %v7385_v0 }
0x2f24   :  { %6715 = vmatpush3.bf16.msra.mxu1 %v6992_v10 }
0x2f25   :  { %6716 = vmatprep.subr.bf16.mxu1 %v7385_v0  ;;  %v5982_v0 = vld [vmem:[%s8567_s15 + $0x1] ss:$0 sm:$0xff] }
0x2f28   :  { %6717 = vmatpush3.bf16.msra.mxu1 %v6993_v22 }
0x2fde   :  { %v5368_v38 = vpop.f32.mrb[156].mxu1 }
0x2fdf   :  { %v5369_v12 = vadd.f32 %v5368_v38, %v5247_v35  ;;  %v5370_v39 = vpop.f32.mrb[157].mxu1 }
0x2fe0   :  { %v5371_v6 = vadd.f32 %v5370_v39, %v5251_v36  ;;  %v5372_v34 = vpop.f32.mrb[158].mxu1 }
0x2fe1   :  { %v5373_v37 = vadd.f32 %v5372_v34, %v5247_v35  ;;  %v5374_v41 = vpop.f32.mrb[159].mxu1  ;;  %v5377_v40 = vmax.f32 %v5369_v12, 0.0 }
0x2fe2   :  { %v5375_v43 = vadd.f32 %v5374_v41, %v5251_v36  ;;  %v5378_v46 = vmax.f32 %v5371_v6, 0.0 }
0x2fe3   :  { %v5379_v15 = vmax.f32 %v5373_v37, 0.0 }
0x2fe4   :  { %v5380_v16 = vmax.f32 %v5375_v43, 0.0 }
0x2fe5   :  { %v5381_v47 = vpack.c.bf16 %v5379_v15, %v5377_v40 }
0x2fe6   :  { %v5382_v8 = vpack.c.bf16 %v5380_v16, %v5378_v46 }
0x2fe8   :  { %5552 = vmatprep.mubr.bf16.mxu0 %v5382_v8  ;;  %v5983_v8 = vld [vmem:[%s8569_s17] ss:$0 sm:$0xff] }
0x2fe9   :  { %5553 = vmatmul.mubr.bf16.vlgmr.msra.gmra.mrb[136].mxu0 %v5381_v47 }
0x30bc   :  { %v6203_v50 = vpop.f32.mrb[136].mxu0 }
0x30bd   :  { %v6204_v53 = vpop.f32.mrb[137].mxu0 }
0x30be   :  { %v6205_v52 = vadd.f32 %v6204_v53, %v6203_v50  ;;  %v6206_v56 = vpop.f32.mrb[138].mxu0 }
0x30bf   :  { %v6207_v57 = vpop.f32.mrb[139].mxu0 }
0x30c0   :  { %v5555_v59 = vadd.f32 %v6205_v52, %v5962_v49  ;;  %v6208_v62 = vadd.f32 %v6207_v57, %v6206_v56 }
0x30c2   :  { %v5558_v2 = vadd.f32 %v6208_v62, %v5962_v49  ;;  %v5561_v44 = vadd.f32 %v5555_v59, %v5221_v54 }
0x30c4   :  { %5567 = vadd.xlane.f32.xlu0 %v5561_v44  ;;  %v5562_v4 = vadd.f32 %v5558_v2, %v5222_v55 }
0x30c6   :  { %5569 = vadd.xlane.f32.xlu1 %v5562_v4 }
0x3151   :  { %v5568_v9 = vpop.xlane.xlu0 %5567 }
0x3152   :  { %v5571_v14 = vmul.f32 0.0078125, %v5568_v9 }
0x3153   :  { %v5570_v19 = vpop.xlane.xlu1 %5569 }
0x3154   :  { %v5573_v20 = vsub.f32 %v5561_v44, %v5571_v14  ;;  %v5572_v24 = vmul.f32 0.0078125, %v5570_v19 }
0x3156   :  { %v5574_v25 = vsub.f32 %v5562_v4, %v5572_v24  ;;  %v5575_v3 = vmul.f32 %v5573_v20, %v5573_v20 }
0x3158   :  { %5577 = vadd.xlane.f32.xlu0 %v5575_v3  ;;  %v5576_v7 = vmul.f32 %v5574_v25, %v5574_v25 }
0x315a   :  { %5579 = vadd.xlane.f32.xlu1 %v5576_v7 }
0x31e5   :  { %v5578_v32 = vpop.xlane.xlu0 %5577 }
0x31e6   :  { %v5581_v58 = vmul.f32 0.0078125, %v5578_v32 }
0x31e7   :  { %v5580_v48 = vpop.xlane.xlu1 %5579 }
0x31e8   :  { %v5583_v21 = vadd.f32 1e-05, %v5581_v58  ;;  %v5582_v63 = vmul.f32 0.0078125, %v5580_v48 }
0x31ea   :  { %7134 = vrsqrt.f32 %v5583_v21  ;;  %v5584_v30 = vadd.f32 1e-05, %v5582_v63 }
0x31ec   :  { %7136 = vrsqrt.f32 %v5584_v30 }
0x31f4   :  { %v7135_v1 = vpop.eup %7134 }
0x31f5   :  { %v5587_v27 = vmul.f32 %v7135_v1, %v5573_v20 }
0x31f6   :  { %v7137_v28 = vpop.eup %7136 }
0x31f7   :  { %v5595_v11 = vmul.f32 %v5981_v26, %v5587_v27  ;;  %v5588_v54 = vmul.f32 %v7137_v28, %v5574_v25 }
0x31f9   :  { %v5603_v55 = vadd.f32 %v5982_v0, %v5595_v11  ;;  %v5596_v60 = vmul.f32 %v5981_v26, %v5588_v54 }
0x31fb   :  { %v5605_v61 = vrot.slane %v5603_v55, 4  ;;  %v5604_v45 = vadd.f32 %v5982_v0, %v5596_v60 }
0x31fd   :  { %v5611_v23 = vrot.slane %v5604_v45, 4  ;;  %v5606_v42 = vadd.f32 %v5605_v61, %v5603_v55 }
0x31ff   :  { %v5607_v17 = vrot.slane %v5606_v42, 2  ;;  %v5612_v18 = vadd.f32 %v5611_v23, %v5604_v45 }
0x3201   :  { %v5608_v35 = vadd.f32 %v5607_v17, %v5606_v42  ;;  %v5613_v36 = vrot.slane %v5612_v18, 2 }
0x3203   :  { %v5609_v38 = vrot.slane %v5608_v35, 1  ;;  %v5614_v12 = vadd.f32 %v5613_v36, %v5612_v18 }
0x3205   :  { %v5610_v39 = vadd.f32 %v5609_v38, %v5608_v35  ;;  %v5615_v6 = vrot.slane %v5614_v12, 1 }
0x3207   :  { %v5616_v34 = vadd.f32 %v5615_v6, %v5614_v12  ;;  %v5618_v37 = vmul.f32 0.125, %v5610_v39 }
0x3209   :  { %v5619_v41 = vmul.f32 0.125, %v5616_v34  ;;  %v5620_v43 = vpack.c.bf16 %v5618_v37, %v5618_v37 }
0x320b   :  { %v5621_v40 = vpack.c.bf16 %v5619_v41, %v5619_v41  ;;  %v5647_v15 = vunpack.c.l.b16 %v5620_v43 }
0x320d   :  { %v5648_v46 = vunpack.c.l.b16 %v5621_v40 }
0x320f   :  { %v5650_v16 = vsel %vm5649_vm10, %v5648_v46, %v5647_v15 }
0x3210   :  { %v5651_v47 = vpack.c.b16 %v5650_v16, %v5650_v16 }
0x3212   :  { %6719 = vmatmul.mubr.bf16.vlgmr.msra.gmra.mrb[160].mxu1 %v5651_v47 }
0x32e5   :  { %v5735_v50 = vpop.f32.mrb[160].mxu1 }
0x32e6   :  { %v5736_v49 = vadd.f32 %v5983_v8, %v5735_v50  ;;  %v6720_v53 = vpop.f32.mrb[161].mxu1 }
0x32e7   :  { %v5738_v52 = vpop.f32.mrb[162].mxu1 }
0x32e8   :  { %5741 = vst [vmem:[#allocation17] sm:$0x3] %v5736_v49  ;;  %v6721_v56 = vpop.f32.mrb[163].mxu1 }
0x32e9   :  { %7347 = shalt.err (!%p7344_p6)
}
0x32ea   :  { %s8584_s6 = sld [smem:[#allocation27_spill]] }
0x32f0   :  { %s7348_s17 = scalar_lea.hbm %s8584_s6, 32 }
0x32f1   :  { %p7349_p7 = scmp.ne.s32.totalorder %s8584_s6, %s7348_s17  ;;  %p7352_p8 = scmp.lt.u32.totalorder %s7348_s17, %s8584_s6 }
0x32f3   :  { %p7354_p9 = pnand %p7352_p8, %p7349_p7 }
0x32f5   :  { %7357 = shalt.err (!%p7354_p9)
}
0x32f6   :  { %5751 = dma.vmem_to_hbm [thread:$0]  %s5749_s18, 32, %s8584_s6, [#allocation4]  }
0x32f7   :  { %7368 = dma.done.wait [#allocation4], 32  }
0x32f8   :  { %7369 = vsyncadd [#allocation4], 4294967264 }
0x32f9   :  { %5755 = vsyncpa [#allocation3], 1 }
0x32fa   :  { %5756 = vsyncpa [#allocation6], 1 }
0x32fb   :  { %5757 = vsyncpa [#allocation9], 1 }
0x32fc   :  { %5758 = vsyncpa [#allocation12], 1 }
0x32fd   :  { %5759 = vsyncpa [#allocation15], 1 }
0x32fe   :  { %5760 = vsyncpa [#allocation4], 1 }

</bundles_post_ra>
